<compile_context>
chip_gen: v7x
topology: tpu7x:2x2x1
jax: 0.10.0
libtpu: 0.0.40
codegen_flags: <defaults>
</compile_context>

<pallas_src>
import functools

import jax
import jax.numpy as jnp
from jax.experimental import pallas as pl
from jax.experimental.pallas import tpu as pltpu


# ----------------------------------------------------------------------------
# helpers
# ----------------------------------------------------------------------------

def _round_up(n, m):
    return ((n + m - 1) // m) * m


def _vmem_spec():
    return pl.BlockSpec(memory_space=pltpu.MemorySpace.VMEM)


def _linear(x_bf16, w_ref, b_ref):
    # bf16 x bf16 matmul on the MXU, f32 accumulation, f32 bias add.
    return jnp.dot(x_bf16, w_ref[...], preferred_element_type=jnp.float32) + b_ref[...]


# ----------------------------------------------------------------------------
# Pallas kernels
# ----------------------------------------------------------------------------

def fused_nidsgan_kernel(
    x_ref,
    g_w1, g_b1, g_w2, g_b2, g_w3, g_b3,
    d_w1, d_b1, d_w2, d_b2, d_w3, d_b3, d_w4, d_b4,
    c_w, c_b,
    adv_ref, delta_ref, d_logits_ref, c_logits_ref,
    *, clip_min, clip_max,
):
    x = x_ref[...]  # (B, F_PAD) f32, padded feature columns are exactly zero

    # ---- Generator: Linear(F,300)->ReLU->Linear(300,200)->ReLU->Linear(200,F) ----
    h = _linear(x.astype(jnp.bfloat16), g_w1, g_b1)
    h = jnp.maximum(h, 0.0)
    h = _linear(h.astype(jnp.bfloat16), g_w2, g_b2)
    h = jnp.maximum(h, 0.0)
    g_out = _linear(h.astype(jnp.bfloat16), g_w3, g_b3)

    # PyTorch: x.view(shape) / x.abs().max()  -- GLOBAL max over the whole output.
    # Padded output columns are exactly zero, so they never win the max.
    # (Mirrors PyTorch: an all-zero generator output would give inf/nan there too.)
    max_abs = jnp.max(jnp.abs(g_out), axis=1, keepdims=True)   # (B, 1)   XLU
    max_abs = jnp.max(max_abs, axis=0, keepdims=True)          # (1, 1)
    inv = pl.reciprocal(max_abs, approx=True)                  # EUP slot
    delta = g_out * inv
    delta_ref[...] = delta

    # ---- generate_adv_samples: adv = clamp(x + delta, clip_min, clip_max) ----
    adv = jnp.clip(x + delta, clip_min, clip_max)
    adv_ref[...] = adv

    # ---- Discriminator(adv): 3x (Linear -> Tanh) + Linear ----
    a = adv.astype(jnp.bfloat16)
    t = jnp.tanh(_linear(a, d_w1, d_b1))
    t = jnp.tanh(_linear(t.astype(jnp.bfloat16), d_w2, d_b2))
    t = jnp.tanh(_linear(t.astype(jnp.bfloat16), d_w3, d_b3))
    d_logits_ref[...] = _linear(t.astype(jnp.bfloat16), d_w4, d_b4)

    # ---- Stand-in classifier(adv)  (NIDSGAN.forward path) ----
    c_logits_ref[...] = _linear(a, c_w, c_b)


def discriminator_kernel(x_ref, w1, b1, w2, b2, w3, b3, w4, b4, logits_ref):
    # Standalone discriminator (used on real samples in the training loop).
    t = jnp.tanh(_linear(x_ref[...].astype(jnp.bfloat16), w1, b1))
    t = jnp.tanh(_linear(t.astype(jnp.bfloat16), w2, b2))
    t = jnp.tanh(_linear(t.astype(jnp.bfloat16), w3, b3))
    logits_ref[...] = _linear(t.astype(jnp.bfloat16), w4, b4)


def classifier_kernel(x_ref, w, b, logits_ref):
    logits_ref[...] = _linear(x_ref[...].astype(jnp.bfloat16), w, b)


# ----------------------------------------------------------------------------
# parameter init (PyTorch nn.Linear-style uniform, zero-padded to lane-aligned)
# ----------------------------------------------------------------------------

def _linear_params(key, fan_in, fan_out, pad_in, pad_out):
    kw, kb = jax.random.split(key)
    bound = 1.0 / (fan_in ** 0.5)
    w = jax.random.uniform(kw, (fan_in, fan_out), jnp.float32, -bound, bound)
    b = jax.random.uniform(kb, (1, fan_out), jnp.float32, -bound, bound)
    # Zero padding keeps padded units inert; bf16 cast keeps zeros exact.
    w_pad = jnp.zeros((pad_in, pad_out), jnp.float32).at[:fan_in, :fan_out].set(w)
    b_pad = jnp.zeros((1, pad_out), jnp.float32).at[:, :fan_out].set(b)
    return [w_pad.astype(jnp.bfloat16), b_pad]


class NIDSGANPallas:
    """Pallas implementation of the NIDSGAN inference paths."""

    def __init__(self, key, input_size, n_classes=2, clip_min=0.0, clip_max=1.0):
        self.input_size = input_size
        self.n_classes = n_classes
        self.clip_min = float(clip_min)
        self.clip_max = float(clip_max)

        self.f_pad = _round_up(input_size, 128)      # 166 -> 256
        self.c_pad = _round_up(n_classes, 128)       # 2   -> 128
        g1, g2 = _round_up(300, 128), _round_up(200, 128)          # 384, 256
        d1, d2, d3 = 256, 128, _round_up(64, 128)                  # 256, 128, 128

        keys = jax.random.split(key, 8)

        # Generator: input_size -> 300 -> 200 -> input_size
        self.g_params = []
        gdims = [(input_size, 300, self.f_pad, g1),
                 (300, 200, g1, g2),
                 (200, input_size, g2, self.f_pad)]
        for k, (fi, fo, pi, po) in zip(keys[:3], gdims):
            self.g_params.extend(_linear_params(k, fi, fo, pi, po))

        # Discriminator: input_size -> 256 -> 128 -> 64 -> n_classes
        self.d_params = []
        ddims = [(input_size, 256, self.f_pad, d1),
                 (256, 128, d1, d2),
                 (128, 64, d2, d3),
                 (64, n_classes, d3, self.c_pad)]
        for k, (fi, fo, pi, po) in zip(keys[3:7], ddims):
            self.d_params.extend(_linear_params(k, fi, fo, pi, po))

        # Synthetic stand-in classifier: input_size -> n_classes
        self.c_params = _linear_params(keys[7], input_size, n_classes,
                                       self.f_pad, self.c_pad)

    # -- wrapper helpers -------------------------------------------------------

    def _pad_features(self, x2d):
        f = x2d.shape[1]
        if f == self.f_pad:
            return x2d
        return jnp.pad(x2d, ((0, 0), (0, self.f_pad - f)))

    # -- fused end-to-end path (generator -> clamp -> discriminator/classifier) -

    def generate_adv_and_classify(self, x):
        shape = x.shape
        b = shape[0]
        x2d = self._pad_features(x.reshape(b, -1).astype(jnp.float32))
        kernel = functools.partial(
            fused_nidsgan_kernel, clip_min=self.clip_min, clip_max=self.clip_max)
        args = [x2d] + self.g_params + self.d_params + self.c_params
        out_shapes = (
            jax.ShapeDtypeStruct((b, self.f_pad), jnp.float32),   # adv (padded)
            jax.ShapeDtypeStruct((b, self.f_pad), jnp.float32),   # delta (padded)
            jax.ShapeDtypeStruct((b, self.c_pad), jnp.float32),   # D logits (padded)
            jax.ShapeDtypeStruct((b, self.c_pad), jnp.float32),   # cls logits (padded)
        )
        adv_p, delta_p, dlog_p, clog_p = pl.pallas_call(
            kernel,
            out_shape=out_shapes,
            in_specs=[_vmem_spec() for _ in args],
            out_specs=tuple(_vmem_spec() for _ in out_shapes),
        )(*args)
        f, c = self.input_size, self.n_classes
        adv = adv_p[:, :f].reshape(shape)
        delta = delta_p[:, :f].reshape(shape)
        return adv, delta, dlog_p[:, :c], clog_p[:, :c]

    # -- module-level API ------------------------------------------------------

    # NIDSGAN.generate_adv_samples (use_network_constraints=False path)
    def generate_adv_samples(self, x):
        adv, delta, _, _ = self.generate_adv_and_classify(x)
        return adv, delta

    # Discriminator.forward (standalone, e.g. on real samples)
    def discriminator(self, x):
        b = x.shape[0]
        x2d = self._pad_features(x.reshape(b, -1).astype(jnp.float32))
        args = [x2d] + self.d_params
        logits_p = pl.pallas_call(
            discriminator_kernel,
            out_shape=jax.ShapeDtypeStruct((b, self.c_pad), jnp.float32),
            in_specs=[_vmem_spec() for _ in args],
            out_specs=_vmem_spec(),
        )(*args)
        return logits_p[:, :self.n_classes]

    # stand-in classifier (standalone)
    def classifier(self, x):
        b = x.shape[0]
        x2d = self._pad_features(x.reshape(b, -1).astype(jnp.float32))
        args = [x2d] + self.c_params
        logits_p = pl.pallas_call(
            classifier_kernel,
            out_shape=jax.ShapeDtypeStruct((b, self.c_pad), jnp.float32),
            in_specs=[_vmem_spec() for _ in args],
            out_specs=_vmem_spec(),
        )(*args)
        return logits_p[:, :self.n_classes]

    # NIDSGAN.forward
    def forward(self, xs):
        return self.classifier(*xs)


if __name__ == "__main__":
    key = jax.random.PRNGKey(0)
    k_model, k_data = jax.random.split(key)

    # batch=128 keeps f32 sublane tiles full and gives the MXU a real M dimension;
    # feature count 166 matches the module default.
    batch, input_size = 128, 166
    model = NIDSGANPallas(k_model, input_size)

    x = jax.random.uniform(k_data, (batch, input_size), jnp.float32)

    # Fused attack path: generator -> delta/adv -> discriminator(adv) -> classifier(adv).
    adv, delta, d_logits_adv, cls_logits = model.generate_adv_and_classify(x)
    # Standalone discriminator on the real samples (the d_real path of training).
    d_logits_real = model.discriminator(x)

    jax.block_until_ready((adv, delta, d_logits_adv, cls_logits, d_logits_real))

    assert adv.shape == (batch, input_size)
    assert delta.shape == (batch, input_size)
    assert d_logits_adv.shape == (batch, 2)
    assert cls_logits.shape == (batch, 2)
    assert d_logits_real.shape == (batch, 2)
    assert bool(jnp.all(jnp.isfinite(adv)))
    assert bool(jnp.all(jnp.isfinite(d_logits_adv)))

    print("KERNEL_OK")
</pallas_src>

<mosaic_0001>
module attributes {stable_mosaic.version = 11 : i64} {
  func.func @fused_nidsgan_kernel(%arg0: memref<128x256xf32, #tpu.memory_space<vmem>>, %arg1: memref<256x384xbf16, #tpu.memory_space<vmem>>, %arg2: memref<1x384xf32, #tpu.memory_space<vmem>>, %arg3: memref<384x256xbf16, #tpu.memory_space<vmem>>, %arg4: memref<1x256xf32, #tpu.memory_space<vmem>>, %arg5: memref<256x256xbf16, #tpu.memory_space<vmem>>, %arg6: memref<1x256xf32, #tpu.memory_space<vmem>>, %arg7: memref<256x256xbf16, #tpu.memory_space<vmem>>, %arg8: memref<1x256xf32, #tpu.memory_space<vmem>>, %arg9: memref<256x128xbf16, #tpu.memory_space<vmem>>, %arg10: memref<1x128xf32, #tpu.memory_space<vmem>>, %arg11: memref<128x128xbf16, #tpu.memory_space<vmem>>, %arg12: memref<1x128xf32, #tpu.memory_space<vmem>>, %arg13: memref<128x128xbf16, #tpu.memory_space<vmem>>, %arg14: memref<1x128xf32, #tpu.memory_space<vmem>>, %arg15: memref<256x128xbf16, #tpu.memory_space<vmem>>, %arg16: memref<1x128xf32, #tpu.memory_space<vmem>>, %arg17: memref<128x256xf32, #tpu.memory_space<vmem>>, %arg18: memref<128x256xf32, #tpu.memory_space<vmem>>, %arg19: memref<128x128xf32, #tpu.memory_space<vmem>>, %arg20: memref<128x128xf32, #tpu.memory_space<vmem>>) attributes {dimension_semantics = [], scalar_prefetch = 0 : i64, scratch_operands = 0 : i64, tpu.core_type = #tpu.core_type<tc>} {
    %c0 = arith.constant 0 : index
    %c0_0 = arith.constant 0 : index
    %0 = vector.load %arg0[%c0, %c0_0] : memref<128x256xf32, #tpu.memory_space<vmem>>, vector<128x256xf32>
    %1 = arith.truncf %0 : vector<128x256xf32> to vector<128x256xbf16>
    %c0_1 = arith.constant 0 : index
    %c0_2 = arith.constant 0 : index
    %2 = vector.load %arg1[%c0_1, %c0_2] : memref<256x384xbf16, #tpu.memory_space<vmem>>, vector<256x384xbf16>
    %cst = arith.constant dense<0.000000e+00> : vector<128x384xf32>
    %3 = tpu.matmul %1, %2, %cst {dimension_numbers = #tpu.dot_dimension_numbers<[1], [0], [0], [1], [0, 0, 1, 1], [], []>} : vector<128x256xbf16>, vector<256x384xbf16>, vector<128x384xf32> -> vector<128x384xf32>
    %c0_3 = arith.constant 0 : index
    %c0_4 = arith.constant 0 : index
    %4 = vector.load %arg2[%c0_3, %c0_4] : memref<1x384xf32, #tpu.memory_space<vmem>>, vector<1x384xf32>
    %5 = vector.broadcast %4 : vector<1x384xf32> to vector<128x384xf32>
    %6 = arith.addf %3, %5 : vector<128x384xf32>
    %cst_5 = arith.constant 0.000000e+00 : f32
    %7 = vector.broadcast %cst_5 : f32 to vector<128x384xf32>
    %8 = arith.maximumf %6, %7 : vector<128x384xf32>
    %9 = arith.truncf %8 : vector<128x384xf32> to vector<128x384xbf16>
    %c0_6 = arith.constant 0 : index
    %c0_7 = arith.constant 0 : index
    %10 = vector.load %arg3[%c0_6, %c0_7] : memref<384x256xbf16, #tpu.memory_space<vmem>>, vector<384x256xbf16>
    %cst_8 = arith.constant dense<0.000000e+00> : vector<128x256xf32>
    %11 = tpu.matmul %9, %10, %cst_8 {dimension_numbers = #tpu.dot_dimension_numbers<[1], [0], [0], [1], [0, 0, 1, 1], [], []>} : vector<128x384xbf16>, vector<384x256xbf16>, vector<128x256xf32> -> vector<128x256xf32>
    %c0_9 = arith.constant 0 : index
    %c0_10 = arith.constant 0 : index
    %12 = vector.load %arg4[%c0_9, %c0_10] : memref<1x256xf32, #tpu.memory_space<vmem>>, vector<1x256xf32>
    %13 = vector.broadcast %12 : vector<1x256xf32> to vector<128x256xf32>
    %14 = arith.addf %11, %13 : vector<128x256xf32>
    %cst_11 = arith.constant 0.000000e+00 : f32
    %15 = vector.broadcast %cst_11 : f32 to vector<128x256xf32>
    %16 = arith.maximumf %14, %15 : vector<128x256xf32>
    %17 = arith.truncf %16 : vector<128x256xf32> to vector<128x256xbf16>
    %c0_12 = arith.constant 0 : index
    %c0_13 = arith.constant 0 : index
    %18 = vector.load %arg5[%c0_12, %c0_13] : memref<256x256xbf16, #tpu.memory_space<vmem>>, vector<256x256xbf16>
    %cst_14 = arith.constant dense<0.000000e+00> : vector<128x256xf32>
    %19 = tpu.matmul %17, %18, %cst_14 {dimension_numbers = #tpu.dot_dimension_numbers<[1], [0], [0], [1], [0, 0, 1, 1], [], []>} : vector<128x256xbf16>, vector<256x256xbf16>, vector<128x256xf32> -> vector<128x256xf32>
    %c0_15 = arith.constant 0 : index
    %c0_16 = arith.constant 0 : index
    %20 = vector.load %arg6[%c0_15, %c0_16] : memref<1x256xf32, #tpu.memory_space<vmem>>, vector<1x256xf32>
    %21 = vector.broadcast %20 : vector<1x256xf32> to vector<128x256xf32>
    %22 = arith.addf %19, %21 : vector<128x256xf32>
    %23 = math.absf %22 : vector<128x256xf32>
    %cst_17 = arith.constant dense<0xFF800000> : vector<128xf32>
    %24 = vector.multi_reduction <maximumf>, %23, %cst_17 [1] : vector<128x256xf32> to vector<128xf32>
    %25 = vector.shape_cast %24 : vector<128xf32> to vector<128x1xf32>
    %cst_18 = arith.constant dense<0xFF800000> : vector<1xf32>
    %26 = vector.multi_reduction <maximumf>, %25, %cst_18 [0] : vector<128x1xf32> to vector<1xf32>
    %27 = vector.shape_cast %26 : vector<1xf32> to vector<1x1xf32>
    %28 = tpu.reciprocal %27 {approx = true} : vector<1x1xf32> -> vector<1x1xf32>
    %29 = vector.broadcast %28 : vector<1x1xf32> to vector<128x256xf32>
    %30 = arith.mulf %22, %29 : vector<128x256xf32>
    %c0_19 = arith.constant 0 : index
    %c0_20 = arith.constant 0 : index
    %31 = vector.load %arg18[%c0_19, %c0_20] : memref<128x256xf32, #tpu.memory_space<vmem>>, vector<128x256xf32>
    tpu.vector_store %arg18[%c0_19, %c0_20], %30 {strides = array<i32>} : memref<128x256xf32, #tpu.memory_space<vmem>>, vector<128x256xf32>,
    %32 = arith.addf %0, %30 : vector<128x256xf32>
    %cst_21 = arith.constant 0.000000e+00 : f32
    %cst_22 = arith.constant 1.000000e+00 : f32
    %33 = vector.broadcast %cst_21 : f32 to vector<128x256xf32>
    %34 = arith.maximumf %33, %32 : vector<128x256xf32>
    %35 = vector.broadcast %cst_22 : f32 to vector<128x256xf32>
    %36 = arith.minimumf %35, %34 : vector<128x256xf32>
    %c0_23 = arith.constant 0 : index
    %c0_24 = arith.constant 0 : index
    %37 = vector.load %arg17[%c0_23, %c0_24] : memref<128x256xf32, #tpu.memory_space<vmem>>, vector<128x256xf32>
    tpu.vector_store %arg17[%c0_23, %c0_24], %36 {strides = array<i32>} : memref<128x256xf32, #tpu.memory_space<vmem>>, vector<128x256xf32>,
    %38 = arith.truncf %36 : vector<128x256xf32> to vector<128x256xbf16>
    %c0_25 = arith.constant 0 : index
    %c0_26 = arith.constant 0 : index
    %39 = vector.load %arg7[%c0_25, %c0_26] : memref<256x256xbf16, #tpu.memory_space<vmem>>, vector<256x256xbf16>
    %cst_27 = arith.constant dense<0.000000e+00> : vector<128x256xf32>
    %40 = tpu.matmul %38, %39, %cst_27 {dimension_numbers = #tpu.dot_dimension_numbers<[1], [0], [0], [1], [0, 0, 1, 1], [], []>} : vector<128x256xbf16>, vector<256x256xbf16>, vector<128x256xf32> -> vector<128x256xf32>
    %c0_28 = arith.constant 0 : index
    %c0_29 = arith.constant 0 : index
    %41 = vector.load %arg8[%c0_28, %c0_29] : memref<1x256xf32, #tpu.memory_space<vmem>>, vector<1x256xf32>
    %42 = vector.broadcast %41 : vector<1x256xf32> to vector<128x256xf32>
    %43 = arith.addf %40, %42 : vector<128x256xf32>
    %44 = math.tanh %43 : vector<128x256xf32>
    %45 = arith.truncf %44 : vector<128x256xf32> to vector<128x256xbf16>
    %c0_30 = arith.constant 0 : index
    %c0_31 = arith.constant 0 : index
    %46 = vector.load %arg9[%c0_30, %c0_31] : memref<256x128xbf16, #tpu.memory_space<vmem>>, vector<256x128xbf16>
    %cst_32 = arith.constant dense<0.000000e+00> : vector<128x128xf32>
    %47 = tpu.matmul %45, %46, %cst_32 {dimension_numbers = #tpu.dot_dimension_numbers<[1], [0], [0], [1], [0, 0, 1, 1], [], []>} : vector<128x256xbf16>, vector<256x128xbf16>, vector<128x128xf32> -> vector<128x128xf32>
    %c0_33 = arith.constant 0 : index
    %c0_34 = arith.constant 0 : index
    %48 = vector.load %arg10[%c0_33, %c0_34] : memref<1x128xf32, #tpu.memory_space<vmem>>, vector<1x128xf32>
    %49 = vector.broadcast %48 : vector<1x128xf32> to vector<128x128xf32>
    %50 = arith.addf %47, %49 : vector<128x128xf32>
    %51 = math.tanh %50 : vector<128x128xf32>
    %52 = arith.truncf %51 : vector<128x128xf32> to vector<128x128xbf16>
    %c0_35 = arith.constant 0 : index
    %c0_36 = arith.constant 0 : index
    %53 = vector.load %arg11[%c0_35, %c0_36] : memref<128x128xbf16, #tpu.memory_space<vmem>>, vector<128x128xbf16>
    %cst_37 = arith.constant dense<0.000000e+00> : vector<128x128xf32>
    %54 = tpu.matmul %52, %53, %cst_37 {dimension_numbers = #tpu.dot_dimension_numbers<[1], [0], [0], [1], [0, 0, 1, 1], [], []>} : vector<128x128xbf16>, vector<128x128xbf16>, vector<128x128xf32> -> vector<128x128xf32>
    %c0_38 = arith.constant 0 : index
    %c0_39 = arith.constant 0 : index
    %55 = vector.load %arg12[%c0_38, %c0_39] : memref<1x128xf32, #tpu.memory_space<vmem>>, vector<1x128xf32>
    %56 = vector.broadcast %55 : vector<1x128xf32> to vector<128x128xf32>
    %57 = arith.addf %54, %56 : vector<128x128xf32>
    %58 = math.tanh %57 : vector<128x128xf32>
    %59 = arith.truncf %58 : vector<128x128xf32> to vector<128x128xbf16>
    %c0_40 = arith.constant 0 : index
    %c0_41 = arith.constant 0 : index
    %60 = vector.load %arg13[%c0_40, %c0_41] : memref<128x128xbf16, #tpu.memory_space<vmem>>, vector<128x128xbf16>
    %cst_42 = arith.constant dense<0.000000e+00> : vector<128x128xf32>
    %61 = tpu.matmul %59, %60, %cst_42 {dimension_numbers = #tpu.dot_dimension_numbers<[1], [0], [0], [1], [0, 0, 1, 1], [], []>} : vector<128x128xbf16>, vector<128x128xbf16>, vector<128x128xf32> -> vector<128x128xf32>
    %c0_43 = arith.constant 0 : index
    %c0_44 = arith.constant 0 : index
    %62 = vector.load %arg14[%c0_43, %c0_44] : memref<1x128xf32, #tpu.memory_space<vmem>>, vector<1x128xf32>
    %63 = vector.broadcast %62 : vector<1x128xf32> to vector<128x128xf32>
    %64 = arith.addf %61, %63 : vector<128x128xf32>
    %c0_45 = arith.constant 0 : index
    %c0_46 = arith.constant 0 : index
    %65 = vector.load %arg19[%c0_45, %c0_46] : memref<128x128xf32, #tpu.memory_space<vmem>>, vector<128x128xf32>
    tpu.vector_store %arg19[%c0_45, %c0_46], %64 {strides = array<i32>} : memref<128x128xf32, #tpu.memory_space<vmem>>, vector<128x128xf32>,
    %c0_47 = arith.constant 0 : index
    %c0_48 = arith.constant 0 : index
    %66 = vector.load %arg15[%c0_47, %c0_48] : memref<256x128xbf16, #tpu.memory_space<vmem>>, vector<256x128xbf16>
    %cst_49 = arith.constant dense<0.000000e+00> : vector<128x128xf32>
    %67 = tpu.matmul %38, %66, %cst_49 {dimension_numbers = #tpu.dot_dimension_numbers<[1], [0], [0], [1], [0, 0, 1, 1], [], []>} : vector<128x256xbf16>, vector<256x128xbf16>, vector<128x128xf32> -> vector<128x128xf32>
    %c0_50 = arith.constant 0 : index
    %c0_51 = arith.constant 0 : index
    %68 = vector.load %arg16[%c0_50, %c0_51] : memref<1x128xf32, #tpu.memory_space<vmem>>, vector<1x128xf32>
    %69 = vector.broadcast %68 : vector<1x128xf32> to vector<128x128xf32>
    %70 = arith.addf %67, %69 : vector<128x128xf32>
    %c0_52 = arith.constant 0 : index
    %c0_53 = arith.constant 0 : index
    %71 = vector.load %arg20[%c0_52, %c0_53] : memref<128x128xf32, #tpu.memory_space<vmem>>, vector<128x128xf32>
    tpu.vector_store %arg20[%c0_52, %c0_53], %70 {strides = array<i32>} : memref<128x128xf32, #tpu.memory_space<vmem>>, vector<128x128xf32>,
    return
  }
}

</mosaic_0001>

<bundles_post_ra>
// kernel: tpu_custom_call.1
= control target key start
LH: loop header
LB: loop body
LE: loop exit
PB: predicated region body
PF: predicated region fallthrough
CT: control target
= control target key end

     0   :  { %s5797_s0 = inlined_call_operand.hbm [shape: f32[128,256], index: 0, kind: input, shape index: {}]   ;;  %s5798_s1 = inlined_call_operand.hbm [shape: bf16[256,384], index: 1, kind: input, shape index: {}]   ;;  %s5799_s2 = inlined_call_operand.vmem [shape: f32[1,384], index: 2, kind: input, shape index: {}]   ;;  %s5800_s3 = inlined_call_operand.hbm [shape: bf16[384,256], index: 3, kind: input, shape index: {}]   ;;  %s5801_s4 = inlined_call_operand.vmem [shape: f32[1,256], index: 4, kind: input, shape index: {}]   ;;  %s5802_s5 = inlined_call_operand.hbm [shape: bf16[256,256], index: 5, kind: input, shape index: {}]   ;;  %s5803_s6 = inlined_call_operand.vmem [shape: f32[1,256], index: 6, kind: input, shape index: {}]   ;;  %s5804_s7 = inlined_call_operand.hbm [shape: bf16[256,256], index: 7, kind: input, shape index: {}]   ;;  %s5805_s8 = inlined_call_operand.vmem [shape: f32[1,256], index: 8, kind: input, shape index: {}]   ;;  %s5806_s9 = inlined_call_operand.hbm [shape: bf16[256,128], index: 9, kind: input, shape index: {}]   ;;  %s5807_s10 = inlined_call_operand.vmem [shape: f32[1,128], index: 10, kind: input, shape index: {}]   ;;  %s5808_s11 = inlined_call_operand.hbm [shape: bf16[128,128], index: 11, kind: input, shape index: {}]   ;;  %s5809_s12 = inlined_call_operand.vmem [shape: f32[1,128], index: 12, kind: input, shape index: {}]   ;;  %s5810_s13 = inlined_call_operand.hbm [shape: bf16[128,128], index: 13, kind: input, shape index: {}]   ;;  %s5811_s14 = inlined_call_operand.vmem [shape: f32[1,128], index: 14, kind: input, shape index: {}]   ;;  %s5812_s15 = inlined_call_operand.hbm [shape: bf16[256,128], index: 15, kind: input, shape index: {}]   ;;  %s5813_s16 = inlined_call_operand.vmem [shape: f32[1,128], index: 16, kind: input, shape index: {}]   ;;  %s5814_s17 = inlined_call_operand.hbm [shape: f32[128,256], index: 17, kind: output, shape index: {0}]   ;;  %s5815_s18 = inlined_call_operand.hbm [shape: f32[128,256], index: 18, kind: output, shape index: {1}]   ;;  %s5816_s19 = inlined_call_operand.hbm [shape: f32[128,128], index: 19, kind: output, shape index: {2}]   ;;  %s5817_s20 = inlined_call_operand.hbm [shape: f32[128,128], index: 20, kind: output, shape index: {3}]  }
   0x1   :  { %5829 = sst [smem:[#allocation33_spill]] %s5797_s0 }
   0x2   :  { %5830 = sst [smem:[#allocation34_spill]] %s5798_s1 }
   0x3   :  { %5831 = sst [smem:[#allocation35_spill]] %s5799_s2 }
   0x4   :  { %5832 = sst [smem:[#allocation36_spill]] %s5800_s3 }
   0x5   :  { %5833 = sst [smem:[#allocation37_spill]] %s5801_s4 }
   0x6   :  { %5834 = sst [smem:[#allocation38_spill]] %s5816_s19 }
   0x7   :  { %5835 = sst [smem:[#allocation39_spill]] %s5817_s20 }
   0x8   :  { %26 = vsyncpa [#allocation3], 0 }
   0x9   :  { %27 = vsyncpa [#allocation6], 0 }
   0xa   :  { %28 = vsyncpa [#allocation9], 0 }
   0xb   :  { %29 = vsyncpa [#allocation12], 0 }
   0xc   :  { %30 = vsyncpa [#allocation15], 0 }
   0xd   :  { %31 = vsyncpa [#allocation4], 0 }
   0xe   :  { %32 = vsyncpa [#allocation19], 0 }
   0xf   :  { %33 = vsyncpa [#allocation22], 0  ;;  %s4713_s1 = smov [#allocation5]   ;;  %s5836_s2 = sld [smem:[#allocation34_spill]] }
  0x10   :  { %s51_s22 = sshll.u32 %s4713_s1, 4  ;;  %s52_s22 = int_to_ptr.vmem [resolvable:$true] %s51_s22 }
  0x15   :  { %s4411_s25 = scalar_lea.hbm %s5836_s2, 6144 }
  0x16   :  { %p4412_p0 = scmp.ne.s32.totalorder %s5836_s2, %s4411_s25  ;;  %p4415_p1 = scmp.lt.u32.totalorder %s4411_s25, %s5836_s2 }
  0x18   :  { %p4417_p2 = pnand %p4415_p1, %p4412_p0 }
  0x1a   :  { %4420 = shalt.err (!%p4417_p2)
}
  0x1b   :  { %s4421_s4 = scalar_lea.vmem %s52_s22, 6144  ;;  %p4426_p4 = scmp.lt.s32.totalorder %s52_s22, %s52_s22 }
  0x1c   :  { %p4422_p3 = scmp.ne.s32.totalorder %s52_s22, %s4421_s4  ;;  %p4427_p5 = scmp.lt.s32.totalorder %s4421_s4, %s4421_s4 }
  0x1e   :  { %p4428_p6 = por %p4427_p5, %p4426_p4 }
  0x20   :  { %p4429_p7 = pnand %p4428_p6, %p4422_p3 }
  0x22   :  { %4432 = shalt.err (!%p4429_p7)
}
  0x23   :  { %s4714_s29 = smov 192   ;;  %s4715_s30 = smov 12  }
  0x24   :  { %57 = dma.hbm_to_vmem [thread:$0]  %s5836_s2, 6144, %s52_s22, [#allocation6], %s4714_s29, %s4714_s29, %s4715_s30  }
  0x25   :  { %s4716_s1 = smov [#allocation8]   ;;  %s4717_s24 = smov [#allocation11]  }
  0x26   :  { %s79_s23 = sshll.u32 %s4716_s1, 4  ;;  %s107_s25 = sshll.u32 %s4717_s24, 4  ;;  %s80_s23 = int_to_ptr.vmem [resolvable:$true] %s79_s23  ;;  %s108_s25 = int_to_ptr.vmem [resolvable:$true] %s107_s25 }
  0x27   :  { %s4433_s27 = scalar_lea.hbm %s5802_s5, 4096 }
  0x28   :  { %p4434_p8 = scmp.ne.s32.totalorder %s5802_s5, %s4433_s27  ;;  %p4437_p9 = scmp.lt.u32.totalorder %s4433_s27, %s5802_s5 }
  0x2a   :  { %p4439_p10 = pnand %p4437_p9, %p4434_p8 }
  0x2c   :  { %4442 = shalt.err (!%p4439_p10)
}
  0x2d   :  { %s4443_s22 = scalar_lea.vmem %s80_s23, 4096  ;;  %p4448_p12 = scmp.lt.s32.totalorder %s80_s23, %s80_s23 }
  0x2e   :  { %p4444_p11 = scmp.ne.s32.totalorder %s80_s23, %s4443_s22  ;;  %p4449_p13 = scmp.lt.s32.totalorder %s4443_s22, %s4443_s22 }
  0x30   :  { %p4450_p0 = por %p4449_p13, %p4448_p12 }
  0x32   :  { %p4451_p1 = pnand %p4450_p0, %p4444_p11 }
  0x34   :  { %4454 = shalt.err (!%p4451_p1)
}
  0x35   :  { %s4718_s2 = smov 128   ;;  %s4719_s29 = smov 8  }
  0x36   :  { %85 = dma.hbm_to_vmem [thread:$0]  %s5802_s5, 4096, %s80_s23, [#allocation9], %s4718_s2, %s4718_s2, %s4719_s29  }
  0x37   :  { %s4455_s21 = scalar_lea.hbm %s5806_s9, 2048 }
  0x38   :  { %p4456_p2 = scmp.ne.s32.totalorder %s5806_s9, %s4455_s21  ;;  %p4459_p3 = scmp.lt.u32.totalorder %s4455_s21, %s5806_s9 }
  0x3a   :  { %p4461_p4 = pnand %p4459_p3, %p4456_p2 }
  0x3c   :  { %4464 = shalt.err (!%p4461_p4)
}
  0x3d   :  { %s4465_s27 = scalar_lea.vmem %s108_s25, 2048  ;;  %p4470_p6 = scmp.lt.s32.totalorder %s108_s25, %s108_s25 }
  0x3e   :  { %p4466_p5 = scmp.ne.s32.totalorder %s108_s25, %s4465_s27  ;;  %p4471_p7 = scmp.lt.s32.totalorder %s4465_s27, %s4465_s27 }
  0x40   :  { %p4472_p8 = por %p4471_p7, %p4470_p6 }
  0x42   :  { %p4473_p9 = pnand %p4472_p8, %p4466_p5 }
  0x44   :  { %4476 = shalt.err (!%p4473_p9)
}
  0x45   :  { %s5823_s5 = smov 64   ;;  %s5825_s23 = smov 4  }
  0x46   :  { %113 = dma.hbm_to_vmem [thread:$0]  %s5806_s9, 2048, %s108_s25, [#allocation12], %s5823_s5, %s5823_s5, %s5825_s23  }
  0x47   :  { %s4722_s22 = smov [#allocation14]   ;;  %s4723_s0 = smov [#allocation2]  }
  0x48   :  { %s135_s30 = sshll.u32 %s4722_s22, 4  ;;  %s39_s19 = sshll.u32 %s4723_s0, 4  ;;  %s136_s30 = int_to_ptr.vmem [resolvable:$true] %s135_s30  ;;  %s40_s19 = int_to_ptr.vmem [resolvable:$true] %s39_s19 }
  0x49   :  { %s4477_s1 = scalar_lea.hbm %s5810_s13, 1024 }
  0x4a   :  { %p4478_p10 = scmp.ne.s32.totalorder %s5810_s13, %s4477_s1  ;;  %p4481_p11 = scmp.lt.u32.totalorder %s4477_s1, %s5810_s13 }
  0x4c   :  { %p4483_p12 = pnand %p4481_p11, %p4478_p10 }
  0x4e   :  { %4486 = shalt.err (!%p4483_p12)
}
  0x4f   :  { %s4487_s9 = scalar_lea.vmem %s136_s30, 1024  ;;  %p4492_p0 = scmp.lt.s32.totalorder %s136_s30, %s136_s30 }
  0x50   :  { %p4488_p13 = scmp.ne.s32.totalorder %s136_s30, %s4487_s9  ;;  %p4493_p1 = scmp.lt.s32.totalorder %s4487_s9, %s4487_s9 }
  0x52   :  { %p4494_p2 = por %p4493_p1, %p4492_p0 }
  0x54   :  { %p4495_p3 = pnand %p4494_p2, %p4488_p13 }
  0x56   :  { %4498 = shalt.err (!%p4495_p3)
}
  0x57   :  { %141 = dma.hbm_to_vmem [thread:$0]  %s5810_s13, 1024, %s136_s30, [#allocation15], %s5823_s5, %s5823_s5, %s5825_s23  }
  0x58   :  { %s5837_s0 = sld [smem:[#allocation33_spill]] }
  0x5e   :  { %s4499_s20 = scalar_lea.hbm %s5837_s0, 4096 }
  0x5f   :  { %p4500_p4 = scmp.ne.s32.totalorder %s5837_s0, %s4499_s20  ;;  %p4503_p5 = scmp.lt.u32.totalorder %s4499_s20, %s5837_s0 }
  0x61   :  { %p4505_p6 = pnand %p4503_p5, %p4500_p4 }
  0x63   :  { %4508 = shalt.err (!%p4505_p6)
}
  0x64   :  { %s4509_s26 = scalar_lea.vmem %s40_s19, 4096  ;;  %p4514_p8 = scmp.lt.s32.totalorder %s40_s19, %s40_s19 }
  0x65   :  { %p4510_p7 = scmp.ne.s32.totalorder %s40_s19, %s4509_s26  ;;  %p4515_p9 = scmp.lt.s32.totalorder %s4509_s26, %s4509_s26 }
  0x67   :  { %p4516_p10 = por %p4515_p9, %p4514_p8 }
  0x69   :  { %p4517_p11 = pnand %p4516_p10, %p4510_p7 }
  0x6b   :  { %4520 = shalt.err (!%p4517_p11)
}
  0x6c   :  { %s4724_s13 = smov 256   ;;  %s4725_s30 = smov 16  }
  0x6d   :  { %45 = dma.hbm_to_vmem [thread:$0]  %s5837_s0, 4096, %s40_s19, [#allocation3], %s4724_s13, %s4724_s13, %s4725_s30  }
  0x6e   :  { %s4726_s25 = smov [#allocation7]   ;;  %s4727_s4 = smov [#allocation10]  }
  0x6f   :  { %s65_s28 = sshll.u32 %s4726_s25, 4  ;;  %s93_s22 = sshll.u32 %s4727_s4, 4  ;;  %s66_s28 = int_to_ptr.vmem [resolvable:$true] %s65_s28  ;;  %s94_s22 = int_to_ptr.vmem [resolvable:$true] %s93_s22 }
  0x70   :  { %s5838_s1 = sld [smem:[#allocation36_spill]] }
  0x76   :  { %s4521_s24 = scalar_lea.hbm %s5838_s1, 6144 }
  0x77   :  { %p4522_p12 = scmp.ne.s32.totalorder %s5838_s1, %s4521_s24  ;;  %p4525_p13 = scmp.lt.u32.totalorder %s4521_s24, %s5838_s1 }
  0x79   :  { %p4527_p0 = pnand %p4525_p13, %p4522_p12 }
  0x7b   :  { %4530 = shalt.err (!%p4527_p0)
}
  0x7c   :  { %s4531_s19 = scalar_lea.vmem %s66_s28, 6144  ;;  %p4536_p2 = scmp.lt.s32.totalorder %s66_s28, %s66_s28 }
  0x7d   :  { %p4532_p1 = scmp.ne.s32.totalorder %s66_s28, %s4531_s19  ;;  %p4537_p3 = scmp.lt.s32.totalorder %s4531_s19, %s4531_s19 }
  0x7f   :  { %p4538_p4 = por %p4537_p3, %p4536_p2 }
  0x81   :  { %p4539_p5 = pnand %p4538_p4, %p4532_p1 }
  0x83   :  { %4542 = shalt.err (!%p4539_p5)
}
  0x84   :  { %71 = dma.hbm_to_vmem [thread:$0]  %s5838_s1, 6144, %s66_s28, [#allocation6], %s4718_s2, %s4718_s2, %s4719_s29  }
  0x85   :  { %s4543_s23 = scalar_lea.hbm %s5804_s7, 4096 }
  0x86   :  { %p4544_p6 = scmp.ne.s32.totalorder %s5804_s7, %s4543_s23  ;;  %p4547_p7 = scmp.lt.u32.totalorder %s4543_s23, %s5804_s7 }
  0x88   :  { %p4549_p8 = pnand %p4547_p7, %p4544_p6 }
  0x8a   :  { %4552 = shalt.err (!%p4549_p8)
}
  0x8b   :  { %s4553_s24 = scalar_lea.vmem %s94_s22, 4096  ;;  %p4558_p10 = scmp.lt.s32.totalorder %s94_s22, %s94_s22 }
  0x8c   :  { %p4554_p9 = scmp.ne.s32.totalorder %s94_s22, %s4553_s24  ;;  %p4559_p11 = scmp.lt.s32.totalorder %s4553_s24, %s4553_s24 }
  0x8e   :  { %p4560_p12 = por %p4559_p11, %p4558_p10 }
  0x90   :  { %p4561_p13 = pnand %p4560_p12, %p4554_p9 }
  0x92   :  { %4564 = shalt.err (!%p4561_p13)
}
  0x93   :  { %99 = dma.hbm_to_vmem [thread:$0]  %s5804_s7, 4096, %s94_s22, [#allocation9], %s4718_s2, %s4718_s2, %s4719_s29  }
  0x94   :  { %s4728_s3 = smov [#allocation13]   ;;  %s4729_s19 = smov [#allocation16]  }
  0x95   :  { %s121_s26 = sshll.u32 %s4728_s3, 4  ;;  %s149_s0 = sshll.u32 %s4729_s19, 4  ;;  %s122_s26 = int_to_ptr.vmem [resolvable:$true] %s121_s26  ;;  %s150_s0 = int_to_ptr.vmem [resolvable:$true] %s149_s0 }
  0x96   :  { %s4565_s5 = scalar_lea.hbm %s5808_s11, 1024 }
  0x97   :  { %p4566_p0 = scmp.ne.s32.totalorder %s5808_s11, %s4565_s5  ;;  %p4569_p1 = scmp.lt.u32.totalorder %s4565_s5, %s5808_s11 }
  0x99   :  { %p4571_p2 = pnand %p4569_p1, %p4566_p0 }
  0x9b   :  { %4574 = shalt.err (!%p4571_p2)
}
  0x9c   :  { %s4575_s7 = scalar_lea.vmem %s122_s26, 1024  ;;  %p4580_p4 = scmp.lt.s32.totalorder %s122_s26, %s122_s26 }
  0x9d   :  { %p4576_p3 = scmp.ne.s32.totalorder %s122_s26, %s4575_s7  ;;  %p4581_p5 = scmp.lt.s32.totalorder %s4575_s7, %s4575_s7 }
  0x9f   :  { %p4582_p6 = por %p4581_p5, %p4580_p4 }
  0xa1   :  { %p4583_p7 = pnand %p4582_p6, %p4576_p3 }
  0xa3   :  { %4586 = shalt.err (!%p4583_p7)
}
  0xa4   :  { %s5839_s22 = smov 4   ;;  %s5840_s21 = smov 64  }
  0xa5   :  { %127 = dma.hbm_to_vmem [thread:$0]  %s5808_s11, 1024, %s122_s26, [#allocation12], %s5840_s21, %s5840_s21, %s5839_s22  }
  0xa6   :  { %s4587_s19 = scalar_lea.hbm %s5812_s15, 2048 }
  0xa7   :  { %p4588_p8 = scmp.ne.s32.totalorder %s5812_s15, %s4587_s19  ;;  %p4591_p9 = scmp.lt.u32.totalorder %s4587_s19, %s5812_s15 }
  0xa9   :  { %p4593_p10 = pnand %p4591_p9, %p4588_p8 }
  0xab   :  { %4596 = shalt.err (!%p4593_p10)
}
  0xac   :  { %s4597_s25 = scalar_lea.vmem %s150_s0, 2048  ;;  %p4602_p12 = scmp.lt.s32.totalorder %s150_s0, %s150_s0 }
  0xad   :  { %p4598_p11 = scmp.ne.s32.totalorder %s150_s0, %s4597_s25  ;;  %p4603_p13 = scmp.lt.s32.totalorder %s4597_s25, %s4597_s25 }
  0xaf   :  { %p4604_p0 = por %p4603_p13, %p4602_p12 }
  0xb1   :  { %p4605_p1 = pnand %p4604_p0, %p4598_p11 }
  0xb3   :  { %4608 = shalt.err (!%p4605_p1)
}
  0xb4   :  { %155 = dma.hbm_to_vmem [thread:$0]  %s5812_s15, 2048, %s150_s0, [#allocation15], %s5840_s21, %s5840_s21, %s5839_s22  }
  0xb5   :  { %4697 = dma.done.wait [#allocation3], 4096  }
  0xb6   :  { %4698 = vsyncadd [#allocation3], 4294963200 }
  0xb7   :  { %4699 = dma.done.wait [#allocation6], 12288  }
  0xb8   :  { %4700 = vsyncadd [#allocation6], 4294955008 }
  0xb9   :  { %4701 = dma.done.wait [#allocation9], 8192  }
  0xba   :  { %4702 = vsyncadd [#allocation9], 4294959104 }
  0xbb   :  { %4703 = dma.done.wait [#allocation12], 3072  }
  0xbc   :  { %4704 = vsyncadd [#allocation12], 4294964224 }
  0xbd   :  { %4705 = dma.done.wait [#allocation15], 3072  }
  0xbe   :  { %4706 = vsyncadd [#allocation15], 4294964224  ;;  %v3969_v0 = vld [vmem:[#allocation5 + $0x4] ss:$12 sps:$4 sm:$0xff]   ;;  %v3971_v1 = vld [vmem:[#allocation5] ss:$12 sps:$4 sm:$0xff]  }
  0xbf   :  { %571 = vmatprep.subr.bf16.mxu0 %v3969_v0  ;;  %v3972_v2 = vld [vmem:[#allocation5 + $0x1c] ss:$12 sps:$4 sm:$0xff]   ;;  %v3974_v3 = vld [vmem:[#allocation5 + $0x18] ss:$12 sps:$4 sm:$0xff]   ;;  %v3975_v4 = vld [vmem:[#allocation5 + $0x34] ss:$12 sps:$4 sm:$0xff]  }
  0xc0   :  { %572 = vmatpush1.bf16.msra.mxu0 %v3971_v1  ;;  %v3977_v5 = vld [vmem:[#allocation5 + $0x30] ss:$12 sps:$4 sm:$0xff]   ;;  %v3978_v6 = vld [vmem:[#allocation5 + $0x4c] ss:$12 sps:$4 sm:$0xff]   ;;  %v3980_v7 = vld [vmem:[#allocation5 + $0x48] ss:$12 sps:$4 sm:$0xff]  }
  0xc1   :  { %573 = vmatprep.subr.bf16.mxu0 %v3972_v2  ;;  %v3981_v8 = vld [vmem:[#allocation5 + $0x64] ss:$12 sps:$4 sm:$0xff]   ;;  %v3983_v9 = vld [vmem:[#allocation5 + $0x60] ss:$12 sps:$4 sm:$0xff]   ;;  %v3984_v10 = vld [vmem:[#allocation5 + $0x7c] ss:$12 sps:$4 sm:$0xff]  }
  0xc2   :  { %v3986_v11 = vld [vmem:[#allocation5 + $0x78] ss:$12 sps:$4 sm:$0xff]   ;;  %v3987_v12 = vld [vmem:[#allocation5 + $0x94] ss:$12 sps:$4 sm:$0xff]   ;;  %v187_v13 = vld [vmem:[#allocation2 + $0x8] sm:$0xff]  ;;  %s5842_s4 = sld [smem:[#allocation35_spill]] }
  0xc3   :  { %v189_v14 = vld [vmem:[#allocation2 + $0x18] sm:$0xff]  ;;  %v3992_v18 = vld [vmem:[#allocation5 + $0xa8] ss:$12 sps:$4 sm:$0xff]   ;;  %v3993_v20 = vld [vmem:[#allocation5 + $0xc4] ss:$12 sps:$4 sm:$0xff]   ;;  %s5844_s22 = sld [smem:[#allocation37_spill]] }
  0xc4   :  { %574 = vmatpush1.bf16.msra.mxu0 %v3974_v3  ;;  %v219_v15 = vpack.c.bf16 %v189_v14, %v187_v13  ;;  %v3989_v16 = vld [vmem:[#allocation5 + $0x90] ss:$12 sps:$4 sm:$0xff]   ;;  %v3990_v17 = vld [vmem:[#allocation5 + $0xac] ss:$12 sps:$4 sm:$0xff]   ;;  %v4017_v19 = vld [vmem:[#allocation5 + $0xc8] ss:$12 sps:$4 sm:$0xff]  }
  0xc5   :  { %575 = vmatprep.subr.bf16.mxu0 %v3975_v4  ;;  %v4018_v21 = vld [vmem:[#allocation5 + $0x8] ss:$12 sps:$4 sm:$0xff]   ;;  %v3995_v22 = vld [vmem:[#allocation5 + $0xc0] ss:$12 sps:$4 sm:$0xff]   ;;  %3579 = vmatprep.subr.bf16.mxu1 %v4017_v19  ;;  %v4021_v26 = vld [vmem:[#allocation5 + $0xf8] ss:$12 sps:$4 sm:$0xff]  }
  0xc6   :  { %603 = vmatprep.mubr.bf16.mxu0 %v219_v15  ;;  %716 = vmatprep.mubr.bf16.mxu1 %v219_v15  ;;  %v3996_v23 = vld [vmem:[#allocation5 + $0xdc] ss:$12 sps:$4 sm:$0xff]   ;;  %v4019_v24 = vld [vmem:[#allocation5 + $0xe0] ss:$12 sps:$4 sm:$0xff]   ;;  %v3998_v27 = vld [vmem:[#allocation5 + $0xd8] ss:$12 sps:$4 sm:$0xff]  }
  0xc7   :  { %3580 = vmatpush3.bf16.msra.mxu1 %v4018_v21  ;;  %v4020_v25 = vld [vmem:[#allocation5 + $0x20] ss:$12 sps:$4 sm:$0xff]   ;;  %v4022_v28 = vld [vmem:[#allocation5 + $0x38] ss:$12 sps:$4 sm:$0xff]   ;;  %v4023_v30 = vld [vmem:[#allocation5 + $0x110] ss:$12 sps:$4 sm:$0xff]  }
  0xc8   :  { %576 = vmatpush1.bf16.msra.mxu0 %v3977_v5  ;;  %3581 = vmatprep.subr.bf16.mxu1 %v4019_v24  ;;  %v3999_v29 = vld [vmem:[#allocation5 + $0xf4] ss:$12 sps:$4 sm:$0xff]   ;;  %v4024_v31 = vld [vmem:[#allocation5 + $0x50] ss:$12 sps:$4 sm:$0xff]   ;;  %v4002_v34 = vld [vmem:[#allocation5 + $0x10c] ss:$12 sps:$4 sm:$0xff]  }
  0xc9   :  { %577 = vmatprep.subr.bf16.mxu0 %v3978_v6  ;;  %v4001_v32 = vld [vmem:[#allocation5 + $0xf0] ss:$12 sps:$4 sm:$0xff]   ;;  %v4025_v33 = vld [vmem:[#allocation5 + $0x128] ss:$12 sps:$4 sm:$0xff]   ;;  %v4027_v37 = vld [vmem:[#allocation5 + $0x140] ss:$12 sps:$4 sm:$0xff]  }
  0xca   :  { %v4004_v35 = vld [vmem:[#allocation5 + $0x108] ss:$12 sps:$4 sm:$0xff]   ;;  %v4005_v38 = vld [vmem:[#allocation5 + $0x124] ss:$12 sps:$4 sm:$0xff]   ;;  %v4007_v39 = vld [vmem:[#allocation5 + $0x120] ss:$12 sps:$4 sm:$0xff]  }
  0xcb   :  { %3582 = vmatpush3.bf16.msra.mxu1 %v4020_v25  ;;  %v4026_v36 = vld [vmem:[#allocation5 + $0x68] ss:$12 sps:$4 sm:$0xff]   ;;  %v4028_v40 = vld [vmem:[#allocation5 + $0x80] ss:$12 sps:$4 sm:$0xff]   ;;  %v4029_v41 = vld [vmem:[#allocation5 + $0x158] ss:$12 sps:$4 sm:$0xff]  }
  0xcc   :  { %578 = vmatpush1.bf16.msra.mxu0 %v3980_v7  ;;  %3583 = vmatprep.subr.bf16.mxu1 %v4021_v26  ;;  %v4008_v42 = vld [vmem:[#allocation5 + $0x13c] ss:$12 sps:$4 sm:$0xff]   ;;  %v4030_v43 = vld [vmem:[#allocation5 + $0x98] ss:$12 sps:$4 sm:$0xff]   ;;  %v4011_v46 = vld [vmem:[#allocation5 + $0x154] ss:$12 sps:$4 sm:$0xff]  }
  0xcd   :  { %579 = vmatprep.subr.bf16.mxu0 %v3981_v8  ;;  %v4010_v44 = vld [vmem:[#allocation5 + $0x138] ss:$12 sps:$4 sm:$0xff]   ;;  %v4031_v45 = vld [vmem:[#allocation5 + $0x170] ss:$12 sps:$4 sm:$0xff]   ;;  %v191_v53 = vld [vmem:[#allocation2 + $0x28] sm:$0xff]  ;;  %s4732_s9 = smov [#allocation17]  }
  0xce   :  { %v4013_v47 = vld [vmem:[#allocation5 + $0x150] ss:$12 sps:$4 sm:$0xff]   ;;  %v4014_v48 = vld [vmem:[#allocation5 + $0x16c] ss:$12 sps:$4 sm:$0xff]   ;;  %v186_v49 = vld [vmem:[#allocation2] sm:$0xff]  ;;  %s3304_s5 = sshll.u32 %s4732_s9, 4  ;;  %s5723_s5 = int_to_ptr.vmem [resolvable:$true] %s3304_s5 }
  0xcf   :  { %3584 = vmatpush3.bf16.msra.mxu1 %v4022_v28  ;;  %v4032_v50 = vld [vmem:[#allocation5 + $0xb0] ss:$12 sps:$4 sm:$0xff]   ;;  %v4035_v52 = vld [vmem:[#allocation7 + $0x4] ss:$8 sps:$4 sm:$0xff]   ;;  %v4033_v55 = vld [vmem:[#allocation7] ss:$8 sps:$4 sm:$0xff]  }
  0xd0   :  { %580 = vmatpush1.bf16.msra.mxu0 %v3983_v9  ;;  %3585 = vmatprep.subr.bf16.mxu1 %v4023_v30  ;;  %v188_v51 = vld [vmem:[#allocation2 + $0x10] sm:$0xff]  ;;  %v193_v54 = vld [vmem:[#allocation2 + $0x38] sm:$0xff]  ;;  %v190_v60 = vld [vmem:[#allocation2 + $0x20] sm:$0xff] }
  0xd1   :  { %581 = vmatprep.subr.bf16.mxu0 %v3984_v10  ;;  %v4016_v56 = vld [vmem:[#allocation5 + $0x168] ss:$12 sps:$4 sm:$0xff]   ;;  %v218_v57 = vpack.c.bf16 %v188_v51, %v186_v49  ;;  %v221_v59 = vpack.c.bf16 %v193_v54, %v191_v53  ;;  %v4036_v61 = vld [vmem:[#allocation7 + $0x10] ss:$8 sps:$4 sm:$0xff]   ;;  %v4041_v63 = vld [vmem:[#allocation7 + $0x24] ss:$8 sps:$4 sm:$0xff]  }
  0xd2   :  { %v4038_v58 = vld [vmem:[#allocation7 + $0x14] ss:$8 sps:$4 sm:$0xff]   ;;  %v195_v0 = vld [vmem:[#allocation2 + $0x48] sm:$0xff]  ;;  %v4042_v6 = vld [vmem:[#allocation7 + $0x30] ss:$8 sps:$4 sm:$0xff]  }
  0xd3   :  { %3586 = vmatpush3.bf16.msra.mxu1 %v4024_v31  ;;  %v192_v62 = vld [vmem:[#allocation2 + $0x30] sm:$0xff]  ;;  %v197_v1 = vld [vmem:[#allocation2 + $0x58] sm:$0xff]  ;;  %v4039_v2 = vld [vmem:[#allocation7 + $0x20] ss:$8 sps:$4 sm:$0xff]  }
  0xd4   :  { %582 = vmatpush1.bf16.msra.mxu0 %v3986_v11  ;;  %3587 = vmatprep.subr.bf16.mxu1 %v4025_v33  ;;  %v4044_v3 = vld [vmem:[#allocation7 + $0x34] ss:$8 sps:$4 sm:$0xff]   ;;  %v220_v4 = vpack.c.bf16 %v192_v62, %v190_v60  ;;  %v223_v5 = vpack.c.bf16 %v197_v1, %v195_v0  ;;  %v4047_v7 = vld [vmem:[#allocation7 + $0x44] ss:$8 sps:$4 sm:$0xff]   ;;  %v4054_v26 = vld [vmem:[#allocation7 + $0x70] ss:$8 sps:$4 sm:$0xff]   ;;  %v300_v1 = vlaneseq }
  0xd5   :  { %583 = vmatprep.subr.bf16.mxu0 %v3987_v12  ;;  %v194_v8 = vld [vmem:[#allocation2 + $0x40] sm:$0xff]  ;;  %v196_v9 = vld [vmem:[#allocation2 + $0x50] sm:$0xff]  ;;  %v199_v10 = vld [vmem:[#allocation2 + $0x68] sm:$0xff] }
  0xd6   :  { %v201_v11 = vld [vmem:[#allocation2 + $0x78] sm:$0xff]  ;;  %v4045_v12 = vld [vmem:[#allocation7 + $0x40] ss:$8 sps:$4 sm:$0xff]   ;;  %v222_v14 = vpack.c.bf16 %v196_v9, %v194_v8  ;;  %v200_v19 = vld [vmem:[#allocation2 + $0x70] sm:$0xff] }
  0xd7   :  { %3588 = vmatpush3.bf16.msra.mxu1 %v4026_v36  ;;  %v4050_v13 = vld [vmem:[#allocation7 + $0x54] ss:$8 sps:$4 sm:$0xff]   ;;  %v225_v15 = vpack.c.bf16 %v201_v11, %v199_v10  ;;  %v202_v28 = vld [vmem:[#allocation2 + $0x80] sm:$0xff]  ;;  %v207_v30 = vld [vmem:[#allocation2 + $0xa8] sm:$0xff] }
  0xd8   :  { %584 = vmatpush1.bf16.msra.mxu0 %v3989_v16  ;;  %3589 = vmatprep.subr.bf16.mxu1 %v4027_v37  ;;  %v4048_v16 = vld [vmem:[#allocation7 + $0x50] ss:$8 sps:$4 sm:$0xff]   ;;  %v4062_v33 = vld [vmem:[#allocation7 + $0x94] ss:$8 sps:$4 sm:$0xff]   ;;  %v4065_v37 = vld [vmem:[#allocation7 + $0xa4] ss:$8 sps:$4 sm:$0xff]  }
  0xd9   :  { %585 = vmatprep.subr.bf16.mxu0 %v3990_v17  ;;  %v4053_v17 = vld [vmem:[#allocation7 + $0x64] ss:$8 sps:$4 sm:$0xff]   ;;  %v205_v21 = vld [vmem:[#allocation2 + $0x98] sm:$0xff]  ;;  %v212_v49 = vld [vmem:[#allocation2 + $0xd0] sm:$0xff] }
  0xda   :  { %v209_v31 = vld [vmem:[#allocation2 + $0xb8] sm:$0xff]  ;;  %v4077_v60 = vld [vmem:[#allocation7 + $0xe4] ss:$8 sps:$4 sm:$0xff]  }
  0xdb   :  { %3590 = vmatpush3.bf16.msra.mxu1 %v4028_v40  ;;  %v4060_v36 = vld [vmem:[#allocation7 + $0x90] ss:$8 sps:$4 sm:$0xff]   ;;  %v211_v40 = vld [vmem:[#allocation2 + $0xc8] sm:$0xff]  ;;  %v4074_v53 = vld [vmem:[#allocation7 + $0xd4] ss:$8 sps:$4 sm:$0xff]  }
  0xdc   :  { %586 = vmatpush1.bf16.msra.mxu0 %v3992_v18  ;;  %3591 = vmatprep.subr.bf16.mxu1 %v4029_v41  ;;  %v198_v18 = vld [vmem:[#allocation2 + $0x60] sm:$0xff]  ;;  %v213_v41 = vld [vmem:[#allocation2 + $0xd8] sm:$0xff] }
  0xdd   :  { %587 = vmatprep.subr.bf16.mxu0 %v3993_v20  ;;  %v203_v20 = vld [vmem:[#allocation2 + $0x88] sm:$0xff]  ;;  %v224_v24 = vpack.c.bf16 %v200_v19, %v198_v18  ;;  %v217_v51 = vld [vmem:[#allocation2 + $0xf8] sm:$0xff] }
  0xde   :  { %v227_v25 = vpack.c.bf16 %v205_v21, %v203_v20  ;;  %v4080_v62 = vld [vmem:[#allocation7 + $0xf4] ss:$8 sps:$4 sm:$0xff]   ;;  %v4083_v0 = vld [vmem:[#allocation7 + $0x104] ss:$8 sps:$4 sm:$0xff]  }
  0xdf   :  { %3592 = vmatpush3.bf16.msra.mxu1 %v4030_v43  ;;  %v4068_v43 = vld [vmem:[#allocation7 + $0xb4] ss:$8 sps:$4 sm:$0xff]  }
  0xe0   :  { %588 = vmatpush1.bf16.msra.mxu0 %v3995_v22  ;;  %3593 = vmatprep.subr.bf16.mxu1 %v4031_v45  ;;  %v4051_v22 = vld [vmem:[#allocation7 + $0x60] ss:$8 sps:$4 sm:$0xff]   ;;  %v231_v45 = vpack.c.bf16 %v213_v41, %v211_v40 }
  0xe1   :  { %589 = vmatprep.subr.bf16.mxu0 %v3996_v23  ;;  %v4056_v23 = vld [vmem:[#allocation7 + $0x74] ss:$8 sps:$4 sm:$0xff]  }
  0xe3   :  { %3594 = vmatpush3.bf16.msra.mxu1 %v4032_v50  ;;  %v215_v50 = vld [vmem:[#allocation2 + $0xe8] sm:$0xff] }
  0xe4   :  { %590 = vmatpush1.bf16.msra.mxu0 %v3998_v27  ;;  %1153 = vmatprep.subr.bf16.mxu1 %v4035_v52  ;;  %v4059_v27 = vld [vmem:[#allocation7 + $0x84] ss:$8 sps:$4 sm:$0xff]   ;;  %v4069_v52 = vld [vmem:[#allocation7 + $0xc0] ss:$8 sps:$4 sm:$0xff]  }
  0xe5   :  { %591 = vmatprep.subr.bf16.mxu0 %v3999_v29  ;;  %v204_v29 = vld [vmem:[#allocation2 + $0x90] sm:$0xff] }
  0xe6   :  { %717 = vmatmul.mubr.bf16.vlgmr.msra.gmra.mrb[0].mxu1 %v218_v57 }
  0xe7   :  { %724 = vmatprep.mubr.bf16.mxu1 %v221_v59  ;;  %1154 = vmatpush1.bf16.msra.mxu1 %v4033_v55  ;;  %v233_v55 = vpack.c.bf16 %v217_v51, %v215_v50  ;;  %v4086_v51 = vld [vmem:[#allocation7 + $0x114] ss:$8 sps:$4 sm:$0xff]  }
  0xe8   :  { %592 = vmatpush1.bf16.msra.mxu0 %v4001_v32  ;;  %1155 = vmatprep.subr.bf16.mxu1 %v4038_v58  ;;  %v4057_v32 = vld [vmem:[#allocation7 + $0x80] ss:$8 sps:$4 sm:$0xff]   ;;  %v216_v58 = vld [vmem:[#allocation2 + $0xf0] sm:$0xff] }
  0xe9   :  { %593 = vmatprep.subr.bf16.mxu0 %v4002_v34  ;;  %v226_v34 = vpack.c.bf16 %v204_v29, %v202_v28  ;;  %v4105_v28 = vld [vmem:[#allocation8] ss:$8 sps:$4 sm:$0xff]  }
  0xeb   :  { %1156 = vmatpush1.bf16.msra.mxu1 %v4036_v61  ;;  %v4075_v61 = vld [vmem:[#allocation7 + $0xe0] ss:$8 sps:$4 sm:$0xff]  }
  0xec   :  { %594 = vmatpush1.bf16.msra.mxu0 %v4004_v35  ;;  %1157 = vmatprep.subr.bf16.mxu1 %v4041_v63  ;;  %v229_v35 = vpack.c.bf16 %v209_v31, %v207_v30  ;;  %v4078_v63 = vld [vmem:[#allocation7 + $0xf0] ss:$8 sps:$4 sm:$0xff]   ;;  %v4107_v31 = vld [vmem:[#allocation8 + $0x4] ss:$8 sps:$4 sm:$0xff]  }
  0xed   :  { %595 = vmatprep.subr.bf16.mxu0 %v4005_v38  ;;  %v206_v38 = vld [vmem:[#allocation2 + $0xa0] sm:$0xff] }
  0xee   :  { %725 = vmatmul.mubr.bf16.gmra.mrb[4].mxu1 %v220_v4 }
  0xef   :  { %732 = vmatprep.mubr.bf16.mxu1 %v223_v5  ;;  %1158 = vmatpush1.bf16.msra.mxu1 %v4039_v2  ;;  %v301_v2 = vshrl.u32 %v300_v1, 7 }
  0xf0   :  { %596 = vmatpush1.bf16.msra.mxu0 %v4007_v39  ;;  %1159 = vmatprep.subr.bf16.mxu1 %v4044_v3  ;;  %v208_v39 = vld [vmem:[#allocation2 + $0xb0] sm:$0xff] }
  0xf1   :  { %597 = vmatprep.subr.bf16.mxu0 %v4008_v42  ;;  %v4063_v42 = vld [vmem:[#allocation7 + $0xa0] ss:$8 sps:$4 sm:$0xff]   ;;  %v310_v3 = vsub.s32 2, %v301_v2 }
  0xf3   :  { %1160 = vmatpush1.bf16.msra.mxu1 %v4042_v6  ;;  %v4977_v6 = vsub.s32 1, %v301_v2 }
  0xf4   :  { %598 = vmatpush1.bf16.msra.mxu0 %v4010_v44  ;;  %1161 = vmatprep.subr.bf16.mxu1 %v4047_v7  ;;  %v228_v44 = vpack.c.bf16 %v208_v39, %v206_v38 }
  0xf5   :  { %599 = vmatprep.subr.bf16.mxu0 %v4011_v46  ;;  %v4066_v46 = vld [vmem:[#allocation7 + $0xb0] ss:$8 sps:$4 sm:$0xff]   ;;  %5843 = vst [vmem:[#allocation32_spill] sm:$0xff] %v4977_v6 }
  0xf6   :  { %733 = vmatmul.mubr.bf16.gmra.mrb[8].mxu1 %v222_v14 }
  0xf7   :  { %740 = vmatprep.mubr.bf16.mxu1 %v225_v15  ;;  %1162 = vmatpush1.bf16.msra.mxu1 %v4045_v12 }
  0xf8   :  { %600 = vmatpush1.bf16.msra.mxu0 %v4013_v47  ;;  %1163 = vmatprep.subr.bf16.mxu1 %v4050_v13  ;;  %v4071_v47 = vld [vmem:[#allocation7 + $0xc4] ss:$8 sps:$4 sm:$0xff]  }
  0xf9   :  { %601 = vmatprep.subr.bf16.mxu0 %v4014_v48  ;;  %v210_v48 = vld [vmem:[#allocation2 + $0xc0] sm:$0xff] }
  0xfa   :  { %v230_v54 = vpack.c.bf16 %v212_v49, %v210_v48  ;;  %v4113_v48 = vld [vmem:[#allocation8 + $0x24] ss:$8 sps:$4 sm:$0xff]  }
  0xfb   :  { %1164 = vmatpush1.bf16.msra.mxu1 %v4048_v16 }
  0xfc   :  { %602 = vmatpush1.bf16.msra.mxu0 %v4016_v56  ;;  %1165 = vmatprep.subr.bf16.mxu1 %v4053_v17  ;;  %v4072_v56 = vld [vmem:[#allocation7 + $0xd0] ss:$8 sps:$4 sm:$0xff]  }
  0xfd   :  { %1631 = vmatprep.subr.bf16.mxu0 %v4107_v31 }
  0xfe   :  { %741 = vmatmul.mubr.bf16.gmra.mrb[12].mxu1 %v224_v24 }
  0xff   :  { %604 = vmatmul.mubr.bf16.vlgmr.msra.gmra.mrb[0].mxu0 %v218_v57  ;;  %748 = vmatprep.mubr.bf16.mxu1 %v227_v25  ;;  %v214_v57 = vld [vmem:[#allocation2 + $0xe0] sm:$0xff] }
 0x100   :  { %613 = vmatprep.mubr.bf16.mxu0 %v221_v59  ;;  %1166 = vmatpush1.bf16.msra.mxu1 %v4051_v22  ;;  %v232_v59 = vpack.c.bf16 %v216_v58, %v214_v57 }
 0x101   :  { %1167 = vmatprep.subr.bf16.mxu1 %v4056_v23  ;;  %1632 = vmatpush1.bf16.msra.mxu0 %v4105_v28 }
 0x104   :  { %1168 = vmatpush1.bf16.msra.mxu1 %v4054_v26 }
 0x105   :  { %1169 = vmatprep.subr.bf16.mxu1 %v4059_v27 }
 0x106   :  { %749 = vmatmul.mubr.bf16.gmra.mrb[16].mxu1 %v226_v34 }
 0x107   :  { %614 = vmatmul.mubr.bf16.gmra.mrb[4].mxu0 %v220_v4  ;;  %756 = vmatprep.mubr.bf16.mxu1 %v229_v35  ;;  %v4972_v4 = vsub.s32 0, %v301_v2 }
 0x108   :  { %623 = vmatprep.mubr.bf16.mxu0 %v223_v5  ;;  %1170 = vmatpush1.bf16.msra.mxu1 %v4057_v32  ;;  %v298_v5 = vld [vmem:[%s5842_s4] sm:$0x7] }
 0x109   :  { %1171 = vmatprep.subr.bf16.mxu1 %v4062_v33  ;;  %5841 = vst [vmem:[#allocation31_spill] sm:$0xff] %v4972_v4  ;;  %v4979_v8 = vrot.slane %v298_v5, %v310_v3  ;;  %v4982_v10 = vrot.slane %v298_v5, %v4972_v4  ;;  %v4985_v13 = vrot.slane %v298_v5, %v4977_v6  ;;  %v4089_v3 = vld [vmem:[#allocation7 + $0x124] ss:$8 sps:$4 sm:$0xff]  }
 0x10c   :  { %1172 = vmatpush1.bf16.msra.mxu1 %v4060_v36 }
 0x10d   :  { %1173 = vmatprep.subr.bf16.mxu1 %v4065_v37  ;;  %v4110_v37 = vld [vmem:[#allocation8 + $0x14] ss:$8 sps:$4 sm:$0xff]  }
 0x10e   :  { %757 = vmatmul.mubr.bf16.gmra.mrb[20].mxu1 %v228_v44  ;;  %1633 = vmatprep.subr.bf16.mxu0 %v4110_v37  ;;  %v4090_v37 = vld [vmem:[#allocation7 + $0x130] ss:$8 sps:$4 sm:$0xff]  }
 0x10f   :  { %624 = vmatmul.mubr.bf16.gmra.mrb[8].mxu0 %v222_v14  ;;  %764 = vmatprep.mubr.bf16.mxu1 %v231_v45 }
 0x110   :  { %633 = vmatprep.mubr.bf16.mxu0 %v225_v15  ;;  %1174 = vmatpush1.bf16.msra.mxu1 %v4063_v42 }
 0x111   :  { %1175 = vmatprep.subr.bf16.mxu1 %v4068_v43 }
 0x114   :  { %1176 = vmatpush1.bf16.msra.mxu1 %v4066_v46 }
 0x115   :  { %1177 = vmatprep.subr.bf16.mxu1 %v4071_v47  ;;  %v4081_v47 = vld [vmem:[#allocation7 + $0x100] ss:$8 sps:$4 sm:$0xff]  }
 0x116   :  { %765 = vmatmul.mubr.bf16.gmra.mrb[24].mxu1 %v230_v54 }
 0x117   :  { %634 = vmatmul.mubr.bf16.gmra.mrb[12].mxu0 %v224_v24  ;;  %772 = vmatprep.mubr.bf16.mxu1 %v233_v55 }
 0x118   :  { %643 = vmatprep.mubr.bf16.mxu0 %v227_v25  ;;  %1178 = vmatpush1.bf16.msra.mxu1 %v4069_v52 }
 0x119   :  { %1179 = vmatprep.subr.bf16.mxu1 %v4074_v53 }
 0x11c   :  { %1180 = vmatpush1.bf16.msra.mxu1 %v4072_v56 }
 0x11d   :  { %1181 = vmatprep.subr.bf16.mxu1 %v4077_v60  ;;  %v4111_v60 = vld [vmem:[#allocation8 + $0x20] ss:$8 sps:$4 sm:$0xff]  }
 0x11e   :  { %773 = vmatmul.mubr.bf16.gmra.mrb[28].mxu1 %v232_v59 }
 0x11f   :  { %644 = vmatmul.mubr.bf16.gmra.mrb[16].mxu0 %v226_v34 }
 0x120   :  { %653 = vmatprep.mubr.bf16.mxu0 %v229_v35  ;;  %1182 = vmatpush1.bf16.msra.mxu1 %v4075_v61 }
 0x121   :  { %1183 = vmatprep.subr.bf16.mxu1 %v4080_v62  ;;  %v4084_v62 = vld [vmem:[#allocation7 + $0x110] ss:$8 sps:$4 sm:$0xff]  }
 0x124   :  { %1184 = vmatpush1.bf16.msra.mxu1 %v4078_v63 }
 0x125   :  { %1266 = vmatprep.subr.bf16.mxu1 %v4083_v0  ;;  %v4116_v0 = vld [vmem:[#allocation8 + $0x34] ss:$8 sps:$4 sm:$0xff]  }
 0x127   :  { %654 = vmatmul.mubr.bf16.gmra.mrb[20].mxu0 %v228_v44  ;;  %v4108_v44 = vld [vmem:[#allocation8 + $0x10] ss:$8 sps:$4 sm:$0xff]  }
 0x128   :  { %663 = vmatprep.mubr.bf16.mxu0 %v231_v45  ;;  %1634 = vmatpush1.bf16.msra.mxu0 %v4108_v44 }
 0x129   :  { %1635 = vmatprep.subr.bf16.mxu0 %v4113_v48 }
 0x12c   :  { %1636 = vmatpush1.bf16.msra.mxu0 %v4111_v60 }
 0x12d   :  { %1637 = vmatprep.subr.bf16.mxu0 %v4116_v0 }
 0x12f   :  { %664 = vmatmul.mubr.bf16.gmra.mrb[24].mxu0 %v230_v54 }
 0x130   :  { %673 = vmatprep.mubr.bf16.mxu0 %v233_v55 }
 0x137   :  { %674 = vmatmul.mubr.bf16.gmra.mrb[28].mxu0 %v232_v59 }
 0x1b9   :  { %v3595_v7 = vpop.f32.mrb[0].mxu1 }
 0x1ba   :  { %v3596_v9 = vpop.f32.mrb[1].mxu1 }
 0x1bb   :  { %v3597_v11 = vadd.f32 %v3596_v9, %v3595_v7  ;;  %v3598_v12 = vpop.f32.mrb[2].mxu1 }
 0x1bc   :  { %v3599_v14 = vpop.f32.mrb[3].mxu1 }
 0x1bd   :  { %v719_v15 = vadd.f32 %v3597_v11, %v4979_v8  ;;  %v3600_v16 = vadd.f32 %v3599_v14, %v3598_v12 }
 0x1bf   :  { %v783_v20 = vmax.f32 %v719_v15, 0.0  ;;  %v722_v21 = vadd.f32 %v3600_v16, %v4979_v8 }
 0x1c1   :  { %v786_v26 = vmax.f32 %v722_v21, 0.0  ;;  %v3601_v27 = vpop.f32.mrb[4].mxu1  ;;  %v4087_v21 = vld [vmem:[#allocation7 + $0x120] ss:$8 sps:$4 sm:$0xff]  }
 0x1c2   :  { %v3602_v30 = vpop.f32.mrb[5].mxu1 }
 0x1c3   :  { %v4993_v34 = vpack.c.bf16 %v786_v26, %v783_v20  ;;  %v3603_v35 = vadd.f32 %v3602_v30, %v3601_v27  ;;  %v3604_v36 = vpop.f32.mrb[6].mxu1 }
 0x1c4   :  { %v3605_v40 = vpop.f32.mrb[7].mxu1 }
 0x1c5   :  { %v727_v42 = vadd.f32 %v3603_v35, %v4979_v8  ;;  %v3606_v43 = vadd.f32 %v3605_v40, %v3604_v36  ;;  %v4117_v35 = vld [vmem:[#allocation8 + $0x40] ss:$8 sps:$4 sm:$0xff]  }
 0x1c7   :  { %v789_v52 = vmax.f32 %v727_v42, 0.0  ;;  %v730_v53 = vadd.f32 %v3606_v43, %v4979_v8  ;;  %v4095_v42 = vld [vmem:[#allocation7 + $0x144] ss:$8 sps:$4 sm:$0xff]  }
 0x1c9   :  { %v792_v58 = vmax.f32 %v730_v53, 0.0  ;;  %v3607_v59 = vpop.f32.mrb[8].mxu1 }
 0x1ca   :  { %v3608_v63 = vpop.f32.mrb[9].mxu1 }
 0x1cb   :  { %v3609_v5 = vadd.f32 %v3608_v63, %v3607_v59  ;;  %v3610_v7 = vpop.f32.mrb[10].mxu1  ;;  %v5001_v9 = vpack.c.bf16 %v792_v58, %v789_v52  ;;  %v4120_v52 = vld [vmem:[#allocation8 + $0x50] ss:$8 sps:$4 sm:$0xff]   ;;  %v4098_v59 = vld [vmem:[#allocation7 + $0x154] ss:$8 sps:$4 sm:$0xff]  }
 0x1cc   :  { %v3611_v14 = vpop.f32.mrb[11].mxu1 }
 0x1cd   :  { %v735_v16 = vadd.f32 %v3609_v5, %v4979_v8  ;;  %v4123_v5 = vld [vmem:[#allocation8 + $0x60] ss:$8 sps:$4 sm:$0xff]  }
 0x1cf   :  { %v795_v26 = vmax.f32 %v735_v16, 0.0 }
 0x1d2   :  { %v605_v17 = vpop.f32.mrb[0].mxu0 }
 0x1d3   :  { %v606_v18 = vadd.f32 %v605_v17, %v4982_v10  ;;  %v607_v19 = vpop.f32.mrb[1].mxu0  ;;  %v3612_v17 = vadd.f32 %v3611_v14, %v3610_v7  ;;  %v4128_v14 = vld [vmem:[#allocation8 + $0x74] ss:$8 sps:$4 sm:$0xff]  }
 0x1d4   :  { %v608_v22 = vadd.f32 %v607_v19, %v4985_v13  ;;  %v609_v23 = vpop.f32.mrb[2].mxu0 }
 0x1d5   :  { %v610_v24 = vadd.f32 %v609_v23, %v4982_v10  ;;  %v611_v25 = vpop.f32.mrb[3].mxu0  ;;  %v781_v32 = vmax.f32 %v606_v18, 0.0  ;;  %v4114_v18 = vld [vmem:[#allocation8 + $0x30] ss:$8 sps:$4 sm:$0xff]   ;;  %v738_v27 = vadd.f32 %v3612_v17, %v4979_v8  ;;  %v4101_v17 = vld [vmem:[#allocation7 + $0x164] ss:$8 sps:$4 sm:$0xff]  }
 0x1d6   :  { %v612_v29 = vadd.f32 %v611_v25, %v4985_v13  ;;  %v782_v38 = vmax.f32 %v608_v22, 0.0  ;;  %v4119_v22 = vld [vmem:[#allocation8 + $0x44] ss:$8 sps:$4 sm:$0xff]   ;;  %v4092_v25 = vld [vmem:[#allocation7 + $0x134] ss:$8 sps:$4 sm:$0xff]   ;;  %1638 = vmatpush1.bf16.msra.mxu0 %v4114_v18 }
 0x1d7   :  { %v784_v33 = vmax.f32 %v610_v24, 0.0  ;;  %1639 = vmatprep.subr.bf16.mxu0 %v4119_v22 }
 0x1d8   :  { %v785_v39 = vmax.f32 %v612_v29, 0.0 }
 0x1d9   :  { %v829_v41 = vpack.c.bf16 %v784_v33, %v781_v32  ;;  %v798_v32 = vmax.f32 %v738_v27, 0.0  ;;  %v3613_v33 = vpop.f32.mrb[12].mxu1  ;;  %v4126_v27 = vld [vmem:[#allocation8 + $0x70] ss:$8 sps:$4 sm:$0xff]  }
 0x1da   :  { %v830_v45 = vpack.c.bf16 %v785_v39, %v782_v38  ;;  %v615_v46 = vpop.f32.mrb[4].mxu0  ;;  %v3614_v38 = vpop.f32.mrb[13].mxu1  ;;  %v4122_v39 = vld [vmem:[#allocation8 + $0x54] ss:$8 sps:$4 sm:$0xff]   ;;  %1640 = vmatpush1.bf16.msra.mxu0 %v4117_v35 }
 0x1db   :  { %v616_v49 = vadd.f32 %v615_v46, %v4982_v10  ;;  %v617_v50 = vpop.f32.mrb[5].mxu0  ;;  %v3615_v43 = vadd.f32 %v3614_v38, %v3613_v33  ;;  %v3616_v44 = vpop.f32.mrb[14].mxu1  ;;  %1641 = vmatprep.subr.bf16.mxu0 %v4122_v39  ;;  %v4104_v35 = vld [vmem:[#allocation7 + $0x174] ss:$8 sps:$4 sm:$0xff]  }
 0x1dc   :  { %v618_v54 = vadd.f32 %v617_v50, %v4985_v13  ;;  %v619_v55 = vpop.f32.mrb[6].mxu0  ;;  %1185 = vmatprep.mubr.bf16.mxu1 %v830_v45  ;;  %v5009_v45 = vpack.c.bf16 %v798_v32, %v795_v26  ;;  %v3617_v48 = vpop.f32.mrb[15].mxu1 }
 0x1dd   :  { %v620_v56 = vadd.f32 %v619_v55, %v4982_v10  ;;  %v621_v57 = vpop.f32.mrb[7].mxu0  ;;  %1186 = vmatmul.mubr.bf16.vlgmr.msra.gmra.mrb[32].mxu1 %v829_v41  ;;  %v787_v1 = vmax.f32 %v616_v49, 0.0  ;;  %v743_v50 = vadd.f32 %v3615_v43, %v4979_v8  ;;  %v4093_v55 = vld [vmem:[#allocation7 + $0x140] ss:$8 sps:$4 sm:$0xff]  }
 0x1de   :  { %v622_v61 = vadd.f32 %v621_v57, %v4985_v13  ;;  %1267 = vmatpush1.bf16.msra.mxu1 %v4081_v47  ;;  %v788_v11 = vmax.f32 %v618_v54, 0.0  ;;  %1642 = vmatpush1.bf16.msra.mxu0 %v4120_v52 }
 0x1df   :  { %v790_v2 = vmax.f32 %v620_v56, 0.0  ;;  %1268 = vmatprep.subr.bf16.mxu1 %v4086_v51  ;;  %v3618_v51 = vadd.f32 %v3617_v48, %v3616_v44  ;;  %v4125_v56 = vld [vmem:[#allocation8 + $0x64] ss:$8 sps:$4 sm:$0xff]   ;;  %v801_v60 = vmax.f32 %v743_v50, 0.0  ;;  %v4129_v44 = vld [vmem:[#allocation8 + $0x80] ss:$8 sps:$4 sm:$0xff]  }
 0x1e0   :  { %v791_v12 = vmax.f32 %v622_v61, 0.0  ;;  %1643 = vmatprep.subr.bf16.mxu0 %v4125_v56 }
 0x1e1   :  { %v832_v15 = vpack.c.bf16 %v790_v2, %v787_v1  ;;  %v746_v61 = vadd.f32 %v3618_v51, %v4979_v8 }
 0x1e2   :  { %v833_v19 = vpack.c.bf16 %v791_v12, %v788_v11  ;;  %v625_v20 = vpop.f32.mrb[8].mxu0  ;;  %1269 = vmatpush1.bf16.msra.mxu1 %v4084_v62  ;;  %v4096_v11 = vld [vmem:[#allocation7 + $0x150] ss:$8 sps:$4 sm:$0xff]   ;;  %1644 = vmatpush1.bf16.msra.mxu0 %v4123_v5 }
 0x1e3   :  { %v626_v23 = vadd.f32 %v625_v20, %v4982_v10  ;;  %v627_v24 = vpop.f32.mrb[9].mxu0  ;;  %1270 = vmatprep.subr.bf16.mxu1 %v4089_v3  ;;  %v804_v2 = vmax.f32 %v746_v61, 0.0  ;;  %v3619_v3 = vpop.f32.mrb[16].mxu1  ;;  %1645 = vmatprep.subr.bf16.mxu0 %v4128_v14  ;;  %v4132_v61 = vld [vmem:[#allocation8 + $0x90] ss:$8 sps:$4 sm:$0xff]  }
 0x1e4   :  { %v628_v28 = vadd.f32 %v627_v24, %v4985_v13  ;;  %v629_v29 = vpop.f32.mrb[10].mxu0  ;;  %1195 = vmatprep.mubr.bf16.mxu1 %v833_v19  ;;  %v3620_v12 = vpop.f32.mrb[17].mxu1 }
 0x1e5   :  { %v630_v30 = vadd.f32 %v629_v29, %v4982_v10  ;;  %v631_v31 = vpop.f32.mrb[11].mxu0  ;;  %1196 = vmatmul.mubr.bf16.gmra.mrb[36].mxu1 %v832_v15  ;;  %v793_v40 = vmax.f32 %v626_v23, 0.0  ;;  %v3621_v18 = vadd.f32 %v3620_v12, %v3619_v3  ;;  %v3622_v19 = vpop.f32.mrb[18].mxu1  ;;  %v5017_v20 = vpack.c.bf16 %v804_v2, %v801_v60 }
 0x1e6   :  { %v632_v36 = vadd.f32 %v631_v31, %v4985_v13  ;;  %1271 = vmatpush1.bf16.msra.mxu1 %v4087_v21  ;;  %v794_v46 = vmax.f32 %v628_v28, 0.0  ;;  %v3623_v23 = vpop.f32.mrb[19].mxu1  ;;  %v4131_v31 = vld [vmem:[#allocation8 + $0x84] ss:$8 sps:$4 sm:$0xff]   ;;  %1646 = vmatpush1.bf16.msra.mxu0 %v4126_v27 }
 0x1e7   :  { %v796_v41 = vmax.f32 %v630_v30, 0.0  ;;  %1272 = vmatprep.subr.bf16.mxu1 %v4092_v25  ;;  %v751_v25 = vadd.f32 %v3621_v18, %v4979_v8  ;;  %v3624_v26 = vadd.f32 %v3623_v23, %v3622_v19  ;;  %v4099_v30 = vld [vmem:[#allocation7 + $0x160] ss:$8 sps:$4 sm:$0xff]   ;;  %v3625_v43 = vpop.f32.mrb[20].mxu1  ;;  %1647 = vmatprep.subr.bf16.mxu0 %v4131_v31 }
 0x1e8   :  { %v797_v47 = vmax.f32 %v632_v36, 0.0  ;;  %v3626_v48 = vpop.f32.mrb[21].mxu1 }
 0x1e9   :  { %v835_v49 = vpack.c.bf16 %v796_v41, %v793_v40  ;;  %v807_v36 = vmax.f32 %v751_v25, 0.0  ;;  %v3627_v52 = vadd.f32 %v3626_v48, %v3625_v43 }
 0x1ea   :  { %v836_v53 = vpack.c.bf16 %v797_v47, %v794_v46  ;;  %v635_v54 = vpop.f32.mrb[12].mxu0  ;;  %1273 = vmatpush1.bf16.msra.mxu1 %v4090_v37  ;;  %v754_v37 = vadd.f32 %v3624_v26, %v4979_v8  ;;  %v4102_v47 = vld [vmem:[#allocation7 + $0x170] ss:$8 sps:$4 sm:$0xff]   ;;  %1648 = vmatpush1.bf16.msra.mxu0 %v4129_v44 }
 0x1eb   :  { %v636_v57 = vadd.f32 %v635_v54, %v4982_v10  ;;  %v637_v58 = vpop.f32.mrb[13].mxu0  ;;  %1274 = vmatprep.subr.bf16.mxu1 %v4095_v42 }
 0x1ec   :  { %v638_v62 = vadd.f32 %v637_v58, %v4985_v13  ;;  %v639_v63 = vpop.f32.mrb[14].mxu0  ;;  %1205 = vmatprep.mubr.bf16.mxu1 %v836_v53  ;;  %v810_v42 = vmax.f32 %v754_v37, 0.0  ;;  %v3628_v53 = vpop.f32.mrb[22].mxu1  ;;  %v4143_v37 = vld [vmem:[#allocation8 + $0xc4] ss:$8 sps:$4 sm:$0xff]  }
 0x1ed   :  { %v640_v0 = vadd.f32 %v639_v63, %v4982_v10  ;;  %v641_v1 = vpop.f32.mrb[15].mxu0  ;;  %1206 = vmatmul.mubr.bf16.gmra.mrb[40].mxu1 %v835_v49  ;;  %v799_v15 = vmax.f32 %v636_v57, 0.0  ;;  %v4134_v49 = vld [vmem:[#allocation8 + $0x94] ss:$8 sps:$4 sm:$0xff]   ;;  %v3629_v57 = vpop.f32.mrb[23].mxu1 }
 0x1ee   :  { %v642_v7 = vadd.f32 %v641_v1, %v4985_v13  ;;  %1275 = vmatpush1.bf16.msra.mxu1 %v4093_v55  ;;  %v800_v21 = vmax.f32 %v638_v62, 0.0  ;;  %v5025_v54 = vpack.c.bf16 %v810_v42, %v807_v36  ;;  %v3630_v60 = vadd.f32 %v3629_v57, %v3628_v53  ;;  %1649 = vmatprep.subr.bf16.mxu0 %v4134_v49  ;;  %v4141_v49 = vld [vmem:[#allocation8 + $0xc0] ss:$8 sps:$4 sm:$0xff]  }
 0x1ef   :  { %v802_v16 = vmax.f32 %v640_v0, 0.0  ;;  %1276 = vmatprep.subr.bf16.mxu1 %v4098_v59  ;;  %v759_v59 = vadd.f32 %v3627_v52, %v4979_v8  ;;  %v4137_v0 = vld [vmem:[#allocation8 + $0xa4] ss:$8 sps:$4 sm:$0xff]   ;;  %1650 = vmatpush1.bf16.msra.mxu0 %v4132_v61  ;;  %v4146_v52 = vld [vmem:[#allocation8 + $0xd4] ss:$8 sps:$4 sm:$0xff]  }
 0x1f0   :  { %v803_v22 = vmax.f32 %v642_v7, 0.0  ;;  %v762_v5 = vadd.f32 %v3630_v60, %v4979_v8  ;;  %1651 = vmatprep.subr.bf16.mxu0 %v4137_v0 }
 0x1f1   :  { %v838_v24 = vpack.c.bf16 %v802_v16, %v799_v15  ;;  %v813_v3 = vmax.f32 %v759_v59, 0.0  ;;  %v3631_v16 = vpop.f32.mrb[24].mxu1 }
 0x1f2   :  { %v839_v28 = vpack.c.bf16 %v803_v22, %v800_v21  ;;  %v645_v29 = vpop.f32.mrb[16].mxu0  ;;  %1277 = vmatpush1.bf16.msra.mxu1 %v4096_v11  ;;  %v816_v15 = vmax.f32 %v762_v5, 0.0  ;;  %v3632_v19 = vpop.f32.mrb[25].mxu1  ;;  %v4140_v21 = vld [vmem:[#allocation8 + $0xb4] ss:$8 sps:$4 sm:$0xff]  }
 0x1f3   :  { %v646_v32 = vadd.f32 %v645_v29, %v4982_v10  ;;  %v647_v33 = vpop.f32.mrb[17].mxu0  ;;  %1278 = vmatprep.subr.bf16.mxu1 %v4101_v17  ;;  %v4135_v17 = vld [vmem:[#allocation8 + $0xa0] ss:$8 sps:$4 sm:$0xff]   ;;  %v3634_v25 = vpop.f32.mrb[26].mxu1 }
 0x1f4   :  { %v648_v38 = vadd.f32 %v647_v33, %v4985_v13  ;;  %v649_v39 = vpop.f32.mrb[18].mxu0  ;;  %1215 = vmatprep.mubr.bf16.mxu1 %v839_v28  ;;  %v5033_v26 = vpack.c.bf16 %v816_v15, %v813_v3  ;;  %v3635_v29 = vpop.f32.mrb[27].mxu1  ;;  %1652 = vmatpush1.bf16.msra.mxu0 %v4135_v17  ;;  %v4138_v33 = vld [vmem:[#allocation8 + $0xb0] ss:$8 sps:$4 sm:$0xff]  }
 0x1f5   :  { %v650_v40 = vadd.f32 %v649_v39, %v4982_v10  ;;  %v651_v41 = vpop.f32.mrb[19].mxu0  ;;  %1216 = vmatmul.mubr.bf16.gmra.mrb[44].mxu1 %v838_v24  ;;  %v805_v50 = vmax.f32 %v646_v32, 0.0  ;;  %v3633_v24 = vadd.f32 %v3632_v19, %v3631_v16  ;;  %v3636_v32 = vadd.f32 %v3635_v29, %v3634_v25  ;;  %1653 = vmatprep.subr.bf16.mxu0 %v4140_v21  ;;  %v3637_v48 = vpop.f32.mrb[28].mxu1 }
 0x1f6   :  { %v652_v46 = vadd.f32 %v651_v41, %v4985_v13  ;;  %1279 = vmatpush1.bf16.msra.mxu1 %v4099_v30  ;;  %v806_v55 = vmax.f32 %v648_v38, 0.0 }
 0x1f7   :  { %v808_v51 = vmax.f32 %v650_v40, 0.0  ;;  %1280 = vmatprep.subr.bf16.mxu1 %v4104_v35  ;;  %v767_v31 = vadd.f32 %v3633_v24, %v4979_v8  ;;  %v770_v41 = vadd.f32 %v3636_v32, %v4979_v8 }
 0x1f8   :  { %v809_v56 = vmax.f32 %v652_v46, 0.0  ;;  %1654 = vmatpush1.bf16.msra.mxu0 %v4138_v33 }
 0x1f9   :  { %v841_v58 = vpack.c.bf16 %v808_v51, %v805_v50  ;;  %v819_v40 = vmax.f32 %v767_v31, 0.0  ;;  %v3638_v51 = vpop.f32.mrb[29].mxu1  ;;  %1655 = vmatprep.subr.bf16.mxu0 %v4143_v37 }
 0x1fa   :  { %v842_v62 = vpack.c.bf16 %v809_v56, %v806_v55  ;;  %v655_v63 = vpop.f32.mrb[20].mxu0  ;;  %1281 = vmatpush1.bf16.msra.mxu1 %v4102_v47  ;;  %v822_v47 = vmax.f32 %v770_v41, 0.0  ;;  %v3639_v56 = vadd.f32 %v3638_v51, %v3637_v48  ;;  %v3640_v57 = vpop.f32.mrb[30].mxu1 }
 0x1fb   :  { %v656_v1 = vadd.f32 %v655_v63, %v4982_v10  ;;  %v657_v2 = vpop.f32.mrb[21].mxu0  ;;  %v3641_v61 = vpop.f32.mrb[31].mxu1 }
 0x1fc   :  { %v658_v7 = vadd.f32 %v657_v2, %v4985_v13  ;;  %v659_v11 = vpop.f32.mrb[22].mxu0  ;;  %1225 = vmatprep.mubr.bf16.mxu1 %v842_v62  ;;  %v775_v63 = vadd.f32 %v3639_v56, %v4979_v8  ;;  %v3642_v0 = vadd.f32 %v3641_v61, %v3640_v57  ;;  %1656 = vmatpush1.bf16.msra.mxu0 %v4141_v49 }
 0x1fd   :  { %v660_v12 = vadd.f32 %v659_v11, %v4982_v10  ;;  %v661_v14 = vpop.f32.mrb[23].mxu0  ;;  %1226 = vmatmul.mubr.bf16.gmra.mrb[48].mxu1 %v841_v58  ;;  %v811_v22 = vmax.f32 %v656_v1, 0.0  ;;  %v849_v58 = vpack.c.bf16 %v822_v47, %v819_v40  ;;  %v4144_v1 = vld [vmem:[#allocation8 + $0xd0] ss:$8 sps:$4 sm:$0xff]   ;;  %1657 = vmatprep.subr.bf16.mxu0 %v4146_v52 }
 0x1fe   :  { %v662_v18 = vadd.f32 %v661_v14, %v4985_v13  ;;  %v812_v27 = vmax.f32 %v658_v7, 0.0  ;;  %v825_v11 = vmax.f32 %v775_v63, 0.0 }
 0x1ff   :  { %v814_v23 = vmax.f32 %v660_v12, 0.0  ;;  %v778_v12 = vadd.f32 %v3642_v0, %v4979_v8  ;;  %v4730_v8 = vmov 0  }
 0x200   :  { %v815_v28 = vmax.f32 %v662_v18, 0.0  ;;  %1658 = vmatpush1.bf16.msra.mxu0 %v4144_v1 }
 0x201   :  { %v844_v30 = vpack.c.bf16 %v814_v23, %v811_v22  ;;  %v828_v18 = vmax.f32 %v778_v12, 0.0 }
 0x202   :  { %v845_v35 = vpack.c.bf16 %v815_v28, %v812_v27  ;;  %v665_v36 = vpop.f32.mrb[24].mxu0 }
 0x203   :  { %v666_v38 = vadd.f32 %v665_v36, %v4982_v10  ;;  %v667_v39 = vpop.f32.mrb[25].mxu0  ;;  %v852_v23 = vpack.c.bf16 %v828_v18, %v825_v11 }
 0x204   :  { %v668_v42 = vadd.f32 %v667_v39, %v4985_v13  ;;  %v669_v43 = vpop.f32.mrb[26].mxu0  ;;  %1235 = vmatprep.mubr.bf16.mxu1 %v845_v35 }
 0x205   :  { %v670_v44 = vadd.f32 %v669_v43, %v4982_v10  ;;  %v671_v46 = vpop.f32.mrb[27].mxu0  ;;  %1236 = vmatmul.mubr.bf16.gmra.mrb[52].mxu1 %v844_v30  ;;  %v817_v53 = vmax.f32 %v666_v38, 0.0 }
 0x206   :  { %v672_v50 = vadd.f32 %v671_v46, %v4985_v13  ;;  %v818_v59 = vmax.f32 %v668_v42, 0.0 }
 0x207   :  { %v820_v55 = vmax.f32 %v670_v44, 0.0 }
 0x208   :  { %v821_v60 = vmax.f32 %v672_v50, 0.0 }
 0x209   :  { %v847_v62 = vpack.c.bf16 %v820_v55, %v817_v53 }
 0x20a   :  { %v848_v2 = vpack.c.bf16 %v821_v60, %v818_v59  ;;  %v675_v3 = vpop.f32.mrb[28].mxu0 }
 0x20b   :  { %v676_v5 = vadd.f32 %v675_v3, %v4982_v10  ;;  %v677_v7 = vpop.f32.mrb[29].mxu0 }
 0x20c   :  { %v678_v14 = vadd.f32 %v677_v7, %v4985_v13  ;;  %v679_v15 = vpop.f32.mrb[30].mxu0  ;;  %1245 = vmatprep.mubr.bf16.mxu1 %v848_v2 }
 0x20d   :  { %v680_v16 = vadd.f32 %v679_v15, %v4982_v10  ;;  %v681_v17 = vpop.f32.mrb[31].mxu0  ;;  %1246 = vmatmul.mubr.bf16.gmra.mrb[56].mxu1 %v847_v62  ;;  %v823_v21 = vmax.f32 %v676_v5, 0.0  ;;  %v4149_v10 = vld [vmem:[#allocation8 + $0xe4] ss:$8 sps:$4 sm:$0xff]  }
 0x20e   :  { %v682_v19 = vadd.f32 %v681_v17, %v4985_v13  ;;  %v824_v24 = vmax.f32 %v678_v14, 0.0  ;;  %v4147_v13 = vld [vmem:[#allocation8 + $0xe0] ss:$8 sps:$4 sm:$0xff]   ;;  %1659 = vmatprep.subr.bf16.mxu0 %v4149_v10 }
 0x20f   :  { %v826_v22 = vmax.f32 %v680_v16, 0.0  ;;  %1660 = vmatpush1.bf16.msra.mxu0 %v4147_v13 }
 0x210   :  { %v827_v25 = vmax.f32 %v682_v19, 0.0 }
 0x211   :  { %v850_v27 = vpack.c.bf16 %v826_v22, %v823_v21 }
 0x212   :  { %v851_v28 = vpack.c.bf16 %v827_v25, %v824_v24 }
 0x214   :  { %1255 = vmatprep.mubr.bf16.mxu1 %v851_v28 }
 0x215   :  { %1256 = vmatmul.mubr.bf16.gmra.mrb[60].mxu1 %v850_v27 }
 0x216   :  { %1298 = vmatprep.mubr.bf16.mxu1 %v4730_v8 }
 0x21d   :  { %1299 = vmatmul.mubr.bf16.vlgmr.msra.gmra.mrb[32].mxu1 %v4993_v34  ;;  %v4152_v34 = vld [vmem:[#allocation8 + $0xf4] ss:$8 sps:$4 sm:$0xff]  }
 0x21e   :  { %1308 = vmatprep.mubr.bf16.mxu1 %v4730_v8  ;;  %1661 = vmatprep.subr.bf16.mxu0 %v4152_v34 }
 0x225   :  { %1309 = vmatmul.mubr.bf16.gmra.mrb[36].mxu1 %v5001_v9  ;;  %v4150_v9 = vld [vmem:[#allocation8 + $0xf0] ss:$8 sps:$4 sm:$0xff]  }
 0x226   :  { %1318 = vmatprep.mubr.bf16.mxu1 %v4730_v8  ;;  %1662 = vmatpush1.bf16.msra.mxu0 %v4150_v9 }
 0x22d   :  { %1319 = vmatmul.mubr.bf16.gmra.mrb[40].mxu1 %v5009_v45  ;;  %v901_v45 = vld [vmem:[%s5844_s22] sm:$0x3] }
 0x22e   :  { %1328 = vmatprep.mubr.bf16.mxu1 %v4730_v8 }
 0x235   :  { %1329 = vmatmul.mubr.bf16.gmra.mrb[44].mxu1 %v5017_v20  ;;  %v5057_v20 = vrot.slane %v901_v45, %v4972_v4 }
 0x236   :  { %1338 = vmatprep.mubr.bf16.mxu1 %v4730_v8 }
 0x23d   :  { %1339 = vmatmul.mubr.bf16.gmra.mrb[48].mxu1 %v5025_v54  ;;  %v5060_v54 = vrot.slane %v901_v45, %v4977_v6 }
 0x23e   :  { %1348 = vmatprep.mubr.bf16.mxu1 %v4730_v8 }
 0x245   :  { %1349 = vmatmul.mubr.bf16.gmra.mrb[52].mxu1 %v5033_v26 }
 0x246   :  { %1358 = vmatprep.mubr.bf16.mxu1 %v4730_v8 }
 0x24d   :  { %1359 = vmatmul.mubr.bf16.gmra.mrb[56].mxu1 %v849_v58 }
 0x24e   :  { %1368 = vmatprep.mubr.bf16.mxu1 %v4730_v8 }
 0x255   :  { %1369 = vmatmul.mubr.bf16.gmra.mrb[60].mxu1 %v852_v23 }
 0x2f0   :  { %v1300_v26 = vpop.f32.mrb[32].mxu1 }
 0x2f1   :  { %v3883_v29 = vadd.f32 %v1300_v26, %v5057_v20  ;;  %v1302_v30 = vpop.f32.mrb[33].mxu1 }
 0x2f2   :  { %v3884_v31 = vadd.f32 %v1302_v30, %v5060_v54  ;;  %v1304_v32 = vpop.f32.mrb[34].mxu1 }
 0x2f3   :  { %v3885_v33 = vadd.f32 %v1304_v32, %v5057_v20  ;;  %v1306_v35 = vpop.f32.mrb[35].mxu1  ;;  %v1379_v37 = vmax.f32 %v3883_v29, 0.0 }
 0x2f4   :  { %v3886_v36 = vadd.f32 %v1306_v35, %v5060_v54  ;;  %v1380_v39 = vmax.f32 %v3884_v31, 0.0 }
 0x2f5   :  { %v1381_v38 = vmax.f32 %v3885_v33, 0.0 }
 0x2f6   :  { %v1382_v40 = vmax.f32 %v3886_v36, 0.0 }
 0x2f7   :  { %v1411_v41 = vpack.c.bf16 %v1381_v38, %v1379_v37 }
 0x2f8   :  { %v1412_v42 = vpack.c.bf16 %v1382_v40, %v1380_v39  ;;  %v1310_v43 = vpop.f32.mrb[36].mxu1 }
 0x2f9   :  { %v3887_v44 = vadd.f32 %v1310_v43, %v5057_v20  ;;  %v1312_v46 = vpop.f32.mrb[37].mxu1 }
 0x2fa   :  { %v3888_v47 = vadd.f32 %v1312_v46, %v5060_v54  ;;  %v1314_v48 = vpop.f32.mrb[38].mxu1  ;;  %1663 = vmatprep.mubr.bf16.mxu0 %v1412_v42 }
 0x2fb   :  { %v3889_v49 = vadd.f32 %v1314_v48, %v5057_v20  ;;  %v1316_v50 = vpop.f32.mrb[39].mxu1  ;;  %1664 = vmatmul.mubr.bf16.vlgmr.msra.gmra.mrb[32].mxu0 %v1411_v41  ;;  %v1383_v52 = vmax.f32 %v3887_v44, 0.0 }
 0x2fc   :  { %v3890_v51 = vadd.f32 %v1316_v50, %v5060_v54  ;;  %v1384_v55 = vmax.f32 %v3888_v47, 0.0 }
 0x2fd   :  { %v1385_v53 = vmax.f32 %v3889_v49, 0.0 }
 0x2fe   :  { %v1386_v56 = vmax.f32 %v3890_v51, 0.0 }
 0x2ff   :  { %v1413_v57 = vpack.c.bf16 %v1385_v53, %v1383_v52 }
 0x300   :  { %v1414_v58 = vpack.c.bf16 %v1386_v56, %v1384_v55  ;;  %v1320_v59 = vpop.f32.mrb[40].mxu1 }
 0x301   :  { %v3891_v60 = vadd.f32 %v1320_v59, %v5057_v20  ;;  %v1322_v61 = vpop.f32.mrb[41].mxu1 }
 0x302   :  { %v3892_v62 = vadd.f32 %v1322_v61, %v5060_v54  ;;  %v1324_v63 = vpop.f32.mrb[42].mxu1  ;;  %1673 = vmatprep.mubr.bf16.mxu0 %v1414_v58 }
 0x303   :  { %v3893_v0 = vadd.f32 %v1324_v63, %v5057_v20  ;;  %v1326_v1 = vpop.f32.mrb[43].mxu1  ;;  %1674 = vmatmul.mubr.bf16.gmra.mrb[36].mxu0 %v1413_v57  ;;  %v1387_v3 = vmax.f32 %v3891_v60, 0.0 }
 0x304   :  { %v3894_v2 = vadd.f32 %v1326_v1, %v5060_v54  ;;  %v1388_v7 = vmax.f32 %v3892_v62, 0.0 }
 0x305   :  { %v1389_v5 = vmax.f32 %v3893_v0, 0.0 }
 0x306   :  { %v1390_v11 = vmax.f32 %v3894_v2, 0.0 }
 0x307   :  { %v1415_v12 = vpack.c.bf16 %v1389_v5, %v1387_v3 }
 0x308   :  { %v1416_v14 = vpack.c.bf16 %v1390_v11, %v1388_v7  ;;  %v1330_v15 = vpop.f32.mrb[44].mxu1 }
 0x309   :  { %v3895_v16 = vadd.f32 %v1330_v15, %v5057_v20  ;;  %v1332_v17 = vpop.f32.mrb[45].mxu1 }
 0x30a   :  { %v3896_v18 = vadd.f32 %v1332_v17, %v5060_v54  ;;  %v1334_v19 = vpop.f32.mrb[46].mxu1  ;;  %1683 = vmatprep.mubr.bf16.mxu0 %v1416_v14 }
 0x30b   :  { %v3897_v21 = vadd.f32 %v1334_v19, %v5057_v20  ;;  %v1336_v22 = vpop.f32.mrb[47].mxu1  ;;  %1684 = vmatmul.mubr.bf16.gmra.mrb[40].mxu0 %v1415_v12  ;;  %v1391_v24 = vmax.f32 %v3895_v16, 0.0 }
 0x30c   :  { %v3898_v23 = vadd.f32 %v1336_v22, %v5060_v54  ;;  %v1392_v27 = vmax.f32 %v3896_v18, 0.0 }
 0x30d   :  { %v1393_v25 = vmax.f32 %v3897_v21, 0.0 }
 0x30e   :  { %v1394_v28 = vmax.f32 %v3898_v23, 0.0 }
 0x30f   :  { %v1417_v8 = vpack.c.bf16 %v1393_v25, %v1391_v24 }
 0x310   :  { %v1418_v10 = vpack.c.bf16 %v1394_v28, %v1392_v27  ;;  %v1340_v13 = vpop.f32.mrb[48].mxu1  ;;  %v1459_v27 = vld [vmem:[%s5803_s6] sm:$0x3] }
 0x311   :  { %v3899_v34 = vadd.f32 %v1340_v13, %v5057_v20  ;;  %v1342_v9 = vpop.f32.mrb[49].mxu1  ;;  %v5098_v28 = vrot.slane %v1459_v27, %v4972_v4 }
 0x312   :  { %v3900_v45 = vadd.f32 %v1342_v9, %v5060_v54  ;;  %v1344_v26 = vpop.f32.mrb[50].mxu1  ;;  %1693 = vmatprep.mubr.bf16.mxu0 %v1418_v10 }
 0x313   :  { %v3901_v29 = vadd.f32 %v1344_v26, %v5057_v20  ;;  %v1346_v30 = vpop.f32.mrb[51].mxu1  ;;  %1694 = vmatmul.mubr.bf16.gmra.mrb[44].mxu0 %v1417_v8  ;;  %v1395_v32 = vmax.f32 %v3899_v34, 0.0 }
 0x314   :  { %v3902_v31 = vadd.f32 %v1346_v30, %v5060_v54  ;;  %v1396_v35 = vmax.f32 %v3900_v45, 0.0 }
 0x315   :  { %v1397_v33 = vmax.f32 %v3901_v29, 0.0 }
 0x316   :  { %v1398_v36 = vmax.f32 %v3902_v31, 0.0 }
 0x317   :  { %v1419_v37 = vpack.c.bf16 %v1397_v33, %v1395_v32 }
 0x318   :  { %v1420_v38 = vpack.c.bf16 %v1398_v36, %v1396_v35  ;;  %v1350_v39 = vpop.f32.mrb[52].mxu1 }
 0x319   :  { %v3903_v40 = vadd.f32 %v1350_v39, %v5057_v20  ;;  %v1352_v41 = vpop.f32.mrb[53].mxu1 }
 0x31a   :  { %v3904_v42 = vadd.f32 %v1352_v41, %v5060_v54  ;;  %v1354_v43 = vpop.f32.mrb[54].mxu1  ;;  %1703 = vmatprep.mubr.bf16.mxu0 %v1420_v38 }
 0x31b   :  { %v3905_v44 = vadd.f32 %v1354_v43, %v5057_v20  ;;  %v1356_v46 = vpop.f32.mrb[55].mxu1  ;;  %1704 = vmatmul.mubr.bf16.gmra.mrb[48].mxu0 %v1419_v37  ;;  %v1399_v48 = vmax.f32 %v3903_v40, 0.0 }
 0x31c   :  { %v3906_v47 = vadd.f32 %v1356_v46, %v5060_v54  ;;  %v1400_v50 = vmax.f32 %v3904_v42, 0.0 }
 0x31d   :  { %v1401_v49 = vmax.f32 %v3905_v44, 0.0 }
 0x31e   :  { %v1402_v51 = vmax.f32 %v3906_v47, 0.0 }
 0x31f   :  { %v1421_v52 = vpack.c.bf16 %v1401_v49, %v1399_v48 }
 0x320   :  { %v1422_v53 = vpack.c.bf16 %v1402_v51, %v1400_v50  ;;  %v1360_v55 = vpop.f32.mrb[56].mxu1 }
 0x321   :  { %v3907_v56 = vadd.f32 %v1360_v55, %v5057_v20  ;;  %v1362_v57 = vpop.f32.mrb[57].mxu1 }
 0x322   :  { %v3908_v58 = vadd.f32 %v1362_v57, %v5060_v54  ;;  %v1364_v59 = vpop.f32.mrb[58].mxu1  ;;  %1713 = vmatprep.mubr.bf16.mxu0 %v1422_v53 }
 0x323   :  { %v3909_v60 = vadd.f32 %v1364_v59, %v5057_v20  ;;  %v1366_v61 = vpop.f32.mrb[59].mxu1  ;;  %1714 = vmatmul.mubr.bf16.gmra.mrb[52].mxu0 %v1421_v52  ;;  %v1403_v63 = vmax.f32 %v3907_v56, 0.0 }
 0x324   :  { %v3910_v62 = vadd.f32 %v1366_v61, %v5060_v54  ;;  %v1404_v1 = vmax.f32 %v3908_v58, 0.0 }
 0x325   :  { %v1405_v0 = vmax.f32 %v3909_v60, 0.0 }
 0x326   :  { %v1406_v2 = vmax.f32 %v3910_v62, 0.0 }
 0x327   :  { %v1423_v3 = vpack.c.bf16 %v1405_v0, %v1403_v63 }
 0x328   :  { %v1424_v5 = vpack.c.bf16 %v1406_v2, %v1404_v1  ;;  %v1370_v7 = vpop.f32.mrb[60].mxu1 }
 0x329   :  { %v3911_v11 = vadd.f32 %v1370_v7, %v5057_v20  ;;  %v1372_v12 = vpop.f32.mrb[61].mxu1 }
 0x32a   :  { %v3912_v14 = vadd.f32 %v1372_v12, %v5060_v54  ;;  %v1374_v15 = vpop.f32.mrb[62].mxu1  ;;  %1723 = vmatprep.mubr.bf16.mxu0 %v1424_v5 }
 0x32b   :  { %v3913_v16 = vadd.f32 %v1374_v15, %v5057_v20  ;;  %v1376_v17 = vpop.f32.mrb[63].mxu1  ;;  %1724 = vmatmul.mubr.bf16.gmra.mrb[56].mxu0 %v1423_v3  ;;  %v1407_v19 = vmax.f32 %v3911_v11, 0.0  ;;  %v5101_v20 = vrot.slane %v1459_v27, %v4977_v6  ;;  %v4206_v6 = vld [vmem:[#allocation11 + $0x10] sm:$0xff]  }
 0x32c   :  { %v3914_v18 = vadd.f32 %v1376_v17, %v5060_v54  ;;  %v1408_v22 = vmax.f32 %v3912_v14, 0.0 }
 0x32d   :  { %v1409_v21 = vmax.f32 %v3913_v16, 0.0 }
 0x32e   :  { %v1410_v23 = vmax.f32 %v3914_v18, 0.0 }
 0x32f   :  { %v1425_v24 = vpack.c.bf16 %v1409_v21, %v1407_v19 }
 0x330   :  { %v1426_v25 = vpack.c.bf16 %v1410_v23, %v1408_v22 }
 0x332   :  { %1733 = vmatprep.mubr.bf16.mxu0 %v1426_v25 }
 0x333   :  { %1734 = vmatmul.mubr.bf16.gmra.mrb[60].mxu0 %v1425_v24 }
 0x3ce   :  { %v1665_v8 = vpop.f32.mrb[32].mxu0 }
 0x3cf   :  { %v5104_v54 = vadd.f32 %v1665_v8, %v5098_v28  ;;  %v1667_v10 = vpop.f32.mrb[33].mxu0 }
 0x3d0   :  { %v5107_v13 = vadd.f32 %v1667_v10, %v5101_v20  ;;  %v1669_v34 = vpop.f32.mrb[34].mxu0 }
 0x3d1   :  { %v5110_v9 = vadd.f32 %v1669_v34, %v5098_v28  ;;  %v1671_v45 = vpop.f32.mrb[35].mxu0  ;;  %v1744_v26 = vand.u32 2147483647, %v5104_v54 }
 0x3d2   :  { %v5114_v29 = vadd.f32 %v1671_v45, %v5101_v20  ;;  %v1745_v30 = vand.u32 2147483647, %v5107_v13 }
 0x3d3   :  { %v1746_v31 = vand.u32 2147483647, %v5110_v9 }
 0x3d4   :  { %v1747_v32 = vand.u32 2147483647, %v5114_v29  ;;  %v1776_v33 = vmax.f32.f32 %v1744_v26, %v1745_v30 }
 0x3d6   :  { %v1675_v35 = vpop.f32.mrb[36].mxu0  ;;  %1777 = vmax.xlane.f32.xlu0 %v1776_v33  ;;  %v1779_v40 = vmax.f32.f32 %v1746_v31, %v1747_v32 }
 0x3d7   :  { %v5120_v36 = vadd.f32 %v1675_v35, %v5098_v28  ;;  %v1677_v37 = vpop.f32.mrb[37].mxu0 }
 0x3d8   :  { %v5123_v38 = vadd.f32 %v1677_v37, %v5101_v20  ;;  %v1679_v39 = vpop.f32.mrb[38].mxu0 }
 0x3d9   :  { %v5126_v41 = vadd.f32 %v1679_v39, %v5098_v28  ;;  %v1681_v42 = vpop.f32.mrb[39].mxu0  ;;  %v1748_v43 = vand.u32 2147483647, %v5120_v36 }
 0x3da   :  { %v5130_v44 = vadd.f32 %v1681_v42, %v5101_v20  ;;  %1780 = vmax.xlane.f32.xlu0 %v1779_v40  ;;  %v1749_v46 = vand.u32 2147483647, %v5123_v38 }
 0x3db   :  { %v1750_v47 = vand.u32 2147483647, %v5126_v41 }
 0x3dc   :  { %v1751_v48 = vand.u32 2147483647, %v5130_v44  ;;  %v1782_v49 = vmax.f32.f32 %v1748_v43, %v1749_v46 }
 0x3de   :  { %v1685_v50 = vpop.f32.mrb[40].mxu0  ;;  %1783 = vmax.xlane.f32.xlu1 %v1782_v49  ;;  %v1785_v56 = vmax.f32.f32 %v1750_v47, %v1751_v48 }
 0x3df   :  { %v5136_v51 = vadd.f32 %v1685_v50, %v5098_v28  ;;  %v1687_v52 = vpop.f32.mrb[41].mxu0 }
 0x3e0   :  { %v5139_v53 = vadd.f32 %v1687_v52, %v5101_v20  ;;  %v1689_v55 = vpop.f32.mrb[42].mxu0 }
 0x3e1   :  { %v1752_v57 = vand.u32 2147483647, %v5136_v51  ;;  %v5143_v58 = vadd.f32 %v1689_v55, %v5098_v28  ;;  %v1691_v59 = vpop.f32.mrb[43].mxu0 }
 0x3e2   :  { %v1753_v60 = vand.u32 2147483647, %v5139_v53  ;;  %v5147_v61 = vadd.f32 %v1691_v59, %v5101_v20  ;;  %1786 = vmax.xlane.f32.xlu1 %v1785_v56 }
 0x3e3   :  { %v1754_v62 = vand.u32 2147483647, %v5143_v58 }
 0x3e4   :  { %v1755_v63 = vand.u32 2147483647, %v5147_v61  ;;  %v1788_v0 = vmax.f32.f32 %v1752_v57, %v1753_v60 }
 0x3e6   :  { %v1695_v1 = vpop.f32.mrb[44].mxu0  ;;  %1789 = vmax.xlane.f32.xlu0 %v1788_v0  ;;  %v1791_v2 = vmax.f32.f32 %v1754_v62, %v1755_v63 }
 0x3e7   :  { %v5152_v3 = vadd.f32 %v1695_v1, %v5098_v28  ;;  %v1697_v5 = vpop.f32.mrb[45].mxu0 }
 0x3e8   :  { %v5155_v7 = vadd.f32 %v1697_v5, %v5101_v20  ;;  %v1699_v11 = vpop.f32.mrb[46].mxu0  ;;  %1792 = vmax.xlane.f32.xlu1 %v1791_v2 }
 0x3e9   :  { %v1756_v12 = vand.u32 2147483647, %v5152_v3  ;;  %v5159_v14 = vadd.f32 %v1699_v11, %v5098_v28  ;;  %v1701_v15 = vpop.f32.mrb[47].mxu0 }
 0x3ea   :  { %v1757_v16 = vand.u32 2147483647, %v5155_v7  ;;  %v5163_v17 = vadd.f32 %v1701_v15, %v5101_v20 }
 0x3eb   :  { %v1758_v18 = vand.u32 2147483647, %v5159_v14 }
 0x3ec   :  { %v1759_v19 = vand.u32 2147483647, %v5163_v17  ;;  %v1794_v21 = vmax.f32.f32 %v1756_v12, %v1757_v16 }
 0x3ee   :  { %v1705_v22 = vpop.f32.mrb[48].mxu0  ;;  %1795 = vmax.xlane.f32.xlu0 %v1794_v21  ;;  %v1797_v23 = vmax.f32.f32 %v1758_v18, %v1759_v19  ;;  %v4153_v19 = vld [vmem:[#allocation10] ss:$8 sps:$4 sm:$0xff]   ;;  %v4155_v21 = vld [vmem:[#allocation10 + $0x4] ss:$8 sps:$4 sm:$0xff]  }
 0x3ef   :  { %v5168_v24 = vadd.f32 %v1705_v22, %v5098_v28  ;;  %v1707_v25 = vpop.f32.mrb[49].mxu0  ;;  %2258 = vmatprep.subr.bf16.mxu0 %v4155_v21  ;;  %v4185_v21 = vld [vmem:[#allocation10 + $0xa4] ss:$8 sps:$4 sm:$0xff]  }
 0x3f0   :  { %v5171_v27 = vadd.f32 %v1707_v25, %v5101_v20  ;;  %v1709_v8 = vpop.f32.mrb[50].mxu0  ;;  %1798 = vmax.xlane.f32.xlu1 %v1797_v23  ;;  %v4158_v25 = vld [vmem:[#allocation10 + $0x14] ss:$8 sps:$4 sm:$0xff]   ;;  %2259 = vmatpush1.bf16.msra.mxu0 %v4153_v19  ;;  %v4180_v19 = vld [vmem:[#allocation10 + $0x90] ss:$8 sps:$4 sm:$0xff]  }
 0x3f1   :  { %v1760_v10 = vand.u32 2147483647, %v5168_v24  ;;  %v5175_v34 = vadd.f32 %v1709_v8, %v5098_v28  ;;  %v1711_v45 = vpop.f32.mrb[51].mxu0  ;;  %2260 = vmatprep.subr.bf16.mxu0 %v4158_v25  ;;  %v4186_v25 = vld [vmem:[#allocation10 + $0xb0] ss:$8 sps:$4 sm:$0xff]  }
 0x3f2   :  { %v1761_v26 = vand.u32 2147483647, %v5171_v27  ;;  %v5179_v30 = vadd.f32 %v1711_v45, %v5101_v20  ;;  %v4156_v45 = vld [vmem:[#allocation10 + $0x10] ss:$8 sps:$4 sm:$0xff]  }
 0x3f3   :  { %v1762_v31 = vand.u32 2147483647, %v5175_v34 }
 0x3f4   :  { %v1763_v32 = vand.u32 2147483647, %v5179_v30  ;;  %v1800_v33 = vmax.f32.f32 %v1760_v10, %v1761_v26  ;;  %2261 = vmatpush1.bf16.msra.mxu0 %v4156_v45  ;;  %v4189_v45 = vld [vmem:[#allocation10 + $0xc0] ss:$8 sps:$4 sm:$0xff]  }
 0x3f6   :  { %v1715_v35 = vpop.f32.mrb[52].mxu0  ;;  %1801 = vmax.xlane.f32.xlu0 %v1800_v33  ;;  %v1803_v37 = vmax.f32.f32 %v1762_v31, %v1763_v32 }
 0x3f7   :  { %v5184_v39 = vadd.f32 %v1715_v35, %v5098_v28  ;;  %v1717_v40 = vpop.f32.mrb[53].mxu0 }
 0x3f8   :  { %v5187_v42 = vadd.f32 %v1717_v40, %v5101_v20  ;;  %v1719_v43 = vpop.f32.mrb[54].mxu0  ;;  %1804 = vmax.xlane.f32.xlu1 %v1803_v37 }
 0x3f9   :  { %v1764_v46 = vand.u32 2147483647, %v5184_v39  ;;  %v5191_v47 = vadd.f32 %v1719_v43, %v5098_v28  ;;  %v1721_v48 = vpop.f32.mrb[55].mxu0 }
 0x3fa   :  { %v1765_v49 = vand.u32 2147483647, %v5187_v42  ;;  %v5195_v50 = vadd.f32 %v1721_v48, %v5101_v20 }
 0x3fb   :  { %v1766_v52 = vand.u32 2147483647, %v5191_v47 }
 0x3fc   :  { %v1767_v55 = vand.u32 2147483647, %v5195_v50  ;;  %v1806_v56 = vmax.f32.f32 %v1764_v46, %v1765_v49  ;;  %v4159_v49 = vld [vmem:[#allocation10 + $0x20] ss:$8 sps:$4 sm:$0xff]  }
 0x3fe   :  { %v1725_v57 = vpop.f32.mrb[56].mxu0  ;;  %1807 = vmax.xlane.f32.xlu0 %v1806_v56  ;;  %v1809_v59 = vmax.f32.f32 %v1766_v52, %v1767_v55  ;;  %v4161_v52 = vld [vmem:[#allocation10 + $0x24] ss:$8 sps:$4 sm:$0xff]   ;;  %v4164_v56 = vld [vmem:[#allocation10 + $0x34] ss:$8 sps:$4 sm:$0xff]  }
 0x3ff   :  { %v5200_v60 = vadd.f32 %v1725_v57, %v5098_v28  ;;  %v1727_v62 = vpop.f32.mrb[57].mxu0  ;;  %2262 = vmatprep.subr.bf16.mxu0 %v4161_v52  ;;  %v4165_v57 = vld [vmem:[#allocation10 + $0x40] ss:$8 sps:$4 sm:$0xff]  }
 0x400   :  { %v5203_v63 = vadd.f32 %v1727_v62, %v5101_v20  ;;  %v1729_v0 = vpop.f32.mrb[58].mxu0  ;;  %1810 = vmax.xlane.f32.xlu1 %v1809_v59  ;;  %2263 = vmatpush1.bf16.msra.mxu0 %v4159_v49  ;;  %v4168_v59 = vld [vmem:[#allocation10 + $0x50] ss:$8 sps:$4 sm:$0xff]   ;;  %v4170_v62 = vld [vmem:[#allocation10 + $0x54] ss:$8 sps:$4 sm:$0xff]  }
 0x401   :  { %v1768_v1 = vand.u32 2147483647, %v5200_v60  ;;  %v5207_v2 = vadd.f32 %v1729_v0, %v5098_v28  ;;  %v1731_v5 = vpop.f32.mrb[59].mxu0  ;;  %2264 = vmatprep.subr.bf16.mxu0 %v4164_v56  ;;  %v4171_v0 = vld [vmem:[#allocation10 + $0x60] ss:$8 sps:$4 sm:$0xff]  }
 0x402   :  { %v1769_v11 = vand.u32 2147483647, %v5203_v63  ;;  %v5211_v12 = vadd.f32 %v1731_v5, %v5101_v20  ;;  %v4176_v5 = vld [vmem:[#allocation10 + $0x74] ss:$8 sps:$4 sm:$0xff]  }
 0x403   :  { %v1770_v15 = vand.u32 2147483647, %v5207_v2 }
 0x404   :  { %v1771_v16 = vand.u32 2147483647, %v5211_v12  ;;  %v1812_v18 = vmax.f32.f32 %v1768_v1, %v1769_v11  ;;  %v4173_v1 = vld [vmem:[#allocation10 + $0x64] ss:$8 sps:$4 sm:$0xff]   ;;  %v4174_v11 = vld [vmem:[#allocation10 + $0x70] ss:$8 sps:$4 sm:$0xff]  }
 0x406   :  { %v1735_v22 = vpop.f32.mrb[60].mxu0  ;;  %1813 = vmax.xlane.f32.xlu0 %v1812_v18  ;;  %v1815_v23 = vmax.f32.f32 %v1770_v15, %v1771_v16  ;;  %v4179_v15 = vld [vmem:[#allocation10 + $0x84] ss:$8 sps:$4 sm:$0xff]   ;;  %v4177_v16 = vld [vmem:[#allocation10 + $0x80] ss:$8 sps:$4 sm:$0xff]  }
 0x407   :  { %v5216_v8 = vadd.f32 %v1735_v22, %v5098_v28  ;;  %v1737_v10 = vpop.f32.mrb[61].mxu0  ;;  %v4182_v18 = vld [vmem:[#allocation10 + $0x94] ss:$8 sps:$4 sm:$0xff]   ;;  %v4183_v22 = vld [vmem:[#allocation10 + $0xa0] ss:$8 sps:$4 sm:$0xff]  }
 0x408   :  { %v5219_v26 = vadd.f32 %v1737_v10, %v5101_v20  ;;  %v1739_v31 = vpop.f32.mrb[62].mxu0  ;;  %1816 = vmax.xlane.f32.xlu1 %v1815_v23  ;;  %v4188_v23 = vld [vmem:[#allocation10 + $0xb4] ss:$8 sps:$4 sm:$0xff]   ;;  %v4191_v10 = vld [vmem:[#allocation10 + $0xc4] ss:$8 sps:$4 sm:$0xff]  }
 0x409   :  { %v1772_v32 = vand.u32 2147483647, %v5216_v8  ;;  %v5223_v33 = vadd.f32 %v1739_v31, %v5098_v28  ;;  %v1741_v35 = vpop.f32.mrb[63].mxu0  ;;  %v4162_v28 = vld [vmem:[#allocation10 + $0x30] ss:$8 sps:$4 sm:$0xff]  }
 0x40a   :  { %v1773_v37 = vand.u32 2147483647, %v5219_v26  ;;  %v5227_v40 = vadd.f32 %v1741_v35, %v5101_v20  ;;  %2265 = vmatpush1.bf16.msra.mxu0 %v4162_v28  ;;  %v4167_v20 = vld [vmem:[#allocation10 + $0x44] ss:$8 sps:$4 sm:$0xff]   ;;  %v4194_v31 = vld [vmem:[#allocation10 + $0xd4] ss:$8 sps:$4 sm:$0xff]  }
 0x40b   :  { %v1774_v43 = vand.u32 2147483647, %v5223_v33  ;;  %2266 = vmatprep.subr.bf16.mxu0 %v4167_v20  ;;  %v4197_v35 = vld [vmem:[#allocation10 + $0xe4] ss:$8 sps:$4 sm:$0xff]  }
 0x40c   :  { %v1775_v46 = vand.u32 2147483647, %v5227_v40  ;;  %v1818_v48 = vmax.f32.f32 %v1772_v32, %v1773_v37  ;;  %v4192_v32 = vld [vmem:[#allocation10 + $0xd0] ss:$8 sps:$4 sm:$0xff]   ;;  %v4195_v37 = vld [vmem:[#allocation10 + $0xe0] ss:$8 sps:$4 sm:$0xff]  }
 0x40e   :  { %1819 = vmax.xlane.f32.xlu0 %v1818_v48  ;;  %v1821_v55 = vmax.f32.f32 %v1774_v43, %v1775_v46  ;;  %2267 = vmatpush1.bf16.msra.mxu0 %v4165_v57  ;;  %v4200_v43 = vld [vmem:[#allocation10 + $0xf4] ss:$8 sps:$4 sm:$0xff]   ;;  %v4198_v46 = vld [vmem:[#allocation10 + $0xf0] ss:$8 sps:$4 sm:$0xff]  }
 0x40f   :  { %2268 = vmatprep.subr.bf16.mxu0 %v4170_v62 }
 0x410   :  { %1822 = vmax.xlane.f32.xlu1 %v1821_v55 }
 0x412   :  { %2269 = vmatpush1.bf16.msra.mxu0 %v4168_v59 }
 0x413   :  { %2270 = vmatprep.subr.bf16.mxu0 %v4173_v1 }
 0x416   :  { %2271 = vmatpush1.bf16.msra.mxu0 %v4171_v0 }
 0x417   :  { %2272 = vmatprep.subr.bf16.mxu0 %v4176_v5  ;;  %v4201_v5 = vld [vmem:[#allocation11 + $0x40] sm:$0xff]  }
 0x418   :  { %3643 = vmatprep.subr.bf16.mxu1 %v4201_v5  ;;  %v4207_v5 = vld [vmem:[#allocation11 + $0x58] sm:$0xff]  }
 0x41a   :  { %2273 = vmatpush1.bf16.msra.mxu0 %v4174_v11  ;;  %v4202_v11 = vld [vmem:[#allocation11] sm:$0xff]  }
 0x41b   :  { %2274 = vmatprep.subr.bf16.mxu0 %v4179_v15  ;;  %v4203_v15 = vld [vmem:[#allocation11 + $0x48] sm:$0xff]   ;;  %3644 = vmatpush3.bf16.msra.mxu1 %v4202_v11 }
 0x41c   :  { %3645 = vmatprep.subr.bf16.mxu1 %v4203_v15 }
 0x41e   :  { %2275 = vmatpush1.bf16.msra.mxu0 %v4177_v16 }
 0x41f   :  { %2276 = vmatprep.subr.bf16.mxu0 %v4182_v18 }
 0x422   :  { %2277 = vmatpush1.bf16.msra.mxu0 %v4180_v19 }
 0x423   :  { %2278 = vmatprep.subr.bf16.mxu0 %v4185_v21  ;;  %v4204_v21 = vld [vmem:[#allocation11 + $0x8] sm:$0xff]  }
 0x424   :  { %3646 = vmatpush3.bf16.msra.mxu1 %v4204_v21 }
 0x426   :  { %2279 = vmatpush1.bf16.msra.mxu0 %v4183_v22 }
 0x427   :  { %2280 = vmatprep.subr.bf16.mxu0 %v4188_v23 }
 0x42a   :  { %2281 = vmatpush1.bf16.msra.mxu0 %v4186_v25 }
 0x42b   :  { %2282 = vmatprep.subr.bf16.mxu0 %v4191_v10 }
 0x42e   :  { %2283 = vmatpush1.bf16.msra.mxu0 %v4189_v45  ;;  %v4205_v45 = vld [vmem:[#allocation11 + $0x50] sm:$0xff]  }
 0x42f   :  { %2284 = vmatprep.subr.bf16.mxu0 %v4194_v31  ;;  %3647 = vmatprep.subr.bf16.mxu1 %v4205_v45 }
 0x430   :  { %3648 = vmatpush3.bf16.msra.mxu1 %v4206_v6 }
 0x431   :  { %3649 = vmatprep.subr.bf16.mxu1 %v4207_v5  ;;  %v4387_v5 = vld [vmem:[#allocation2 + $0x40] sm:$0xff] }
 0x432   :  { %2285 = vmatpush1.bf16.msra.mxu0 %v4192_v32 }
 0x433   :  { %2286 = vmatprep.subr.bf16.mxu0 %v4197_v35 }
 0x436   :  { %2287 = vmatpush1.bf16.msra.mxu0 %v4195_v37 }
 0x437   :  { %2288 = vmatprep.subr.bf16.mxu0 %v4200_v43 }
 0x43a   :  { %2289 = vmatpush1.bf16.msra.mxu0 %v4198_v46 }
 0x463   :  { %v1778_v48 = vpop.xlane.xlu0 %1777 }
 0x467   :  { %v1781_v52 = vpop.xlane.xlu0 %1780 }
 0x46b   :  { %v1784_v49 = vpop.xlane.xlu1 %1783 }
 0x46f   :  { %v1787_v55 = vpop.xlane.xlu1 %1786 }
 0x473   :  { %v1790_v56 = vpop.xlane.xlu0 %1789 }
 0x474   :  { %v1824_v22 = vmax.f32 %v1778_v48, %v1790_v56  ;;  %v4209_v56 = vld [vmem:[#allocation11 + $0x60] sm:$0xff]  }
 0x475   :  { %v1793_v28 = vpop.xlane.xlu1 %1792 }
 0x476   :  { %v1825_v18 = vmax.f32 %v1781_v52, %v1793_v28 }
 0x47b   :  { %v1796_v57 = vpop.xlane.xlu0 %1795 }
 0x47c   :  { %v1826_v23 = vmax.f32 %v1784_v49, %v1796_v57  ;;  %v4208_v49 = vld [vmem:[#allocation11 + $0x18] sm:$0xff]  }
 0x47d   :  { %v1799_v20 = vpop.xlane.xlu1 %1798  ;;  %3650 = vmatpush3.bf16.msra.mxu1 %v4208_v49 }
 0x47e   :  { %v1827_v25 = vmax.f32 %v1787_v55, %v1799_v20  ;;  %v4210_v20 = vld [vmem:[#allocation11 + $0x20] sm:$0xff]   ;;  %3651 = vmatprep.subr.bf16.mxu1 %v4209_v56 }
 0x481   :  { %3652 = vmatpush3.bf16.msra.mxu1 %v4210_v20 }
 0x483   :  { %v1802_v59 = vpop.xlane.xlu0 %1801 }
 0x484   :  { %v1828_v32 = vmax.f32 %v1824_v22, %v1802_v59 }
 0x485   :  { %v1805_v62 = vpop.xlane.xlu1 %1804 }
 0x486   :  { %v1829_v10 = vmax.f32 %v1825_v18, %v1805_v62  ;;  %v4211_v62 = vld [vmem:[#allocation11 + $0x68] sm:$0xff]  }
 0x487   :  { %3653 = vmatprep.subr.bf16.mxu1 %v4211_v62 }
 0x48b   :  { %v1808_v0 = vpop.xlane.xlu0 %1807 }
 0x48c   :  { %v1830_v35 = vmax.f32 %v1826_v23, %v1808_v0 }
 0x48d   :  { %v1811_v1 = vpop.xlane.xlu1 %1810 }
 0x48e   :  { %v1831_v37 = vmax.f32 %v1827_v25, %v1811_v1  ;;  %v4212_v1 = vld [vmem:[#allocation11 + $0x28] sm:$0xff]  }
 0x48f   :  { %3654 = vmatpush3.bf16.msra.mxu1 %v4212_v1 }
 0x493   :  { %v1814_v16 = vpop.xlane.xlu0 %1813 }
 0x494   :  { %v1832_v4 = vmax.f32 %v1828_v32, %v1814_v16 }
 0x495   :  { %v1817_v19 = vpop.xlane.xlu1 %1816 }
 0x496   :  { %v1833_v43 = vmax.f32 %v1829_v10, %v1817_v19 }
 0x498   :  { %v1836_v11 = vmax.f32 %v1832_v4, %v1833_v43  ;;  %v4385_v43 = vld [vmem:[#allocation2 + $0x30] sm:$0xff] }
 0x49b   :  { %v1820_v31 = vpop.xlane.xlu0 %1819 }
 0x49c   :  { %v1834_v52 = vmax.f32 %v1830_v35, %v1820_v31  ;;  %v4383_v31 = vld [vmem:[#allocation2 + $0x20] sm:$0xff]  ;;  %v4384_v35 = vld [vmem:[#allocation2 + $0x28] sm:$0xff] }
 0x49d   :  { %v1823_v46 = vpop.xlane.xlu1 %1822 }
 0x49e   :  { %v1835_v28 = vmax.f32 %v1831_v37, %v1823_v46 }
 0x4a0   :  { %v1837_v48 = vmax.f32 %v1834_v52, %v1835_v28  ;;  %v4386_v52 = vld [vmem:[#allocation2 + $0x38] sm:$0xff] }
 0x4a2   :  { %v1838_v55 = vmax.f32 %v1836_v11, %v1837_v48  ;;  %v4388_v48 = vld [vmem:[#allocation2 + $0x48] sm:$0xff] }
 0x4a4   :  { %v1839_v57 = vrot.slane %v1838_v55, 4 }
 0x4a6   :  { %v1840_v59 = vmax.f32 %v1838_v55, %v1839_v57  ;;  %v4389_v55 = vld [vmem:[#allocation2 + $0x50] sm:$0xff]  ;;  %v4390_v57 = vld [vmem:[#allocation2 + $0x58] sm:$0xff] }
 0x4a8   :  { %v1841_v0 = vrot.slane %v1840_v59, 2 }
 0x4aa   :  { %v1842_v15 = vmax.f32 %v1840_v59, %v1841_v0  ;;  %v4391_v59 = vld [vmem:[#allocation2 + $0x60] sm:$0xff]  ;;  %v4392_v0 = vld [vmem:[#allocation2 + $0x68] sm:$0xff] }
 0x4ac   :  { %v1843_v16 = vrot.slane %v1842_v15, 1 }
 0x4ae   :  { %v1844_v4 = vmax.f32 %v1842_v15, %v1843_v16  ;;  %v4393_v15 = vld [vmem:[#allocation2 + $0x70] sm:$0xff] }
 0x4b0   :  { %4249 = vrcp.f32 %v1844_v4  ;;  %v4394_v4 = vld [vmem:[#allocation2 + $0x78] sm:$0xff] }
 0x4ba   :  { %v4250_v6 = vpop.eup %4249 }
 0x4bb   :  { %v1846_v18 = vmul.f32 %v4250_v6, %v5104_v54  ;;  %v1847_v19 = vmul.f32 %v4250_v6, %v5107_v13  ;;  %v5234_v21 = vmul.f32 %v4250_v6, %v5110_v9  ;;  %v5237_v22 = vmul.f32 %v4250_v6, %v5114_v29 }
 0x4bc   :  { %v5240_v23 = vmul.f32 %v4250_v6, %v5120_v36  ;;  %v5243_v25 = vmul.f32 %v4250_v6, %v5123_v38  ;;  %v5246_v10 = vmul.f32 %v4250_v6, %v5126_v41  ;;  %v5249_v45 = vmul.f32 %v4250_v6, %v5130_v44 }
 0x4bd   :  { %v5252_v54 = vmul.f32 %v4250_v6, %v5136_v51  ;;  %v5255_v13 = vmul.f32 %v4250_v6, %v5139_v53  ;;  %v5258_v9 = vmul.f32 %v4250_v6, %v5143_v58  ;;  %v5261_v29 = vmul.f32 %v4250_v6, %v5147_v61  ;;  %1878 = vst [vmem:[#allocation18] sm:$0xff] %v1846_v18 }
 0x4be   :  { %1879 = vst [vmem:[#allocation18 + $0x8] sm:$0xff] %v1847_v19  ;;  %1880 = vst [vmem:[#allocation18 + $0x10] sm:$0xff] %v5234_v21  ;;  %v5266_v36 = vmul.f32 %v4250_v6, %v5152_v3  ;;  %v5269_v38 = vmul.f32 %v4250_v6, %v5155_v7  ;;  %v5272_v41 = vmul.f32 %v4250_v6, %v5159_v14 }
 0x4bf   :  { %1881 = vst [vmem:[#allocation18 + $0x18] sm:$0xff] %v5237_v22  ;;  %v5275_v44 = vmul.f32 %v4250_v6, %v5163_v17  ;;  %1882 = vst [vmem:[#allocation18 + $0x20] sm:$0xff] %v5240_v23  ;;  %v5282_v51 = vmul.f32 %v4250_v6, %v5168_v24  ;;  %v5285_v53 = vmul.f32 %v4250_v6, %v5171_v27 }
 0x4c0   :  { %1883 = vst [vmem:[#allocation18 + $0x28] sm:$0xff] %v5243_v25  ;;  %1884 = vst [vmem:[#allocation18 + $0x30] sm:$0xff] %v5246_v10  ;;  %v5288_v58 = vmul.f32 %v4250_v6, %v5175_v34  ;;  %v5291_v61 = vmul.f32 %v4250_v6, %v5179_v30  ;;  %v5298_v3 = vmul.f32 %v4250_v6, %v5184_v39 }
 0x4c1   :  { %1885 = vst [vmem:[#allocation18 + $0x38] sm:$0xff] %v5249_v45  ;;  %1886 = vst [vmem:[#allocation18 + $0x40] sm:$0xff] %v5252_v54  ;;  %v5301_v7 = vmul.f32 %v4250_v6, %v5187_v42  ;;  %v5304_v14 = vmul.f32 %v4250_v6, %v5191_v47  ;;  %v5307_v17 = vmul.f32 %v4250_v6, %v5195_v50 }
 0x4c2   :  { %1887 = vst [vmem:[#allocation18 + $0x48] sm:$0xff] %v5255_v13  ;;  %1888 = vst [vmem:[#allocation18 + $0x50] sm:$0xff] %v5258_v9  ;;  %v5314_v24 = vmul.f32 %v4250_v6, %v5200_v60  ;;  %v5317_v27 = vmul.f32 %v4250_v6, %v5203_v63  ;;  %v5320_v34 = vmul.f32 %v4250_v6, %v5207_v2  ;;  %v4379_v60 = vld [vmem:[#allocation2] sm:$0xff]  ;;  %v4380_v2 = vld [vmem:[#allocation2 + $0x8] sm:$0xff] }
 0x4c3   :  { %1889 = vst [vmem:[#allocation18 + $0x58] sm:$0xff] %v5261_v29  ;;  %1890 = vst [vmem:[#allocation18 + $0x60] sm:$0xff] %v5266_v36  ;;  %v5323_v30 = vmul.f32 %v4250_v6, %v5211_v12  ;;  %v5330_v39 = vmul.f32 %v4250_v6, %v5216_v8  ;;  %v5333_v42 = vmul.f32 %v4250_v6, %v5219_v26  ;;  %v4381_v8 = vld [vmem:[#allocation2 + $0x10] sm:$0xff] }
 0x4c4   :  { %1891 = vst [vmem:[#allocation18 + $0x68] sm:$0xff] %v5269_v38  ;;  %1892 = vst [vmem:[#allocation18 + $0x70] sm:$0xff] %v5272_v41  ;;  %v5336_v47 = vmul.f32 %v4250_v6, %v5223_v33  ;;  %v5339_v50 = vmul.f32 %v4250_v6, %v5227_v40  ;;  %v5349_v63 = vadd.f32 %v4379_v60, %v1846_v18  ;;  %v4382_v33 = vld [vmem:[#allocation2 + $0x18] sm:$0xff]  ;;  %v4395_v18 = vld [vmem:[#allocation2 + $0x80] sm:$0xff] }
 0x4c5   :  { %1893 = vst [vmem:[#allocation18 + $0x78] sm:$0xff] %v5275_v44  ;;  %1894 = vst [vmem:[#allocation18 + $0x80] sm:$0xff] %v5282_v51  ;;  %v5351_v12 = vadd.f32 %v4380_v2, %v1847_v19  ;;  %v5354_v26 = vadd.f32 %v4381_v8, %v5234_v21  ;;  %v5357_v40 = vadd.f32 %v4382_v33, %v5237_v22  ;;  %v4396_v21 = vld [vmem:[#allocation2 + $0x88] sm:$0xff]  ;;  %v4406_v60 = vld [vmem:[#allocation2 + $0xd8] sm:$0xff] }
 0x4c6   :  { %1895 = vst [vmem:[#allocation18 + $0x88] sm:$0xff] %v5285_v53  ;;  %1896 = vst [vmem:[#allocation18 + $0x90] sm:$0xff] %v5288_v58  ;;  %v5364_v32 = vadd.f32 %v4383_v31, %v5240_v23  ;;  %v5367_v37 = vadd.f32 %v4384_v35, %v5243_v25  ;;  %v5370_v46 = vadd.f32 %v4385_v43, %v5246_v10  ;;  %v4397_v23 = vld [vmem:[#allocation2 + $0x90] sm:$0xff]  ;;  %v4398_v10 = vld [vmem:[#allocation2 + $0x98] sm:$0xff]  ;;  %v1942_v35 = vmax.f32 %v5349_v63, 0.0 }
 0x4c7   :  { %1897 = vst [vmem:[#allocation18 + $0x98] sm:$0xff] %v5291_v61  ;;  %1898 = vst [vmem:[#allocation18 + $0xa0] sm:$0xff] %v5298_v3  ;;  %v5373_v28 = vadd.f32 %v4386_v52, %v5249_v45  ;;  %v5376_v11 = vadd.f32 %v4387_v5, %v5252_v54  ;;  %v5379_v49 = vadd.f32 %v4388_v48, %v5255_v13  ;;  %v4399_v54 = vld [vmem:[#allocation2 + $0xa0] sm:$0xff]  ;;  %v4408_v8 = vld [vmem:[#allocation2 + $0xe8] sm:$0xff]  ;;  %v1944_v43 = vmax.f32 %v5354_v26, 0.0 }
 0x4c8   :  { %1899 = vst [vmem:[#allocation18 + $0xa8] sm:$0xff] %v5301_v7  ;;  %1900 = vst [vmem:[#allocation18 + $0xb0] sm:$0xff] %v5304_v14  ;;  %v5382_v56 = vadd.f32 %v4389_v55, %v5258_v9  ;;  %v5385_v20 = vadd.f32 %v4390_v57, %v5261_v29  ;;  %v5388_v62 = vadd.f32 %v4391_v59, %v5266_v36  ;;  %v4400_v9 = vld [vmem:[#allocation2 + $0xa8] sm:$0xff]  ;;  %v4401_v36 = vld [vmem:[#allocation2 + $0xb0] sm:$0xff]  ;;  %v1946_v52 = vmax.f32 %v5364_v32, 0.0 }
 0x4c9   :  { %1901 = vst [vmem:[#allocation18 + $0xb8] sm:$0xff] %v5307_v17  ;;  %1902 = vst [vmem:[#allocation18 + $0xc0] sm:$0xff] %v5314_v24  ;;  %v5391_v1 = vadd.f32 %v4392_v0, %v5269_v38  ;;  %v5394_v16 = vadd.f32 %v4393_v15, %v5272_v41  ;;  %v5397_v6 = vadd.f32 %v4394_v4, %v5275_v44  ;;  %v4402_v41 = vld [vmem:[#allocation2 + $0xb8] sm:$0xff]  ;;  %v4407_v2 = vld [vmem:[#allocation2 + $0xe0] sm:$0xff]  ;;  %v1948_v5 = vmax.f32 %v5370_v46, 0.0 }
 0x4ca   :  { %1903 = vst [vmem:[#allocation18 + $0xc8] sm:$0xff] %v5317_v27  ;;  %1904 = vst [vmem:[#allocation18 + $0xd0] sm:$0xff] %v5320_v34  ;;  %v5400_v19 = vadd.f32 %v4395_v18, %v5282_v51  ;;  %v5403_v22 = vadd.f32 %v4396_v21, %v5285_v53  ;;  %v5406_v25 = vadd.f32 %v4397_v23, %v5288_v58  ;;  %v4403_v51 = vld [vmem:[#allocation2 + $0xc0] sm:$0xff]  ;;  %v4404_v58 = vld [vmem:[#allocation2 + $0xc8] sm:$0xff]  ;;  %v1950_v48 = vmax.f32 %v5376_v11, 0.0 }
 0x4cb   :  { %1905 = vst [vmem:[#allocation18 + $0xd8] sm:$0xff] %v5323_v30  ;;  %1906 = vst [vmem:[#allocation18 + $0xe0] sm:$0xff] %v5330_v39  ;;  %v5409_v45 = vadd.f32 %v4398_v10, %v5291_v61  ;;  %v5412_v13 = vadd.f32 %v4399_v54, %v5298_v3  ;;  %v5415_v29 = vadd.f32 %v4400_v9, %v5301_v7  ;;  %v4405_v3 = vld [vmem:[#allocation2 + $0xd0] sm:$0xff]  ;;  %v4410_v31 = vld [vmem:[#allocation2 + $0xf8] sm:$0xff]  ;;  %v1952_v63 = vmax.f32 %v5382_v56, 0.0 }
 0x4cc   :  { %1907 = vst [vmem:[#allocation18 + $0xe8] sm:$0xff] %v5333_v42  ;;  %1908 = vst [vmem:[#allocation18 + $0xf0] sm:$0xff] %v5336_v47  ;;  %v5418_v38 = vadd.f32 %v4401_v36, %v5304_v14  ;;  %v5421_v44 = vadd.f32 %v4402_v41, %v5307_v17  ;;  %v5424_v53 = vadd.f32 %v4403_v51, %v5314_v24  ;;  %v4409_v33 = vld [vmem:[#allocation2 + $0xf0] sm:$0xff]  ;;  %v1954_v26 = vmax.f32 %v5388_v62, 0.0 }
 0x4cd   :  { %1909 = vst [vmem:[#allocation18 + $0xf8] sm:$0xff] %v5339_v50  ;;  %v5427_v61 = vadd.f32 %v4404_v58, %v5317_v27  ;;  %v5430_v7 = vadd.f32 %v4405_v3, %v5320_v34  ;;  %v5433_v14 = vadd.f32 %v4406_v60, %v5323_v30  ;;  %v5436_v17 = vadd.f32 %v4407_v2, %v5330_v39 }
 0x4ce   :  { %v5439_v24 = vadd.f32 %v4408_v8, %v5333_v42  ;;  %v5442_v27 = vadd.f32 %v4409_v33, %v5336_v47  ;;  %v5445_v34 = vadd.f32 %v4410_v31, %v5339_v50  ;;  %v1943_v30 = vmax.f32 %v5351_v12, 0.0 }
 0x4cf   :  { %v1945_v39 = vmax.f32 %v5357_v40, 0.0  ;;  %v1947_v42 = vmax.f32 %v5367_v37, 0.0  ;;  %v1949_v47 = vmax.f32 %v5373_v28, 0.0  ;;  %v1951_v50 = vmax.f32 %v5379_v49, 0.0 }
 0x4d0   :  { %v1953_v12 = vmax.f32 %v5385_v20, 0.0  ;;  %v1955_v40 = vmax.f32 %v5391_v1, 0.0  ;;  %v1956_v32 = vmax.f32 %v5394_v16, 0.0  ;;  %v1957_v37 = vmax.f32 %v5397_v6, 0.0 }
 0x4d1   :  { %v1958_v46 = vmax.f32 %v5400_v19, 0.0  ;;  %v1959_v28 = vmax.f32 %v5403_v22, 0.0  ;;  %v1960_v11 = vmax.f32 %v5406_v25, 0.0  ;;  %v1961_v49 = vmax.f32 %v5409_v45, 0.0 }
 0x4d2   :  { %v1962_v55 = vmax.f32 %v5412_v13, 0.0  ;;  %v1963_v56 = vmax.f32 %v5415_v29, 0.0  ;;  %v1964_v57 = vmax.f32 %v5418_v38, 0.0  ;;  %v1965_v20 = vmax.f32 %v5421_v44, 0.0 }
 0x4d3   :  { %v1966_v59 = vmax.f32 %v5424_v53, 0.0  ;;  %v1967_v62 = vmax.f32 %v5427_v61, 0.0  ;;  %v1968_v0 = vmax.f32 %v5430_v7, 0.0  ;;  %v1969_v1 = vmax.f32 %v5433_v14, 0.0 }
 0x4d4   :  { %v1970_v15 = vmax.f32 %v5436_v17, 0.0  ;;  %v1971_v16 = vmax.f32 %v5439_v24, 0.0  ;;  %v1972_v4 = vmax.f32 %v5442_v27, 0.0  ;;  %v1973_v6 = vmax.f32 %v5445_v34, 0.0 }
 0x4d5   :  { %v1974_v18 = vmin.f32 %v1942_v35, 1.0  ;;  %v1975_v19 = vmin.f32 %v1943_v30, 1.0  ;;  %v1976_v21 = vmin.f32 %v1944_v43, 1.0  ;;  %v1977_v22 = vmin.f32 %v1945_v39, 1.0 }
 0x4d6   :  { %v5479_v23 = vmin.f32 %v1946_v52, 1.0  ;;  %v1979_v25 = vmin.f32 %v1947_v42, 1.0  ;;  %v5481_v10 = vmin.f32 %v1948_v5, 1.0  ;;  %v1981_v45 = vmin.f32 %v1949_v47, 1.0 }
 0x4d7   :  { %v5483_v54 = vmin.f32 %v1950_v48, 1.0  ;;  %v1983_v13 = vmin.f32 %v1951_v50, 1.0  ;;  %v5485_v9 = vmin.f32 %v1952_v63, 1.0  ;;  %v1985_v29 = vmin.f32 %v1953_v12, 1.0  ;;  %2006 = vst [vmem:[#allocation17] sm:$0xff] %v1974_v18  ;;  %2007 = vst [vmem:[#allocation17 + $0x8] sm:$0xff] %v1975_v19 }
 0x4d8   :  { %2008 = vst [vmem:[#allocation17 + $0x10] sm:$0xff] %v1976_v21  ;;  %2009 = vst [vmem:[#allocation17 + $0x18] sm:$0xff] %v1977_v22  ;;  %v1986_v36 = vmin.f32 %v1954_v26, 1.0  ;;  %v1987_v38 = vmin.f32 %v1955_v40, 1.0  ;;  %v1988_v41 = vmin.f32 %v1956_v32, 1.0  ;;  %v1989_v44 = vmin.f32 %v1957_v37, 1.0 }
 0x4d9   :  { %2010 = vst [vmem:[#allocation17 + $0x20] sm:$0xff] %v5479_v23  ;;  %2011 = vst [vmem:[#allocation17 + $0x28] sm:$0xff] %v1979_v25  ;;  %v1990_v51 = vmin.f32 %v1958_v46, 1.0  ;;  %v1991_v53 = vmin.f32 %v1959_v28, 1.0  ;;  %v1992_v58 = vmin.f32 %v1960_v11, 1.0  ;;  %v1993_v61 = vmin.f32 %v1961_v49, 1.0 }
 0x4da   :  { %2012 = vst [vmem:[#allocation17 + $0x30] sm:$0xff] %v5481_v10  ;;  %2013 = vst [vmem:[#allocation17 + $0x38] sm:$0xff] %v1981_v45  ;;  %v1994_v3 = vmin.f32 %v1962_v55, 1.0  ;;  %v1995_v7 = vmin.f32 %v1963_v56, 1.0  ;;  %v1996_v60 = vmin.f32 %v1964_v57, 1.0  ;;  %v1997_v14 = vmin.f32 %v1965_v20, 1.0 }
 0x4db   :  { %2014 = vst [vmem:[#allocation17 + $0x40] sm:$0xff] %v5483_v54  ;;  %2015 = vst [vmem:[#allocation17 + $0x48] sm:$0xff] %v1983_v13  ;;  %v1998_v2 = vmin.f32 %v1966_v59, 1.0  ;;  %v1999_v17 = vmin.f32 %v1967_v62, 1.0  ;;  %v2000_v8 = vmin.f32 %v1968_v0, 1.0  ;;  %v2001_v24 = vmin.f32 %v1969_v1, 1.0 }
 0x4dc   :  { %2016 = vst [vmem:[#allocation17 + $0x50] sm:$0xff] %v5485_v9  ;;  %2017 = vst [vmem:[#allocation17 + $0x58] sm:$0xff] %v1985_v29  ;;  %v2002_v33 = vmin.f32 %v1970_v15, 1.0  ;;  %v2003_v27 = vmin.f32 %v1971_v16, 1.0  ;;  %v2004_v31 = vmin.f32 %v1972_v4, 1.0  ;;  %v2005_v34 = vmin.f32 %v1973_v6, 1.0 }
 0x4dd   :  { %2018 = vst [vmem:[#allocation17 + $0x60] sm:$0xff] %v1986_v36  ;;  %2019 = vst [vmem:[#allocation17 + $0x68] sm:$0xff] %v1987_v38  ;;  %v5491_v35 = vpack.c.bf16 %v1976_v21, %v1974_v18  ;;  %v5493_v30 = vpack.c.bf16 %v1977_v22, %v1975_v19  ;;  %v5496_v43 = vpack.c.bf16 %v1981_v45, %v1979_v25  ;;  %v4213_v46 = vld [vmem:[#allocation11 + $0x70] sm:$0xff]   ;;  %v4215_v11 = vld [vmem:[#allocation11 + $0x78] sm:$0xff]  }
 0x4de   :  { %2020 = vst [vmem:[#allocation17 + $0x70] sm:$0xff] %v1988_v41  ;;  %2021 = vst [vmem:[#allocation17 + $0x78] sm:$0xff] %v1989_v44  ;;  %v5502_v39 = vpack.c.bf16 %v5481_v10, %v5479_v23  ;;  %v5504_v52 = vpack.c.bf16 %v1985_v29, %v1983_v13  ;;  %v5510_v42 = vpack.c.bf16 %v5485_v9, %v5483_v54  ;;  %v4214_v28 = vld [vmem:[#allocation11 + $0x30] sm:$0xff]   ;;  %3655 = vmatprep.subr.bf16.mxu1 %v4213_v46  ;;  %v4216_v49 = vld [vmem:[#allocation11 + $0x38] sm:$0xff]  }
 0x4df   :  { %2022 = vst [vmem:[#allocation17 + $0x80] sm:$0xff] %v1990_v51  ;;  %2023 = vst [vmem:[#allocation17 + $0x88] sm:$0xff] %v1991_v53  ;;  %2290 = vmatprep.mubr.bf16.mxu0 %v5493_v30  ;;  %v5512_v5 = vpack.c.bf16 %v1989_v44, %v1987_v38  ;;  %v5516_v47 = vpack.c.bf16 %v1988_v41, %v1986_v36  ;;  %v5518_v48 = vpack.c.bf16 %v1993_v61, %v1991_v53  ;;  %v5543_v55 = vld [vmem:[#allocation16 + $0x40] sm:$0xff]   ;;  %v4234_v20 = vld [vmem:[#allocation13 + $0x8] sm:$0xff]  }
 0x4e0   :  { %2024 = vst [vmem:[#allocation17 + $0x90] sm:$0xff] %v1992_v58  ;;  %2025 = vst [vmem:[#allocation17 + $0x98] sm:$0xff] %v1993_v61  ;;  %2291 = vmatmul.mubr.bf16.vlgmr.msra.gmra.mrb[64].mxu0 %v5491_v35  ;;  %v5522_v50 = vpack.c.bf16 %v1992_v58, %v1990_v51  ;;  %v5524_v63 = vpack.c.bf16 %v1997_v14, %v1995_v7  ;;  %v5528_v12 = vpack.c.bf16 %v1996_v60, %v1994_v3  ;;  %v2086_v56 = vld [vmem:[%s5805_s8] sm:$0x3]  ;;  %v5846_v0 = vld [vmem:[#allocation32_spill] sm:$0xff] }
 0x4e1   :  { %2026 = vst [vmem:[#allocation17 + $0xa0] sm:$0xff] %v1994_v3  ;;  %2027 = vst [vmem:[#allocation17 + $0xa8] sm:$0xff] %v1995_v7  ;;  %2300 = vmatprep.mubr.bf16.mxu0 %v5496_v43  ;;  %v5530_v26 = vpack.c.bf16 %v2001_v24, %v1999_v17  ;;  %v5534_v40 = vpack.c.bf16 %v2000_v8, %v1998_v2  ;;  %v5536_v32 = vpack.c.bf16 %v2005_v34, %v2003_v27  ;;  %v4233_v57 = vld [vmem:[#allocation13] sm:$0xff]  }
 0x4e2   :  { %2028 = vst [vmem:[#allocation17 + $0xb0] sm:$0xff] %v1996_v60  ;;  %2029 = vst [vmem:[#allocation17 + $0xb8] sm:$0xff] %v1997_v14  ;;  %v5540_v37 = vpack.c.bf16 %v2004_v31, %v2002_v33  ;;  %3656 = vmatpush3.bf16.msra.mxu1 %v4214_v28  ;;  %v5845_v59 = vld [vmem:[#allocation31_spill] sm:$0xff]  ;;  %v5553_v1 = vrot.slane %v2086_v56, %v5846_v0  ;;  %3803 = vmatprep.subr.bf16.mxu0 %v4233_v57 }
 0x4e3   :  { %2030 = vst [vmem:[#allocation17 + $0xc0] sm:$0xff] %v1998_v2  ;;  %2031 = vst [vmem:[#allocation17 + $0xc8] sm:$0xff] %v1999_v17  ;;  %3657 = vmatprep.subr.bf16.mxu1 %v4215_v11  ;;  %v5550_v62 = vrot.slane %v2086_v56, %v5845_v59  ;;  %3804 = vmatpush3.bf16.msra.mxu0 %v4233_v57  ;;  %v5564_v7 = vld [vmem:[#allocation16] sm:$0xff]   ;;  %v5567_v2 = vld [vmem:[#allocation16 + $0x48] sm:$0xff]  }
 0x4e4   :  { %2032 = vst [vmem:[#allocation17 + $0xd0] sm:$0xff] %v2000_v8  ;;  %2033 = vst [vmem:[#allocation17 + $0xd8] sm:$0xff] %v2001_v24  ;;  %3805 = vmatprep.subr.bf16.mxu0 %v4234_v20  ;;  %v5579_v59 = vld [vmem:[#allocation16 + $0x10] sm:$0xff]  }
 0x4e5   :  { %2034 = vst [vmem:[#allocation17 + $0xe0] sm:$0xff] %v2002_v33  ;;  %2035 = vst [vmem:[#allocation17 + $0xe8] sm:$0xff] %v2003_v27  ;;  %v5572_v27 = vld [vmem:[#allocation16 + $0x8] sm:$0xff]  }
 0x4e6   :  { %2036 = vst [vmem:[#allocation17 + $0xf0] sm:$0xff] %v2004_v31  ;;  %2037 = vst [vmem:[#allocation17 + $0xf8] sm:$0xff] %v2005_v34  ;;  %3658 = vmatpush3.bf16.msra.mxu1 %v4216_v49  ;;  %v5575_v34 = vld [vmem:[#allocation16 + $0x50] sm:$0xff]  }
 0x4e7   :  { %3867 = vmatprep.subr.bf16.mxu1 %v5543_v55  ;;  %3806 = vmatpush3.bf16.msra.mxu0 %v4234_v20 }
 0x4e8   :  { %2301 = vmatmul.mubr.bf16.gmra.mrb[68].mxu0 %v5502_v39 }
 0x4e9   :  { %2310 = vmatprep.mubr.bf16.mxu0 %v5504_v52 }
 0x4f0   :  { %2311 = vmatmul.mubr.bf16.gmra.mrb[72].mxu0 %v5510_v42 }
 0x4f1   :  { %2320 = vmatprep.mubr.bf16.mxu0 %v5512_v5 }
 0x4f8   :  { %2321 = vmatmul.mubr.bf16.gmra.mrb[76].mxu0 %v5516_v47 }
 0x4f9   :  { %2330 = vmatprep.mubr.bf16.mxu0 %v5518_v48 }
 0x500   :  { %2331 = vmatmul.mubr.bf16.gmra.mrb[80].mxu0 %v5522_v50 }
 0x501   :  { %2340 = vmatprep.mubr.bf16.mxu0 %v5524_v63 }
 0x508   :  { %2341 = vmatmul.mubr.bf16.gmra.mrb[84].mxu0 %v5528_v12 }
 0x509   :  { %2350 = vmatprep.mubr.bf16.mxu0 %v5530_v26 }
 0x510   :  { %2351 = vmatmul.mubr.bf16.gmra.mrb[88].mxu0 %v5534_v40 }
 0x511   :  { %2360 = vmatprep.mubr.bf16.mxu0 %v5536_v32 }
 0x518   :  { %2361 = vmatmul.mubr.bf16.gmra.mrb[92].mxu0 %v5540_v37 }
 0x5b3   :  { %v2292_v15 = vpop.f32.mrb[64].mxu0 }
 0x5b4   :  { %v2293_v16 = vadd.f32 %v2292_v15, %v5550_v62  ;;  %v2294_v4 = vpop.f32.mrb[65].mxu0 }
 0x5b5   :  { %v2295_v6 = vadd.f32 %v2294_v4, %v5553_v1  ;;  %v2296_v18 = vpop.f32.mrb[66].mxu0 }
 0x5b6   :  { %4251 = vtanh.f32 %v2293_v16  ;;  %v2297_v19 = vadd.f32 %v2296_v18, %v5550_v62  ;;  %v2298_v21 = vpop.f32.mrb[67].mxu0  ;;  %v5583_v16 = vld [vmem:[#allocation16 + $0x58] sm:$0xff]  }
 0x5b7   :  { %4253 = vtanh.f32 %v2295_v6  ;;  %v2299_v22 = vadd.f32 %v2298_v21, %v5553_v1  ;;  %v5588_v21 = vld [vmem:[#allocation16 + $0x18] sm:$0xff]  }
 0x5b8   :  { %4255 = vtanh.f32 %v2297_v19 }
 0x5b9   :  { %4257 = vtanh.f32 %v2299_v22 }
 0x5bb   :  { %v2302_v23 = vpop.f32.mrb[68].mxu0 }
 0x5bc   :  { %v2303_v25 = vadd.f32 %v2302_v23, %v5550_v62  ;;  %v2304_v10 = vpop.f32.mrb[69].mxu0  ;;  %v5591_v23 = vld [vmem:[#allocation16 + $0x60] sm:$0xff]  }
 0x5bd   :  { %v2305_v45 = vadd.f32 %v2304_v10, %v5553_v1  ;;  %v2306_v54 = vpop.f32.mrb[70].mxu0 }
 0x5be   :  { %4259 = vtanh.f32 %v2303_v25  ;;  %v2307_v13 = vadd.f32 %v2306_v54, %v5550_v62  ;;  %v2308_v9 = vpop.f32.mrb[71].mxu0 }
 0x5bf   :  { %4261 = vtanh.f32 %v2305_v45  ;;  %v2309_v29 = vadd.f32 %v2308_v9, %v5553_v1 }
 0x5c0   :  { %v4252_v36 = vpop.eup %4251  ;;  %4263 = vtanh.f32 %v2307_v13 }
 0x5c1   :  { %v4254_v38 = vpop.eup %4253  ;;  %4265 = vtanh.f32 %v2309_v29 }
 0x5c2   :  { %v4256_v41 = vpop.eup %4255 }
 0x5c3   :  { %v4258_v44 = vpop.eup %4257  ;;  %v2312_v51 = vpop.f32.mrb[72].mxu0  ;;  %v2403_v53 = vpack.c.bf16 %v4256_v41, %v4252_v36  ;;  %v5595_v36 = vld [vmem:[#allocation16 + $0x20] sm:$0xff]  }
 0x5c4   :  { %v2313_v58 = vadd.f32 %v2312_v51, %v5550_v62  ;;  %v2314_v61 = vpop.f32.mrb[73].mxu0  ;;  %v2404_v3 = vpack.c.bf16 %v4258_v44, %v4254_v38  ;;  %v5599_v44 = vld [vmem:[#allocation16 + $0x68] sm:$0xff]  }
 0x5c5   :  { %v2315_v60 = vadd.f32 %v2314_v61, %v5553_v1  ;;  %v2316_v14 = vpop.f32.mrb[74].mxu0 }
 0x5c6   :  { %4267 = vtanh.f32 %v2313_v58  ;;  %v2317_v17 = vadd.f32 %v2316_v14, %v5550_v62  ;;  %v2318_v8 = vpop.f32.mrb[75].mxu0  ;;  %2586 = vmatprep.mubr.bf16.mxu1 %v2404_v3  ;;  %v5604_v3 = vld [vmem:[#allocation16 + $0x28] sm:$0xff]   ;;  %v5607_v14 = vld [vmem:[#allocation16 + $0x70] sm:$0xff]  }
 0x5c7   :  { %4269 = vtanh.f32 %v2315_v60  ;;  %v2319_v24 = vadd.f32 %v2318_v8, %v5553_v1  ;;  %2587 = vmatmul.mubr.bf16.vlgmr.msra.gmra.mrb[64].mxu1 %v2403_v53 }
 0x5c8   :  { %v4260_v33 = vpop.eup %4259  ;;  %4271 = vtanh.f32 %v2317_v17  ;;  %3875 = vmatpush3.bf16.msra.mxu1 %v5564_v7 }
 0x5c9   :  { %v4262_v31 = vpop.eup %4261  ;;  %4273 = vtanh.f32 %v2319_v24  ;;  %3868 = vmatprep.subr.bf16.mxu1 %v5567_v2 }
 0x5ca   :  { %v4264_v46 = vpop.eup %4263 }
 0x5cb   :  { %v4266_v28 = vpop.eup %4265  ;;  %v2322_v11 = vpop.f32.mrb[76].mxu0  ;;  %v2405_v49 = vpack.c.bf16 %v4264_v46, %v4260_v33 }
 0x5cc   :  { %v2323_v56 = vadd.f32 %v2322_v11, %v5550_v62  ;;  %v2324_v57 = vpop.f32.mrb[77].mxu0  ;;  %v2406_v20 = vpack.c.bf16 %v4266_v28, %v4262_v31  ;;  %3876 = vmatpush3.bf16.msra.mxu1 %v5572_v27  ;;  %v5611_v11 = vld [vmem:[#allocation16 + $0x30] sm:$0xff]  }
 0x5cd   :  { %v2325_v0 = vadd.f32 %v2324_v57, %v5553_v1  ;;  %v2326_v15 = vpop.f32.mrb[78].mxu0  ;;  %3869 = vmatprep.subr.bf16.mxu1 %v5575_v34  ;;  %v5615_v57 = vld [vmem:[#allocation16 + $0x78] sm:$0xff]  }
 0x5ce   :  { %4275 = vtanh.f32 %v2323_v56  ;;  %v2327_v4 = vadd.f32 %v2326_v15, %v5550_v62  ;;  %v2328_v6 = vpop.f32.mrb[79].mxu0  ;;  %2594 = vmatprep.mubr.bf16.mxu1 %v2406_v20 }
 0x5cf   :  { %4277 = vtanh.f32 %v2325_v0  ;;  %v2329_v18 = vadd.f32 %v2328_v6, %v5553_v1  ;;  %2595 = vmatmul.mubr.bf16.gmra.mrb[68].mxu1 %v2405_v49  ;;  %v5620_v6 = vld [vmem:[#allocation16 + $0x38] sm:$0xff]  }
 0x5d0   :  { %v4268_v19 = vpop.eup %4267  ;;  %4279 = vtanh.f32 %v2327_v4  ;;  %3877 = vmatpush3.bf16.msra.mxu1 %v5579_v59 }
 0x5d1   :  { %v4270_v22 = vpop.eup %4269  ;;  %4281 = vtanh.f32 %v2329_v18  ;;  %3870 = vmatprep.subr.bf16.mxu1 %v5583_v16 }
 0x5d2   :  { %v4272_v25 = vpop.eup %4271 }
 0x5d3   :  { %v4274_v10 = vpop.eup %4273  ;;  %v2332_v45 = vpop.f32.mrb[80].mxu0  ;;  %v2407_v54 = vpack.c.bf16 %v4272_v25, %v4268_v19 }
 0x5d4   :  { %v2333_v13 = vadd.f32 %v2332_v45, %v5550_v62  ;;  %v2334_v9 = vpop.f32.mrb[81].mxu0  ;;  %v2408_v29 = vpack.c.bf16 %v4274_v10, %v4270_v22  ;;  %3878 = vmatpush3.bf16.msra.mxu1 %v5588_v21 }
 0x5d5   :  { %v2335_v38 = vadd.f32 %v2334_v9, %v5553_v1  ;;  %v2336_v41 = vpop.f32.mrb[82].mxu0  ;;  %3871 = vmatprep.subr.bf16.mxu1 %v5591_v23 }
 0x5d6   :  { %4283 = vtanh.f32 %v2333_v13  ;;  %v2337_v51 = vadd.f32 %v2336_v41, %v5550_v62  ;;  %v2338_v53 = vpop.f32.mrb[83].mxu0  ;;  %2602 = vmatprep.mubr.bf16.mxu1 %v2408_v29 }
 0x5d7   :  { %4285 = vtanh.f32 %v2335_v38  ;;  %v2339_v58 = vadd.f32 %v2338_v53, %v5553_v1  ;;  %2603 = vmatmul.mubr.bf16.gmra.mrb[72].mxu1 %v2407_v54 }
 0x5d8   :  { %v4276_v61 = vpop.eup %4275  ;;  %4287 = vtanh.f32 %v2337_v51  ;;  %3879 = vmatpush3.bf16.msra.mxu1 %v5595_v36 }
 0x5d9   :  { %v4278_v60 = vpop.eup %4277  ;;  %4289 = vtanh.f32 %v2339_v58  ;;  %3872 = vmatprep.subr.bf16.mxu1 %v5599_v44 }
 0x5da   :  { %v4280_v17 = vpop.eup %4279 }
 0x5db   :  { %v4282_v8 = vpop.eup %4281  ;;  %v2342_v24 = vpop.f32.mrb[84].mxu0  ;;  %v2409_v33 = vpack.c.bf16 %v4280_v17, %v4276_v61 }
 0x5dc   :  { %v2343_v31 = vadd.f32 %v2342_v24, %v5550_v62  ;;  %v2344_v46 = vpop.f32.mrb[85].mxu0  ;;  %v2410_v28 = vpack.c.bf16 %v4282_v8, %v4278_v60  ;;  %3880 = vmatpush3.bf16.msra.mxu1 %v5604_v3 }
 0x5dd   :  { %v2345_v49 = vadd.f32 %v2344_v46, %v5553_v1  ;;  %v2346_v56 = vpop.f32.mrb[86].mxu0  ;;  %3873 = vmatprep.subr.bf16.mxu1 %v5607_v14 }
 0x5de   :  { %4291 = vtanh.f32 %v2343_v31  ;;  %v2347_v20 = vadd.f32 %v2346_v56, %v5550_v62  ;;  %v2348_v0 = vpop.f32.mrb[87].mxu0  ;;  %2610 = vmatprep.mubr.bf16.mxu1 %v2410_v28 }
 0x5df   :  { %4293 = vtanh.f32 %v2345_v49  ;;  %v2349_v15 = vadd.f32 %v2348_v0, %v5553_v1  ;;  %2611 = vmatmul.mubr.bf16.gmra.mrb[76].mxu1 %v2409_v33 }
 0x5e0   :  { %v4284_v4 = vpop.eup %4283  ;;  %4295 = vtanh.f32 %v2347_v20  ;;  %3881 = vmatpush3.bf16.msra.mxu1 %v5611_v11 }
 0x5e1   :  { %v4286_v18 = vpop.eup %4285  ;;  %4297 = vtanh.f32 %v2349_v15  ;;  %3874 = vmatprep.subr.bf16.mxu1 %v5615_v57 }
 0x5e2   :  { %v4288_v19 = vpop.eup %4287 }
 0x5e3   :  { %v4290_v22 = vpop.eup %4289  ;;  %v2352_v25 = vpop.f32.mrb[88].mxu0  ;;  %v2411_v10 = vpack.c.bf16 %v4288_v19, %v4284_v4 }
 0x5e4   :  { %v2353_v45 = vadd.f32 %v2352_v25, %v5550_v62  ;;  %v2354_v54 = vpop.f32.mrb[89].mxu0  ;;  %v2412_v13 = vpack.c.bf16 %v4290_v22, %v4286_v18  ;;  %3882 = vmatpush3.bf16.msra.mxu1 %v5620_v6 }
 0x5e5   :  { %v2355_v9 = vadd.f32 %v2354_v54, %v5553_v1  ;;  %v2356_v29 = vpop.f32.mrb[90].mxu0 }
 0x5e6   :  { %4299 = vtanh.f32 %v2353_v45  ;;  %v2357_v38 = vadd.f32 %v2356_v29, %v5550_v62  ;;  %v2358_v41 = vpop.f32.mrb[91].mxu0  ;;  %2618 = vmatprep.mubr.bf16.mxu1 %v2412_v13 }
 0x5e7   :  { %4301 = vtanh.f32 %v2355_v9  ;;  %v2359_v51 = vadd.f32 %v2358_v41, %v5553_v1  ;;  %2619 = vmatmul.mubr.bf16.gmra.mrb[80].mxu1 %v2411_v10 }
 0x5e8   :  { %v4292_v53 = vpop.eup %4291  ;;  %4303 = vtanh.f32 %v2357_v38 }
 0x5e9   :  { %v4294_v58 = vpop.eup %4293  ;;  %4305 = vtanh.f32 %v2359_v51 }
 0x5ea   :  { %v4296_v61 = vpop.eup %4295 }
 0x5eb   :  { %v4298_v60 = vpop.eup %4297  ;;  %v2362_v17 = vpop.f32.mrb[92].mxu0  ;;  %v2413_v8 = vpack.c.bf16 %v4296_v61, %v4292_v53 }
 0x5ec   :  { %v2363_v24 = vadd.f32 %v2362_v17, %v5550_v62  ;;  %v2364_v33 = vpop.f32.mrb[93].mxu0  ;;  %v2414_v31 = vpack.c.bf16 %v4298_v60, %v4294_v58 }
 0x5ed   :  { %v2365_v46 = vadd.f32 %v2364_v33, %v5553_v1  ;;  %v2366_v28 = vpop.f32.mrb[94].mxu0 }
 0x5ee   :  { %4307 = vtanh.f32 %v2363_v24  ;;  %v2367_v49 = vadd.f32 %v2366_v28, %v5550_v62  ;;  %v2368_v56 = vpop.f32.mrb[95].mxu0  ;;  %2626 = vmatprep.mubr.bf16.mxu1 %v2414_v31 }
 0x5ef   :  { %4309 = vtanh.f32 %v2365_v46  ;;  %v2369_v20 = vadd.f32 %v2368_v56, %v5553_v1  ;;  %2627 = vmatmul.mubr.bf16.gmra.mrb[84].mxu1 %v2413_v8  ;;  %v4235_v1 = vld [vmem:[#allocation13 + $0x10] sm:$0xff]  }
 0x5f0   :  { %v4300_v0 = vpop.eup %4299  ;;  %4311 = vtanh.f32 %v2367_v49  ;;  %3807 = vmatprep.subr.bf16.mxu0 %v4235_v1 }
 0x5f1   :  { %v4302_v15 = vpop.eup %4301  ;;  %4313 = vtanh.f32 %v2369_v20  ;;  %3808 = vmatpush3.bf16.msra.mxu0 %v4235_v1 }
 0x5f2   :  { %v4304_v4 = vpop.eup %4303 }
 0x5f3   :  { %v4306_v18 = vpop.eup %4305  ;;  %v2415_v19 = vpack.c.bf16 %v4304_v4, %v4300_v0 }
 0x5f4   :  { %v2416_v22 = vpack.c.bf16 %v4306_v18, %v4302_v15 }
 0x5f6   :  { %2634 = vmatprep.mubr.bf16.mxu1 %v2416_v22 }
 0x5f7   :  { %2635 = vmatmul.mubr.bf16.gmra.mrb[88].mxu1 %v2415_v19 }
 0x5f8   :  { %v4308_v25 = vpop.eup %4307 }
 0x5f9   :  { %v4310_v10 = vpop.eup %4309 }
 0x5fa   :  { %v4312_v45 = vpop.eup %4311 }
 0x5fb   :  { %v4314_v62 = vpop.eup %4313  ;;  %v2417_v54 = vpack.c.bf16 %v4312_v45, %v4308_v25 }
 0x5fc   :  { %v2418_v13 = vpack.c.bf16 %v4314_v62, %v4310_v10 }
 0x5fe   :  { %2642 = vmatprep.mubr.bf16.mxu1 %v2418_v13  ;;  %v4242_v13 = vld [vmem:[#allocation14 + $0x8] sm:$0xff]  }
 0x5ff   :  { %2643 = vmatmul.mubr.bf16.gmra.mrb[92].mxu1 %v2417_v54 }
 0x600   :  { %3234 = vmatprep.mubr.bf16.mxu1 %v5504_v52  ;;  %v4236_v52 = vld [vmem:[#allocation13 + $0x18] sm:$0xff]  }
 0x601   :  { %3809 = vmatprep.subr.bf16.mxu0 %v4236_v52 }
 0x602   :  { %3810 = vmatpush3.bf16.msra.mxu0 %v4236_v52 }
 0x607   :  { %3235 = vmatmul.mubr.bf16.vlgmr.msra.gmra.mrb[96].mxu1 %v5510_v42  ;;  %v4237_v42 = vld [vmem:[#allocation13 + $0x20] sm:$0xff]  }
 0x608   :  { %3242 = vmatprep.mubr.bf16.mxu1 %v5512_v5  ;;  %3811 = vmatprep.subr.bf16.mxu0 %v4237_v42  ;;  %v4238_v5 = vld [vmem:[#allocation13 + $0x28] sm:$0xff]  }
 0x609   :  { %3812 = vmatpush3.bf16.msra.mxu0 %v4237_v42 }
 0x60a   :  { %3813 = vmatprep.subr.bf16.mxu0 %v4238_v5 }
 0x60d   :  { %3814 = vmatpush3.bf16.msra.mxu0 %v4238_v5  ;;  %v4243_v5 = vld [vmem:[#allocation14 + $0x10] sm:$0xff]  }
 0x60f   :  { %3243 = vmatmul.mubr.bf16.gmra.mrb[100].mxu1 %v5516_v47  ;;  %v4239_v47 = vld [vmem:[#allocation13 + $0x30] sm:$0xff]  }
 0x610   :  { %3250 = vmatprep.mubr.bf16.mxu1 %v5518_v48  ;;  %3815 = vmatprep.subr.bf16.mxu0 %v4239_v47  ;;  %v4240_v48 = vld [vmem:[#allocation13 + $0x38] sm:$0xff]  }
 0x611   :  { %3816 = vmatpush3.bf16.msra.mxu0 %v4239_v47 }
 0x612   :  { %3817 = vmatprep.subr.bf16.mxu0 %v4240_v48 }
 0x615   :  { %3818 = vmatpush3.bf16.msra.mxu0 %v4240_v48 }
 0x617   :  { %3251 = vmatmul.mubr.bf16.gmra.mrb[104].mxu1 %v5522_v50  ;;  %v4241_v50 = vld [vmem:[#allocation14] sm:$0xff]  }
 0x618   :  { %3258 = vmatprep.mubr.bf16.mxu1 %v5524_v63  ;;  %3835 = vmatprep.subr.bf16.mxu0 %v4241_v50 }
 0x61f   :  { %3259 = vmatmul.mubr.bf16.gmra.mrb[108].mxu1 %v5528_v12  ;;  %v5647_v12 = vld [vmem:[%s5807_s10] ss:$0 sm:$0xff] }
 0x620   :  { %3266 = vmatprep.mubr.bf16.mxu1 %v5530_v26 }
 0x627   :  { %3267 = vmatmul.mubr.bf16.gmra.mrb[112].mxu1 %v5534_v40 }
 0x628   :  { %3274 = vmatprep.mubr.bf16.mxu1 %v5536_v32 }
 0x62f   :  { %3275 = vmatmul.mubr.bf16.gmra.mrb[116].mxu1 %v5540_v37 }
 0x69a   :  { %v3659_v63 = vpop.f32.mrb[64].mxu1 }
 0x69b   :  { %v3660_v26 = vpop.f32.mrb[65].mxu1 }
 0x69c   :  { %v3661_v40 = vadd.f32 %v3660_v26, %v3659_v63  ;;  %v3662_v32 = vpop.f32.mrb[66].mxu1 }
 0x69d   :  { %v3663_v9 = vpop.f32.mrb[67].mxu1 }
 0x69e   :  { %v2589_v37 = vadd.f32 %v3661_v40, %v5647_v12  ;;  %v3664_v29 = vadd.f32 %v3663_v9, %v3662_v32 }
 0x6a0   :  { %v2592_v38 = vadd.f32 %v3664_v29, %v5647_v12  ;;  %4315 = vtanh.f32 %v2589_v37 }
 0x6a2   :  { %4317 = vtanh.f32 %v2592_v38  ;;  %v3665_v41 = vpop.f32.mrb[68].mxu1 }
 0x6a3   :  { %v3666_v51 = vpop.f32.mrb[69].mxu1 }
 0x6a4   :  { %v3667_v53 = vadd.f32 %v3666_v51, %v3665_v41  ;;  %v3668_v58 = vpop.f32.mrb[70].mxu1 }
 0x6a5   :  { %v3669_v61 = vpop.f32.mrb[71].mxu1 }
 0x6a6   :  { %v2597_v60 = vadd.f32 %v3667_v53, %v5647_v12  ;;  %v3670_v17 = vadd.f32 %v3669_v61, %v3668_v58 }
 0x6a8   :  { %v2600_v8 = vadd.f32 %v3670_v17, %v5647_v12  ;;  %4319 = vtanh.f32 %v2597_v60 }
 0x6aa   :  { %4321 = vtanh.f32 %v2600_v8  ;;  %v3671_v24 = vpop.f32.mrb[72].mxu1  ;;  %v4316_v33 = vpop.eup %4315 }
 0x6ab   :  { %v3672_v31 = vpop.f32.mrb[73].mxu1 }
 0x6ac   :  { %v4318_v46 = vpop.eup %4317  ;;  %v3673_v28 = vadd.f32 %v3672_v31, %v3671_v24  ;;  %v3674_v49 = vpop.f32.mrb[74].mxu1 }
 0x6ad   :  { %v3675_v56 = vpop.f32.mrb[75].mxu1  ;;  %v2667_v20 = vpack.c.bf16 %v4318_v46, %v4316_v33 }
 0x6ae   :  { %v2605_v0 = vadd.f32 %v3673_v28, %v5647_v12  ;;  %v3676_v15 = vadd.f32 %v3675_v56, %v3674_v49 }
 0x6af   :  { %3819 = vmatprep.mubr.bf16.mxu0 %v2667_v20 }
 0x6b0   :  { %v2608_v4 = vadd.f32 %v3676_v15, %v5647_v12  ;;  %4323 = vtanh.f32 %v2605_v0 }
 0x6b2   :  { %4325 = vtanh.f32 %v2608_v4  ;;  %v3677_v18 = vpop.f32.mrb[76].mxu1  ;;  %v4320_v19 = vpop.eup %4319 }
 0x6b3   :  { %v3678_v22 = vpop.f32.mrb[77].mxu1 }
 0x6b4   :  { %v4322_v25 = vpop.eup %4321  ;;  %v3679_v10 = vadd.f32 %v3678_v22, %v3677_v18  ;;  %v3680_v45 = vpop.f32.mrb[78].mxu1 }
 0x6b5   :  { %v3681_v62 = vpop.f32.mrb[79].mxu1  ;;  %v2668_v54 = vpack.c.bf16 %v4322_v25, %v4320_v19 }
 0x6b6   :  { %v2613_v1 = vadd.f32 %v3679_v10, %v5647_v12  ;;  %v3682_v52 = vadd.f32 %v3681_v62, %v3680_v45 }
 0x6b7   :  { %3820 = vmatmul.mubr.bf16.vlgmr.msra.gmra.mrb[96].mxu0 %v2668_v54 }
 0x6b8   :  { %v2616_v42 = vadd.f32 %v3682_v52, %v5647_v12  ;;  %3836 = vmatpush3.bf16.msra.mxu0 %v4241_v50  ;;  %4327 = vtanh.f32 %v2613_v1 }
 0x6b9   :  { %3837 = vmatprep.subr.bf16.mxu0 %v4242_v13 }
 0x6ba   :  { %4329 = vtanh.f32 %v2616_v42  ;;  %v3683_v47 = vpop.f32.mrb[80].mxu1  ;;  %v4324_v48 = vpop.eup %4323 }
 0x6bb   :  { %v3684_v63 = vpop.f32.mrb[81].mxu1 }
 0x6bc   :  { %v4326_v26 = vpop.eup %4325  ;;  %v3685_v40 = vadd.f32 %v3684_v63, %v3683_v47  ;;  %v3686_v32 = vpop.f32.mrb[82].mxu1  ;;  %3838 = vmatpush3.bf16.msra.mxu0 %v4242_v13 }
 0x6bd   :  { %v3687_v9 = vpop.f32.mrb[83].mxu1  ;;  %v2669_v37 = vpack.c.bf16 %v4326_v26, %v4324_v48  ;;  %3839 = vmatprep.subr.bf16.mxu0 %v4243_v5  ;;  %v5668_v26 = vld [vmem:[%s5813_s16] ss:$0 sm:$0xff] }
 0x6be   :  { %v2621_v29 = vadd.f32 %v3685_v40, %v5647_v12  ;;  %v3688_v38 = vadd.f32 %v3687_v9, %v3686_v32 }
 0x6bf   :  { %3823 = vmatprep.mubr.bf16.mxu0 %v2669_v37 }
 0x6c0   :  { %v2624_v50 = vadd.f32 %v3688_v38, %v5647_v12  ;;  %3840 = vmatpush3.bf16.msra.mxu0 %v4243_v5  ;;  %4331 = vtanh.f32 %v2621_v29 }
 0x6c2   :  { %4333 = vtanh.f32 %v2624_v50  ;;  %v3689_v41 = vpop.f32.mrb[84].mxu1  ;;  %v4328_v51 = vpop.eup %4327 }
 0x6c3   :  { %v3690_v53 = vpop.f32.mrb[85].mxu1 }
 0x6c4   :  { %v4330_v58 = vpop.eup %4329  ;;  %v3691_v61 = vadd.f32 %v3690_v53, %v3689_v41  ;;  %v3692_v60 = vpop.f32.mrb[86].mxu1 }
 0x6c5   :  { %v3693_v17 = vpop.f32.mrb[87].mxu1  ;;  %v2670_v8 = vpack.c.bf16 %v4330_v58, %v4328_v51 }
 0x6c6   :  { %v2629_v24 = vadd.f32 %v3691_v61, %v5647_v12  ;;  %v3694_v33 = vadd.f32 %v3693_v17, %v3692_v60 }
 0x6c7   :  { %3824 = vmatmul.mubr.bf16.gmra.mrb[100].mxu0 %v2670_v8 }
 0x6c8   :  { %v2632_v31 = vadd.f32 %v3694_v33, %v5647_v12  ;;  %4335 = vtanh.f32 %v2629_v24 }
 0x6ca   :  { %4337 = vtanh.f32 %v2632_v31  ;;  %v3695_v46 = vpop.f32.mrb[88].mxu1  ;;  %v4332_v28 = vpop.eup %4331 }
 0x6cb   :  { %v3696_v49 = vpop.f32.mrb[89].mxu1 }
 0x6cc   :  { %v4334_v56 = vpop.eup %4333  ;;  %v3697_v20 = vadd.f32 %v3696_v49, %v3695_v46  ;;  %v3698_v0 = vpop.f32.mrb[90].mxu1 }
 0x6cd   :  { %v3699_v15 = vpop.f32.mrb[91].mxu1  ;;  %v2671_v4 = vpack.c.bf16 %v4334_v56, %v4332_v28 }
 0x6ce   :  { %v2637_v18 = vadd.f32 %v3697_v20, %v5647_v12  ;;  %v3700_v19 = vadd.f32 %v3699_v15, %v3698_v0 }
 0x6cf   :  { %3827 = vmatprep.mubr.bf16.mxu0 %v2671_v4 }
 0x6d0   :  { %v2640_v22 = vadd.f32 %v3700_v19, %v5647_v12  ;;  %4339 = vtanh.f32 %v2637_v18 }
 0x6d2   :  { %4341 = vtanh.f32 %v2640_v22  ;;  %v3701_v25 = vpop.f32.mrb[92].mxu1  ;;  %v4336_v10 = vpop.eup %4335 }
 0x6d3   :  { %v3702_v45 = vpop.f32.mrb[93].mxu1 }
 0x6d4   :  { %v4338_v62 = vpop.eup %4337  ;;  %v3703_v54 = vadd.f32 %v3702_v45, %v3701_v25  ;;  %v3704_v13 = vpop.f32.mrb[94].mxu1 }
 0x6d5   :  { %v3705_v1 = vpop.f32.mrb[95].mxu1  ;;  %v2672_v52 = vpack.c.bf16 %v4338_v62, %v4336_v10 }
 0x6d6   :  { %v2645_v42 = vadd.f32 %v3703_v54, %v5647_v12  ;;  %v3706_v5 = vadd.f32 %v3705_v1, %v3704_v13 }
 0x6d7   :  { %3828 = vmatmul.mubr.bf16.gmra.mrb[104].mxu0 %v2672_v52 }
 0x6d8   :  { %v2648_v47 = vadd.f32 %v3706_v5, %v5647_v12  ;;  %4343 = vtanh.f32 %v2645_v42 }
 0x6da   :  { %4345 = vtanh.f32 %v2648_v47  ;;  %v3767_v48 = vpop.f32.mrb[96].mxu1  ;;  %v4340_v63 = vpop.eup %4339 }
 0x6db   :  { %v3768_v40 = vpop.f32.mrb[97].mxu1 }
 0x6dc   :  { %v4342_v32 = vpop.eup %4341  ;;  %v3769_v9 = vadd.f32 %v3768_v40, %v3767_v48  ;;  %v3770_v37 = vpop.f32.mrb[98].mxu1 }
 0x6dd   :  { %v3771_v29 = vpop.f32.mrb[99].mxu1  ;;  %v2673_v38 = vpack.c.bf16 %v4342_v32, %v4340_v63 }
 0x6de   :  { %v3237_v50 = vadd.f32 %v3769_v9, %v5668_v26  ;;  %v3772_v41 = vadd.f32 %v3771_v29, %v3770_v37 }
 0x6df   :  { %3831 = vmatprep.mubr.bf16.mxu0 %v2673_v38 }
 0x6e0   :  { %3287 = vst [vmem:[#allocation21 + $0x20] sm:$0xff] %v3237_v50  ;;  %v3240_v12 = vadd.f32 %v3772_v41, %v5668_v26 }
 0x6e2   :  { %3288 = vst [vmem:[#allocation21 + $0x28] sm:$0xff] %v3240_v12  ;;  %v3773_v51 = vpop.f32.mrb[100].mxu1  ;;  %v4344_v53 = vpop.eup %4343 }
 0x6e3   :  { %v3774_v58 = vpop.f32.mrb[101].mxu1 }
 0x6e4   :  { %v4346_v61 = vpop.eup %4345  ;;  %v3775_v60 = vadd.f32 %v3774_v58, %v3773_v51  ;;  %v3776_v17 = vpop.f32.mrb[102].mxu1  ;;  %v4244_v51 = vld [vmem:[#allocation14 + $0x18] sm:$0xff]   ;;  %v4246_v58 = vld [vmem:[#allocation14 + $0x28] sm:$0xff]  }
 0x6e5   :  { %v3777_v8 = vpop.f32.mrb[103].mxu1  ;;  %v2674_v24 = vpack.c.bf16 %v4346_v61, %v4344_v53  ;;  %3841 = vmatprep.subr.bf16.mxu0 %v4244_v51  ;;  %v4245_v53 = vld [vmem:[#allocation14 + $0x20] sm:$0xff]   ;;  %v4247_v61 = vld [vmem:[#allocation14 + $0x30] sm:$0xff]  }
 0x6e6   :  { %v3245_v33 = vadd.f32 %v3775_v60, %v5668_v26  ;;  %v3778_v31 = vadd.f32 %v3777_v8, %v3776_v17  ;;  %3842 = vmatpush3.bf16.msra.mxu0 %v4244_v51  ;;  %v4248_v60 = vld [vmem:[#allocation14 + $0x38] sm:$0xff]   ;;  %v5686_v17 = vld [vmem:[%s5809_s12] ss:$0 sm:$0xff]  ;;  %s4731_s12 = smov [#allocation18]  }
 0x6e7   :  { %3832 = vmatmul.mubr.bf16.gmra.mrb[108].mxu0 %v2674_v24  ;;  %3843 = vmatprep.subr.bf16.mxu0 %v4245_v53  ;;  %s3316_s27 = sshll.u32 %s4731_s12, 4  ;;  %s3317_s27 = int_to_ptr.vmem [resolvable:$true] %s3316_s27 }
 0x6e8   :  { %3289 = vst [vmem:[#allocation21 + $0x30] sm:$0xff] %v3245_v33  ;;  %v3248_v46 = vadd.f32 %v3778_v31, %v5668_v26  ;;  %s4609_s23 = scalar_lea.vmem %s3317_s27, 4096  ;;  %p4614_p3 = scmp.lt.s32.totalorder %s3317_s27, %s3317_s27 }
 0x6e9   :  { %p4610_p2 = scmp.ne.s32.totalorder %s3317_s27, %s4609_s23  ;;  %p4615_p4 = scmp.lt.s32.totalorder %s4609_s23, %s4609_s23 }
 0x6ea   :  { %3290 = vst [vmem:[#allocation21 + $0x38] sm:$0xff] %v3248_v46  ;;  %v3779_v28 = vpop.f32.mrb[104].mxu1  ;;  %3844 = vmatpush3.bf16.msra.mxu0 %v4245_v53 }
 0x6eb   :  { %v3780_v49 = vpop.f32.mrb[105].mxu1  ;;  %3845 = vmatprep.subr.bf16.mxu0 %v4246_v58  ;;  %p4616_p5 = por %p4615_p4, %p4614_p3 }
 0x6ec   :  { %v3781_v56 = vadd.f32 %v3780_v49, %v3779_v28  ;;  %v3782_v20 = vpop.f32.mrb[106].mxu1 }
 0x6ed   :  { %v3783_v0 = vpop.f32.mrb[107].mxu1  ;;  %p4617_p6 = pnand %p4616_p5, %p4610_p2 }
 0x6ee   :  { %v3253_v15 = vadd.f32 %v3781_v56, %v5668_v26  ;;  %v3784_v4 = vadd.f32 %v3783_v0, %v3782_v20  ;;  %3846 = vmatpush3.bf16.msra.mxu0 %v4246_v58 }
 0x6ef   :  { %3847 = vmatprep.subr.bf16.mxu0 %v4247_v61 }
 0x6f0   :  { %3291 = vst [vmem:[#allocation21 + $0x40] sm:$0xff] %v3253_v15  ;;  %v3256_v18 = vadd.f32 %v3784_v4, %v5668_v26 }
 0x6f2   :  { %3292 = vst [vmem:[#allocation21 + $0x48] sm:$0xff] %v3256_v18  ;;  %v3785_v19 = vpop.f32.mrb[108].mxu1  ;;  %3848 = vmatpush3.bf16.msra.mxu0 %v4247_v61 }
 0x6f3   :  { %v3786_v22 = vpop.f32.mrb[109].mxu1  ;;  %3849 = vmatprep.subr.bf16.mxu0 %v4248_v60 }
 0x6f4   :  { %v3787_v25 = vadd.f32 %v3786_v22, %v3785_v19  ;;  %v3788_v10 = vpop.f32.mrb[110].mxu1 }
 0x6f5   :  { %v3789_v45 = vpop.f32.mrb[111].mxu1 }
 0x6f6   :  { %v3261_v62 = vadd.f32 %v3787_v25, %v5668_v26  ;;  %v3790_v54 = vadd.f32 %v3789_v45, %v3788_v10  ;;  %3850 = vmatpush3.bf16.msra.mxu0 %v4248_v60 }
 0x6f7   :  { %3739 = vmatprep.subr.bf16.mxu0 %v5543_v55 }
 0x6f8   :  { %3293 = vst [vmem:[#allocation21 + $0x50] sm:$0xff] %v3261_v62  ;;  %v3264_v13 = vadd.f32 %v3790_v54, %v5668_v26 }
 0x6fa   :  { %3294 = vst [vmem:[#allocation21 + $0x58] sm:$0xff] %v3264_v13  ;;  %v3791_v1 = vpop.f32.mrb[112].mxu1 }
 0x6fb   :  { %v3792_v52 = vpop.f32.mrb[113].mxu1 }
 0x6fc   :  { %v3793_v42 = vadd.f32 %v3792_v52, %v3791_v1  ;;  %v3794_v5 = vpop.f32.mrb[114].mxu1 }
 0x6fd   :  { %v3795_v47 = vpop.f32.mrb[115].mxu1 }
 0x6fe   :  { %v3269_v48 = vadd.f32 %v3793_v42, %v5668_v26  ;;  %v3796_v63 = vadd.f32 %v3795_v47, %v3794_v5 }
 0x700   :  { %3295 = vst [vmem:[#allocation21 + $0x60] sm:$0xff] %v3269_v48  ;;  %v3272_v40 = vadd.f32 %v3796_v63, %v5668_v26 }
 0x702   :  { %3296 = vst [vmem:[#allocation21 + $0x68] sm:$0xff] %v3272_v40  ;;  %v3797_v32 = vpop.f32.mrb[116].mxu1 }
 0x703   :  { %v3798_v9 = vpop.f32.mrb[117].mxu1 }
 0x704   :  { %v3799_v37 = vadd.f32 %v3798_v9, %v3797_v32  ;;  %v3800_v29 = vpop.f32.mrb[118].mxu1 }
 0x705   :  { %v3801_v38 = vpop.f32.mrb[119].mxu1 }
 0x706   :  { %v3277_v50 = vadd.f32 %v3799_v37, %v5668_v26  ;;  %v3802_v41 = vadd.f32 %v3801_v38, %v3800_v29 }
 0x708   :  { %3297 = vst [vmem:[#allocation21 + $0x70] sm:$0xff] %v3277_v50  ;;  %v3280_v12 = vadd.f32 %v3802_v41, %v5668_v26 }
 0x70a   :  { %3298 = vst [vmem:[#allocation21 + $0x78] sm:$0xff] %v3280_v12 }
 0x78a   :  { %v3821_v8 = vpop.f32.mrb[96].mxu0 }
 0x78b   :  { %v2789_v24 = vadd.f32 %v3821_v8, %v5686_v17  ;;  %v2780_v33 = vpop.f32.mrb[97].mxu0 }
 0x78c   :  { %v2781_v31 = vadd.f32 %v5686_v17, %v2780_v33  ;;  %v3822_v46 = vpop.f32.mrb[98].mxu0 }
 0x78d   :  { %4347 = vtanh.f32 %v2789_v24  ;;  %v2792_v28 = vadd.f32 %v3822_v46, %v5686_v17  ;;  %v2783_v49 = vpop.f32.mrb[99].mxu0 }
 0x78e   :  { %4349 = vtanh.f32 %v2781_v31  ;;  %v2784_v56 = vadd.f32 %v5686_v17, %v2783_v49 }
 0x78f   :  { %4351 = vtanh.f32 %v2792_v28 }
 0x790   :  { %4353 = vtanh.f32 %v2784_v56 }
 0x797   :  { %v4348_v55 = vpop.eup %4347 }
 0x798   :  { %v4350_v20 = vpop.eup %4349 }
 0x799   :  { %v4352_v0 = vpop.eup %4351 }
 0x79a   :  { %v4354_v15 = vpop.eup %4353  ;;  %v3825_v4 = vpop.f32.mrb[100].mxu0  ;;  %v2860_v18 = vpack.c.bf16 %v4352_v0, %v4348_v55 }
 0x79b   :  { %v2805_v19 = vadd.f32 %v3825_v4, %v5686_v17  ;;  %v2796_v22 = vpop.f32.mrb[101].mxu0  ;;  %v2859_v25 = vpack.c.bf16 %v4354_v15, %v4350_v20 }
 0x79c   :  { %v2797_v10 = vadd.f32 %v5686_v17, %v2796_v22  ;;  %v3826_v45 = vpop.f32.mrb[102].mxu0 }
 0x79d   :  { %4355 = vtanh.f32 %v2805_v19  ;;  %v2808_v62 = vadd.f32 %v3826_v45, %v5686_v17  ;;  %v2799_v54 = vpop.f32.mrb[103].mxu0  ;;  %3851 = vmatprep.mubr.bf16.mxu0 %v2859_v25 }
 0x79e   :  { %4357 = vtanh.f32 %v2797_v10  ;;  %v2800_v13 = vadd.f32 %v5686_v17, %v2799_v54  ;;  %3852 = vmatmul.mubr.bf16.vlgmr.msra.gmra.mrb[112].mxu0 %v2860_v18 }
 0x79f   :  { %4359 = vtanh.f32 %v2808_v62  ;;  %3740 = vmatpush3.bf16.msra.mxu0 %v5564_v7 }
 0x7a0   :  { %4361 = vtanh.f32 %v2800_v13  ;;  %3741 = vmatprep.subr.bf16.mxu0 %v5567_v2 }
 0x7a3   :  { %3742 = vmatpush3.bf16.msra.mxu0 %v5572_v27 }
 0x7a4   :  { %3743 = vmatprep.subr.bf16.mxu0 %v5575_v34 }
 0x7a7   :  { %v4356_v1 = vpop.eup %4355  ;;  %3744 = vmatpush3.bf16.msra.mxu0 %v5579_v59 }
 0x7a8   :  { %v4358_v52 = vpop.eup %4357  ;;  %3745 = vmatprep.subr.bf16.mxu0 %v5583_v16 }
 0x7a9   :  { %v4360_v42 = vpop.eup %4359 }
 0x7aa   :  { %v4362_v5 = vpop.eup %4361  ;;  %v3829_v47 = vpop.f32.mrb[104].mxu0  ;;  %v2862_v48 = vpack.c.bf16 %v4360_v42, %v4356_v1 }
 0x7ab   :  { %v2821_v63 = vadd.f32 %v3829_v47, %v5686_v17  ;;  %v2812_v7 = vpop.f32.mrb[105].mxu0  ;;  %v2861_v40 = vpack.c.bf16 %v4362_v5, %v4358_v52  ;;  %3746 = vmatpush3.bf16.msra.mxu0 %v5588_v21 }
 0x7ac   :  { %v2813_v2 = vadd.f32 %v5686_v17, %v2812_v7  ;;  %v3830_v27 = vpop.f32.mrb[106].mxu0  ;;  %3747 = vmatprep.subr.bf16.mxu0 %v5591_v23 }
 0x7ad   :  { %4363 = vtanh.f32 %v2821_v63  ;;  %v2824_v34 = vadd.f32 %v3830_v27, %v5686_v17  ;;  %v2815_v59 = vpop.f32.mrb[107].mxu0  ;;  %3855 = vmatprep.mubr.bf16.mxu0 %v2861_v40 }
 0x7ae   :  { %4365 = vtanh.f32 %v2813_v2  ;;  %v2816_v16 = vadd.f32 %v5686_v17, %v2815_v59  ;;  %3856 = vmatmul.mubr.bf16.gmra.mrb[116].mxu0 %v2862_v48 }
 0x7af   :  { %4367 = vtanh.f32 %v2824_v34  ;;  %3748 = vmatpush3.bf16.msra.mxu0 %v5595_v36 }
 0x7b0   :  { %4369 = vtanh.f32 %v2816_v16  ;;  %3749 = vmatprep.subr.bf16.mxu0 %v5599_v44 }
 0x7b3   :  { %3750 = vmatpush3.bf16.msra.mxu0 %v5604_v3 }
 0x7b4   :  { %3751 = vmatprep.subr.bf16.mxu0 %v5607_v14 }
 0x7b7   :  { %v4364_v21 = vpop.eup %4363  ;;  %3752 = vmatpush3.bf16.msra.mxu0 %v5611_v11 }
 0x7b8   :  { %v4366_v23 = vpop.eup %4365  ;;  %3753 = vmatprep.subr.bf16.mxu0 %v5615_v57 }
 0x7b9   :  { %v4368_v32 = vpop.eup %4367 }
 0x7ba   :  { %v4370_v9 = vpop.eup %4369  ;;  %v3833_v37 = vpop.f32.mrb[108].mxu0  ;;  %v2864_v29 = vpack.c.bf16 %v4368_v32, %v4364_v21 }
 0x7bb   :  { %v2837_v38 = vadd.f32 %v3833_v37, %v5686_v17  ;;  %v2828_v36 = vpop.f32.mrb[109].mxu0  ;;  %v2863_v50 = vpack.c.bf16 %v4370_v9, %v4366_v23  ;;  %3754 = vmatpush3.bf16.msra.mxu0 %v5620_v6 }
 0x7bc   :  { %v2829_v44 = vadd.f32 %v5686_v17, %v2828_v36  ;;  %v3834_v3 = vpop.f32.mrb[110].mxu0 }
 0x7bd   :  { %4371 = vtanh.f32 %v2837_v38  ;;  %v2840_v14 = vadd.f32 %v3834_v3, %v5686_v17  ;;  %v2831_v11 = vpop.f32.mrb[111].mxu0  ;;  %3859 = vmatprep.mubr.bf16.mxu0 %v2863_v50 }
 0x7be   :  { %4373 = vtanh.f32 %v2829_v44  ;;  %v2832_v57 = vadd.f32 %v5686_v17, %v2831_v11  ;;  %3860 = vmatmul.mubr.bf16.gmra.mrb[120].mxu0 %v2864_v29 }
 0x7bf   :  { %4375 = vtanh.f32 %v2840_v14 }
 0x7c0   :  { %4377 = vtanh.f32 %v2832_v57 }
 0x7c7   :  { %v4372_v41 = vpop.eup %4371 }
 0x7c8   :  { %v4374_v12 = vpop.eup %4373 }
 0x7c9   :  { %v4376_v51 = vpop.eup %4375 }
 0x7ca   :  { %v4378_v53 = vpop.eup %4377  ;;  %v2866_v58 = vpack.c.bf16 %v4376_v51, %v4372_v41 }
 0x7cb   :  { %v2865_v6 = vpack.c.bf16 %v4378_v53, %v4374_v12 }
 0x7cd   :  { %3863 = vmatprep.mubr.bf16.mxu0 %v2865_v6 }
 0x7ce   :  { %3864 = vmatmul.mubr.bf16.gmra.mrb[124].mxu0 %v2866_v58 }
 0x7cf   :  { %3218 = vmatprep.mubr.bf16.mxu0 %v5493_v30 }
 0x7d6   :  { %3219 = vmatmul.mubr.bf16.vlgmr.msra.gmra.mrb[128].mxu0 %v5491_v35 }
 0x7d7   :  { %3226 = vmatprep.mubr.bf16.mxu0 %v5496_v43 }
 0x7de   :  { %3227 = vmatmul.mubr.bf16.gmra.mrb[132].mxu0 %v5502_v39 }
 0x7df   :  { %4620 = shalt.err (!%p4617_p6)
}
 0x7e0   :  { %s4621_s26 = scalar_lea.hbm %s5815_s18, 4096 }
 0x7e1   :  { %p4622_p7 = scmp.ne.s32.totalorder %s5815_s18, %s4621_s26  ;;  %p4625_p8 = scmp.lt.u32.totalorder %s4621_s26, %s5815_s18 }
 0x7e3   :  { %p4627_p9 = pnand %p4625_p8, %p4622_p7 }
 0x7e5   :  { %4630 = shalt.err (!%p4627_p9)
}
 0x7e6   :  { %3322 = dma.vmem_to_hbm [thread:$0]  %s3317_s27, 4096, %s5815_s18, [#allocation19], %s4724_s13, %s4724_s13, %s4725_s30  }
 0x7e7   :  { %s4631_s21 = scalar_lea.vmem %s5723_s5, 4096  ;;  %p4636_p11 = scmp.lt.s32.totalorder %s5723_s5, %s5723_s5 }
 0x7e8   :  { %p4632_p10 = scmp.ne.s32.totalorder %s5723_s5, %s4631_s21  ;;  %p4637_p12 = scmp.lt.s32.totalorder %s4631_s21, %s4631_s21 }
 0x7ea   :  { %p4638_p13 = por %p4637_p12, %p4636_p11 }
 0x7ec   :  { %p4639_p0 = pnand %p4638_p13, %p4632_p10 }
 0x7ee   :  { %4642 = shalt.err (!%p4639_p0)
}
 0x7ef   :  { %s4643_s28 = scalar_lea.hbm %s5814_s17, 4096 }
 0x7f0   :  { %p4644_p1 = scmp.ne.s32.totalorder %s5814_s17, %s4643_s28  ;;  %p4647_p2 = scmp.lt.u32.totalorder %s4643_s28, %s5814_s17 }
 0x7f2   :  { %p4649_p3 = pnand %p4647_p2, %p4644_p1 }
 0x7f4   :  { %4652 = shalt.err (!%p4649_p3)
}
 0x7f5   :  { %3310 = dma.vmem_to_hbm [thread:$0]  %s5723_s5, 4096, %s5814_s17, [#allocation4], %s4724_s13, %s4724_s13, %s4725_s30  }
 0x7f6   :  { %v3553_v35 = vld [vmem:[%s5811_s14] ss:$0 sm:$0xff]  ;;  %s4733_s14 = smov [#allocation20]  }
 0x7f7   :  { %s3328_s17 = sshll.u32 %s4733_s14, 4  ;;  %s3329_s17 = int_to_ptr.vmem [resolvable:$true] %s3328_s17 }
 0x7f8   :  { %s4653_s13 = scalar_lea.vmem %s3329_s17, 2048  ;;  %p4658_p5 = scmp.lt.s32.totalorder %s3329_s17, %s3329_s17 }
 0x7f9   :  { %p4654_p4 = scmp.ne.s32.totalorder %s3329_s17, %s4653_s13  ;;  %p4659_p6 = scmp.lt.s32.totalorder %s4653_s13, %s4653_s13 }
 0x7fb   :  { %p4660_p7 = por %p4659_p6, %p4658_p5 }
 0x7fd   :  { %p4661_p8 = pnand %p4660_p7, %p4654_p4 }
 0x871   :  { %v3853_v30 = vpop.f32.mrb[112].mxu0 }
 0x872   :  { %v2981_v43 = vadd.f32 %v3853_v30, %v3553_v35  ;;  %v2972_v39 = vpop.f32.mrb[113].mxu0 }
 0x873   :  { %v2973_v61 = vadd.f32 %v3553_v35, %v2972_v39  ;;  %v3854_v60 = vpop.f32.mrb[114].mxu0 }
 0x874   :  { %3037 = vst [vmem:[#allocation20 + $0x10] sm:$0xff] %v2981_v43  ;;  %v2984_v17 = vadd.f32 %v3854_v60, %v3553_v35  ;;  %v2975_v8 = vpop.f32.mrb[115].mxu0 }
 0x875   :  { %3035 = vst [vmem:[#allocation20] sm:$0xff] %v2973_v61  ;;  %v2976_v24 = vadd.f32 %v3553_v35, %v2975_v8 }
 0x876   :  { %3038 = vst [vmem:[#allocation20 + $0x18] sm:$0xff] %v2984_v17 }
 0x877   :  { %3036 = vst [vmem:[#allocation20 + $0x8] sm:$0xff] %v2976_v24 }
 0x881   :  { %v3857_v33 = vpop.f32.mrb[116].mxu0 }
 0x882   :  { %v2997_v31 = vadd.f32 %v3857_v33, %v3553_v35  ;;  %v2988_v46 = vpop.f32.mrb[117].mxu0 }
 0x883   :  { %v2989_v28 = vadd.f32 %v3553_v35, %v2988_v46  ;;  %v3858_v49 = vpop.f32.mrb[118].mxu0 }
 0x884   :  { %3041 = vst [vmem:[#allocation20 + $0x30] sm:$0xff] %v2997_v31  ;;  %v3000_v56 = vadd.f32 %v3858_v49, %v3553_v35  ;;  %v2991_v55 = vpop.f32.mrb[119].mxu0 }
 0x885   :  { %3039 = vst [vmem:[#allocation20 + $0x20] sm:$0xff] %v2989_v28  ;;  %v2992_v20 = vadd.f32 %v3553_v35, %v2991_v55 }
 0x886   :  { %3042 = vst [vmem:[#allocation20 + $0x38] sm:$0xff] %v3000_v56 }
 0x887   :  { %3040 = vst [vmem:[#allocation20 + $0x28] sm:$0xff] %v2992_v20 }
 0x891   :  { %v3861_v0 = vpop.f32.mrb[120].mxu0 }
 0x892   :  { %v3013_v15 = vadd.f32 %v3861_v0, %v3553_v35  ;;  %v3004_v4 = vpop.f32.mrb[121].mxu0 }
 0x893   :  { %v3005_v18 = vadd.f32 %v3553_v35, %v3004_v4  ;;  %v3862_v19 = vpop.f32.mrb[122].mxu0 }
 0x894   :  { %3045 = vst [vmem:[#allocation20 + $0x50] sm:$0xff] %v3013_v15  ;;  %v3016_v22 = vadd.f32 %v3862_v19, %v3553_v35  ;;  %v3007_v25 = vpop.f32.mrb[123].mxu0 }
 0x895   :  { %3043 = vst [vmem:[#allocation20 + $0x40] sm:$0xff] %v3005_v18  ;;  %v3008_v10 = vadd.f32 %v3553_v35, %v3007_v25 }
 0x896   :  { %3046 = vst [vmem:[#allocation20 + $0x58] sm:$0xff] %v3016_v22 }
 0x897   :  { %3044 = vst [vmem:[#allocation20 + $0x48] sm:$0xff] %v3008_v10 }
 0x8a1   :  { %v3865_v45 = vpop.f32.mrb[124].mxu0 }
 0x8a2   :  { %v3029_v62 = vadd.f32 %v3865_v45, %v3553_v35  ;;  %v3020_v54 = vpop.f32.mrb[125].mxu0 }
 0x8a3   :  { %v3021_v13 = vadd.f32 %v3553_v35, %v3020_v54  ;;  %v3866_v1 = vpop.f32.mrb[126].mxu0 }
 0x8a4   :  { %3049 = vst [vmem:[#allocation20 + $0x70] sm:$0xff] %v3029_v62  ;;  %v3032_v52 = vadd.f32 %v3866_v1, %v3553_v35  ;;  %v3023_v42 = vpop.f32.mrb[127].mxu0 }
 0x8a5   :  { %3047 = vst [vmem:[#allocation20 + $0x60] sm:$0xff] %v3021_v13  ;;  %v3024_v5 = vadd.f32 %v3553_v35, %v3023_v42 }
 0x8a6   :  { %3050 = vst [vmem:[#allocation20 + $0x78] sm:$0xff] %v3032_v52 }
 0x8a7   :  { %3048 = vst [vmem:[#allocation20 + $0x68] sm:$0xff] %v3024_v5 }
 0x8a8   :  { %4664 = shalt.err (!%p4661_p8)
}
 0x8a9   :  { %s5847_s9 = sld [smem:[#allocation38_spill]] }
 0x8af   :  { %s4665_s5 = scalar_lea.hbm %s5847_s9, 2048 }
 0x8b0   :  { %p4666_p9 = scmp.ne.s32.totalorder %s5847_s9, %s4665_s5  ;;  %p4669_p10 = scmp.lt.u32.totalorder %s4665_s5, %s5847_s9 }
 0x8b2   :  { %p4671_p11 = pnand %p4669_p10, %p4666_p9 }
 0x8b4   :  { %4674 = shalt.err (!%p4671_p11)
}
 0x8b5   :  { %3334 = dma.vmem_to_hbm [thread:$0]  %s3329_s17, 2048, %s5847_s9, [#allocation19], %s4718_s2, %s4718_s2, %s4719_s29   ;;  %v3755_v47 = vpop.f32.mrb[128].mxu0 }
 0x8b6   :  { %v3756_v48 = vpop.f32.mrb[129].mxu0  ;;  %s4734_s4 = smov [#allocation21]  }
 0x8b7   :  { %v3757_v63 = vadd.f32 %v3756_v48, %v3755_v47  ;;  %v3758_v7 = vpop.f32.mrb[130].mxu0  ;;  %s3340_s20 = sshll.u32 %s4734_s4, 4  ;;  %s3341_s20 = int_to_ptr.vmem [resolvable:$true] %s3340_s20 }
 0x8b8   :  { %v3759_v40 = vpop.f32.mrb[131].mxu0  ;;  %s4675_s7 = scalar_lea.vmem %s3341_s20, 2048  ;;  %p4680_p13 = scmp.lt.s32.totalorder %s3341_s20, %s3341_s20 }
 0x8b9   :  { %v3221_v2 = vadd.f32 %v3757_v63, %v5668_v26  ;;  %v3760_v27 = vadd.f32 %v3759_v40, %v3758_v7  ;;  %v3761_v59 = vpop.f32.mrb[132].mxu0  ;;  %p4676_p12 = scmp.ne.s32.totalorder %s3341_s20, %s4675_s7  ;;  %p4681_p0 = scmp.lt.s32.totalorder %s4675_s7, %s4675_s7 }
 0x8ba   :  { %v3762_v16 = vpop.f32.mrb[133].mxu0 }
 0x8bb   :  { %3283 = vst [vmem:[#allocation21] sm:$0xff] %v3221_v2  ;;  %v3224_v34 = vadd.f32 %v3760_v27, %v5668_v26  ;;  %v3763_v21 = vadd.f32 %v3762_v16, %v3761_v59  ;;  %v3764_v23 = vpop.f32.mrb[134].mxu0  ;;  %p4682_p1 = por %p4681_p0, %p4680_p13 }
 0x8bc   :  { %v3765_v32 = vpop.f32.mrb[135].mxu0 }
 0x8bd   :  { %3284 = vst [vmem:[#allocation21 + $0x8] sm:$0xff] %v3224_v34  ;;  %v3229_v9 = vadd.f32 %v3763_v21, %v5668_v26  ;;  %v3766_v37 = vadd.f32 %v3765_v32, %v3764_v23  ;;  %p4683_p2 = pnand %p4682_p1, %p4676_p12 }
 0x8bf   :  { %3285 = vst [vmem:[#allocation21 + $0x10] sm:$0xff] %v3229_v9  ;;  %v3232_v29 = vadd.f32 %v3766_v37, %v5668_v26 }
 0x8c1   :  { %3286 = vst [vmem:[#allocation21 + $0x18] sm:$0xff] %v3232_v29 }
 0x8c2   :  { %4686 = shalt.err (!%p4683_p2)
}
 0x8c3   :  { %s5848_s24 = sld [smem:[#allocation39_spill]] }
 0x8c9   :  { %s4687_s6 = scalar_lea.hbm %s5848_s24, 2048 }
 0x8ca   :  { %p4688_p3 = scmp.ne.s32.totalorder %s5848_s24, %s4687_s6  ;;  %p4691_p4 = scmp.lt.u32.totalorder %s4687_s6, %s5848_s24 }
 0x8cc   :  { %p4693_p5 = pnand %p4691_p4, %p4688_p3 }
 0x8ce   :  { %4696 = shalt.err (!%p4693_p5)
}
 0x8cf   :  { %3346 = dma.vmem_to_hbm [thread:$0]  %s3341_s20, 2048, %s5848_s24, [#allocation22], %s4718_s2, %s4718_s2, %s4719_s29  }
 0x8d0   :  { %4707 = dma.done.wait [#allocation4], 4096  }
 0x8d1   :  { %4708 = vsyncadd [#allocation4], 4294963200 }
 0x8d2   :  { %4709 = dma.done.wait [#allocation19], 6144  }
 0x8d3   :  { %4710 = vsyncadd [#allocation19], 4294961152 }
 0x8d4   :  { %4711 = dma.done.wait [#allocation22], 2048  }
 0x8d5   :  { %4712 = vsyncadd [#allocation22], 4294965248 }
 0x8d6   :  { %3359 = vsyncpa [#allocation3], 1 }
 0x8d7   :  { %3360 = vsyncpa [#allocation6], 1 }
 0x8d8   :  { %3361 = vsyncpa [#allocation9], 1 }
 0x8d9   :  { %3362 = vsyncpa [#allocation12], 1 }
 0x8da   :  { %3363 = vsyncpa [#allocation15], 1 }
 0x8db   :  { %3364 = vsyncpa [#allocation4], 1 }
 0x8dc   :  { %3365 = vsyncpa [#allocation19], 1 }
 0x8dd   :  { %3366 = vsyncpa [#allocation22], 1 }

</bundles_post_ra>
